<compile_context>
chip_gen: v5e
topology: v5e:2x2
jax: 0.10.0
libtpu: 0.0.40
codegen_flags: <defaults>
</compile_context>

<pallas_src>
import math
import functools

import jax
import jax.numpy as jnp
from jax import lax
from jax.experimental import pallas as pl
from jax.experimental.pallas import tpu as pltpu

# ---------------- small config (structure identical to the PyTorch module) -------
VOCAB_SIZE = 65          # len(chars) for tiny-shakespeare-like vocab
VOCAB_PAD = 128          # lane-dense padded vocab for the kernel output
N_EMBD = 128
N_HEAD = 4
HEAD_SIZE = N_EMBD // N_HEAD
N_BLOCK_LAYERS = 2
BLOCK_SIZE = 16          # max context length
LN_EPS = 1e-5            # PyTorch nn.LayerNorm default


# ---------------------------- fused Pallas kernel ---------------------------------
def _layernorm(x, g, b):
    mean = jnp.mean(x, axis=-1, keepdims=True)
    var = jnp.mean((x - mean) ** 2, axis=-1, keepdims=True)
    return (x - mean) * lax.rsqrt(var + LN_EPS) * g + b


def _fused_gpt_kernel(x_ref,
                      ln1g_ref, ln1b_ref, wqkv_ref, wproj_ref, bproj_ref,
                      ln2g_ref, ln2b_ref, wff1_ref, bff1_ref, wff2_ref, bff2_ref,
                      lnfg_ref, lnfb_ref, lmw_ref, lmb_ref,
                      o_ref, *, n_layers, n_head, seq_len):
    C = N_EMBD
    hs = C // n_head
    scale = 1.0 / math.sqrt(hs)
    T = seq_len

    # causal mask, built once per trace and reused across layers/heads
    row = lax.broadcasted_iota(jnp.int32, (T, T), 0)
    col = lax.broadcasted_iota(jnp.int32, (T, T), 1)
    causal = col <= row

    x = x_ref[...]                                            # (T, C) f32, one batch row

    for l in range(n_layers):
        # ---- LN1 fused into the fused-QKV matmul ------------------------------
        h = _layernorm(x, ln1g_ref[l], ln1b_ref[l])
        qkv = jnp.dot(h, wqkv_ref[l], preferred_element_type=jnp.float32)   # (T, 3C)

        wp = wproj_ref[l]                                     # (C, C)
        sa = jnp.zeros((T, C), jnp.float32)
        for hh in range(n_head):
            qh = qkv[:, hh * hs:(hh + 1) * hs]
            kh = qkv[:, C + hh * hs:C + (hh + 1) * hs]
            vh = qkv[:, 2 * C + hh * hs:2 * C + (hh + 1) * hs]
            # q @ k^T without an explicit transpose (contract last dims)
            wei = lax.dot_general(qh, kh, (((1,), (1,)), ((), ())),
                                  preferred_element_type=jnp.float32) * scale
            wei = jnp.where(causal, wei, -jnp.inf)            # causal mask (tril)
            wei = wei - jnp.max(wei, axis=-1, keepdims=True)  # softmax over dim=-1
            p = jnp.exp(wei)
            p = p * pl.reciprocal(jnp.sum(p, axis=-1, keepdims=True), approx=True)
            oh = jnp.dot(p, vh, preferred_element_type=jnp.float32)         # (T, hs)
            # head-concat fused into the output projection
            sa = sa + jnp.dot(oh, wp[hh * hs:(hh + 1) * hs, :],
                              preferred_element_type=jnp.float32)
        x = x + sa + bproj_ref[l]                             # residual + proj bias

        # ---- LN2 fused into the FFN matmuls ------------------------------------
        h2 = _layernorm(x, ln2g_ref[l], ln2b_ref[l])
        ff = jnp.dot(h2, wff1_ref[l], preferred_element_type=jnp.float32) + bff1_ref[l]
        ff = jnp.maximum(ff, 0.0)                             # ReLU
        ff = jnp.dot(ff, wff2_ref[l], preferred_element_type=jnp.float32) + bff2_ref[l]
        x = x + ff

    # ---- final LN fused into the (vocab-padded, lane-dense) lm head -------------
    hf = _layernorm(x, lnfg_ref[...], lnfb_ref[...])
    o_ref[...] = (jnp.dot(hf, lmw_ref[...], preferred_element_type=jnp.float32)
                  + lmb_ref[...])


# ------------------------------ model forward --------------------------------------
def bigram_forward(params, idx, targets=None):
    B, T = idx.shape
    C = N_EMBD
    L = N_BLOCK_LAYERS

    # embedding gathers kept as plain JAX (pure table lookups)
    tok_emb = jnp.take(params["tok_emb"], idx, axis=0)        # (B, T, C)
    pos_emb = params["pos_emb"][:T]                           # (T, C)
    x2d = (tok_emb + pos_emb[None, :, :]).reshape(B * T, C).astype(jnp.float32)

    def full_spec(shape):
        nd = len(shape)
        return pl.BlockSpec(shape, lambda b, _nd=nd: (0,) * _nd)

    kern = functools.partial(_fused_gpt_kernel,
                             n_layers=L, n_head=N_HEAD, seq_len=T)

    logits_pad = pl.pallas_call(
        kern,
        out_shape=jax.ShapeDtypeStruct((B * T, VOCAB_PAD), jnp.float32),
        grid=(B,),
        in_specs=[
            pl.BlockSpec((T, C), lambda b: (b, 0)),           # x: one batch row per step
            full_spec((L, 1, C)), full_spec((L, 1, C)),       # ln1 gamma/beta
            full_spec((L, C, 3 * C)),                         # fused QKV weight
            full_spec((L, C, C)), full_spec((L, 1, C)),       # attn out-proj W/b
            full_spec((L, 1, C)), full_spec((L, 1, C)),       # ln2 gamma/beta
            full_spec((L, C, 4 * C)), full_spec((L, 1, 4 * C)),   # ffn W1/b1
            full_spec((L, 4 * C, C)), full_spec((L, 1, C)),       # ffn W2/b2
            full_spec((1, C)), full_spec((1, C)),             # ln_f gamma/beta
            full_spec((C, VOCAB_PAD)), full_spec((1, VOCAB_PAD)),  # lm head (padded)
        ],
        out_specs=pl.BlockSpec((T, VOCAB_PAD), lambda b: (b, 0)),
        compiler_params=pltpu.CompilerParams(
            dimension_semantics=("parallel",)),
    )(
        x2d,
        params["ln1_g"], params["ln1_b"], params["wqkv"],
        params["w_proj"], params["b_proj"],
        params["ln2_g"], params["ln2_b"],
        params["w_ff1"], params["b_ff1"], params["w_ff2"], params["b_ff2"],
        params["lnf_g"], params["lnf_b"], params["lm_w_pad"], params["lm_b_pad"],
    )

    logits = logits_pad[:, :VOCAB_SIZE]                       # strip vocab padding
    if targets is None:
        loss = None
    else:
        # TODO(synk): cross-entropy loss path (targets != None) left in plain JAX.
        logp = logits - jax.nn.logsumexp(logits, axis=-1, keepdims=True)
        loss = -jnp.mean(jnp.take_along_axis(logp, targets.reshape(-1, 1), axis=-1))
    return logits, loss


# ------------------------------ parameter init -------------------------------------
def init_params(key):
    def nrm(k, shape, std=0.02):
        return std * jax.random.normal(k, shape, dtype=jnp.float32)

    L, C, H4, V = N_BLOCK_LAYERS, N_EMBD, 4 * N_EMBD, VOCAB_SIZE
    ks = jax.random.split(key, 8)

    lm_w = nrm(ks[2], (C, V))
    lm_w_pad = jnp.zeros((C, VOCAB_PAD), jnp.float32).at[:, :V].set(lm_w)
    lm_b_pad = jnp.zeros((1, VOCAB_PAD), jnp.float32)

    # per-layer weights are stacked along a leading L axis so the entire model
    # lives in VMEM for the single fused kernel (constant index maps).
    return {
        "tok_emb": nrm(ks[0], (V, C)),
        "pos_emb": nrm(ks[1], (BLOCK_SIZE, C)),
        "lnf_g": jnp.ones((1, C), jnp.float32),
        "lnf_b": jnp.zeros((1, C), jnp.float32),
        "lm_w_pad": lm_w_pad,
        "lm_b_pad": lm_b_pad,
        "ln1_g": jnp.ones((L, 1, C), jnp.float32),
        "ln1_b": jnp.zeros((L, 1, C), jnp.float32),
        "ln2_g": jnp.ones((L, 1, C), jnp.float32),
        "ln2_b": jnp.zeros((L, 1, C), jnp.float32),
        "wqkv": nrm(ks[3], (L, C, 3 * C)),     # per-head Q/K/V linears, fused
        "w_proj": nrm(ks[4], (L, C, C)),
        "b_proj": jnp.zeros((L, 1, C), jnp.float32),
        "w_ff1": nrm(ks[5], (L, C, H4)),
        "b_ff1": jnp.zeros((L, 1, H4), jnp.float32),
        "w_ff2": nrm(ks[6], (L, H4, C)),
        "b_ff2": jnp.zeros((L, 1, C), jnp.float32),
    }


# ------------------------------------ main ------------------------------------------
if __name__ == "__main__":
    key = jax.random.PRNGKey(0)
    pkey, dkey = jax.random.split(key)
    params = init_params(pkey)

    B, T = 2, BLOCK_SIZE  # small batch, seq = context length
    idx = jax.random.randint(dkey, (B, T), 0, VOCAB_SIZE, dtype=jnp.int32)

    logits, loss = jax.jit(lambda p, i: bigram_forward(p, i))(params, idx)
    logits = jax.block_until_ready(logits)

    assert logits.shape == (B * T, VOCAB_SIZE)
    assert loss is None
    assert bool(jnp.all(jnp.isfinite(logits)))
    print("KERNEL_OK")
</pallas_src>

<mosaic_0001>
module attributes {stable_mosaic.version = 11 : i64} {
  func.func @_fused_gpt_kernel(%arg0: i32, %arg1: memref<16x128xf32, #tpu.memory_space<vmem>>, %arg2: memref<2x1x128xf32, #tpu.memory_space<vmem>>, %arg3: memref<2x1x128xf32, #tpu.memory_space<vmem>>, %arg4: memref<2x128x384xf32, #tpu.memory_space<vmem>>, %arg5: memref<2x128x128xf32, #tpu.memory_space<vmem>>, %arg6: memref<2x1x128xf32, #tpu.memory_space<vmem>>, %arg7: memref<2x1x128xf32, #tpu.memory_space<vmem>>, %arg8: memref<2x1x128xf32, #tpu.memory_space<vmem>>, %arg9: memref<2x128x512xf32, #tpu.memory_space<vmem>>, %arg10: memref<2x1x512xf32, #tpu.memory_space<vmem>>, %arg11: memref<2x512x128xf32, #tpu.memory_space<vmem>>, %arg12: memref<2x1x128xf32, #tpu.memory_space<vmem>>, %arg13: memref<1x128xf32, #tpu.memory_space<vmem>>, %arg14: memref<1x128xf32, #tpu.memory_space<vmem>>, %arg15: memref<128x128xf32, #tpu.memory_space<vmem>>, %arg16: memref<1x128xf32, #tpu.memory_space<vmem>>, %arg17: memref<16x128xf32, #tpu.memory_space<vmem>>) attributes {dimension_semantics = [#tpu.dimension_semantics<parallel>], iteration_bounds = array<i64: 2>, scalar_prefetch = 0 : i64, scratch_operands = 0 : i64, tpu.core_type = #tpu.core_type<tc>, window_params = [{transform_indices = @transform_0, window_bounds = array<i64: 16, 128>}, {pipeline_mode = #tpu.pipeline_mode<synchronous>, transform_indices = @transform_1, window_bounds = array<i64: 2, 1, 128>}, {pipeline_mode = #tpu.pipeline_mode<synchronous>, transform_indices = @transform_2, window_bounds = array<i64: 2, 1, 128>}, {pipeline_mode = #tpu.pipeline_mode<synchronous>, transform_indices = @transform_3, window_bounds = array<i64: 2, 128, 384>}, {pipeline_mode = #tpu.pipeline_mode<synchronous>, transform_indices = @transform_4, window_bounds = array<i64: 2, 128, 128>}, {pipeline_mode = #tpu.pipeline_mode<synchronous>, transform_indices = @transform_5, window_bounds = array<i64: 2, 1, 128>}, {pipeline_mode = #tpu.pipeline_mode<synchronous>, transform_indices = @transform_6, window_bounds = array<i64: 2, 1, 128>}, {pipeline_mode = #tpu.pipeline_mode<synchronous>, transform_indices = @transform_7, window_bounds = array<i64: 2, 1, 128>}, {pipeline_mode = #tpu.pipeline_mode<synchronous>, transform_indices = @transform_8, window_bounds = array<i64: 2, 128, 512>}, {pipeline_mode = #tpu.pipeline_mode<synchronous>, transform_indices = @transform_9, window_bounds = array<i64: 2, 1, 512>}, {pipeline_mode = #tpu.pipeline_mode<synchronous>, transform_indices = @transform_10, window_bounds = array<i64: 2, 512, 128>}, {pipeline_mode = #tpu.pipeline_mode<synchronous>, transform_indices = @transform_11, window_bounds = array<i64: 2, 1, 128>}, {pipeline_mode = #tpu.pipeline_mode<synchronous>, transform_indices = @transform_12, window_bounds = array<i64: 1, 128>}, {pipeline_mode = #tpu.pipeline_mode<synchronous>, transform_indices = @transform_13, window_bounds = array<i64: 1, 128>}, {pipeline_mode = #tpu.pipeline_mode<synchronous>, transform_indices = @transform_14, window_bounds = array<i64: 128, 128>}, {pipeline_mode = #tpu.pipeline_mode<synchronous>, transform_indices = @transform_15, window_bounds = array<i64: 1, 128>}, {transform_indices = @transform_16, window_bounds = array<i64: 16, 128>}]} {
    %0 = tpu.iota {dimensions = array<i32: 0>} : vector<16x16xi32>
    %1 = tpu.iota {dimensions = array<i32: 1>} : vector<16x16xi32>
    %2 = arith.cmpi sle, %1, %0 : vector<16x16xi32>
    %c0 = arith.constant 0 : index
    %c0_0 = arith.constant 0 : index
    %3 = vector.load %arg1[%c0, %c0_0] : memref<16x128xf32, #tpu.memory_space<vmem>>, vector<16x128xf32>
    %c0_1 = arith.constant 0 : index
    %c0_2 = arith.constant 0 : index
    %c0_3 = arith.constant 0 : index
    %4 = vector.load %arg2[%c0_1, %c0_2, %c0_3] : memref<2x1x128xf32, #tpu.memory_space<vmem>>, vector<1x1x128xf32>
    %5 = vector.shape_cast %4 : vector<1x1x128xf32> to vector<1x128xf32>
    %c0_4 = arith.constant 0 : index
    %c0_5 = arith.constant 0 : index
    %c0_6 = arith.constant 0 : index
    %6 = vector.load %arg3[%c0_4, %c0_5, %c0_6] : memref<2x1x128xf32, #tpu.memory_space<vmem>>, vector<1x1x128xf32>
    %7 = vector.shape_cast %6 : vector<1x1x128xf32> to vector<1x128xf32>
    %cst = arith.constant dense<0.000000e+00> : vector<16xf32>
    %8 = vector.multi_reduction <add>, %3, %cst [1] : vector<16x128xf32> to vector<16xf32>
    %9 = vector.shape_cast %8 : vector<16xf32> to vector<16x1xf32>
    %cst_7 = arith.constant 1.280000e+02 : f32
    %10 = vector.broadcast %cst_7 : f32 to vector<16x1xf32>
    %11 = arith.divf %9, %10 : vector<16x1xf32>
    %12 = vector.broadcast %11 : vector<16x1xf32> to vector<16x128xf32>
    %13 = arith.subf %3, %12 : vector<16x128xf32>
    %14 = arith.mulf %13, %13 : vector<16x128xf32>
    %cst_8 = arith.constant dense<0.000000e+00> : vector<16xf32>
    %15 = vector.multi_reduction <add>, %14, %cst_8 [1] : vector<16x128xf32> to vector<16xf32>
    %16 = vector.shape_cast %15 : vector<16xf32> to vector<16x1xf32>
    %cst_9 = arith.constant 1.280000e+02 : f32
    %17 = vector.broadcast %cst_9 : f32 to vector<16x1xf32>
    %18 = arith.divf %16, %17 : vector<16x1xf32>
    %19 = vector.broadcast %11 : vector<16x1xf32> to vector<16x128xf32>
    %20 = arith.subf %3, %19 : vector<16x128xf32>
    %cst_10 = arith.constant 9.99999974E-6 : f32
    %21 = vector.broadcast %cst_10 : f32 to vector<16x1xf32>
    %22 = arith.addf %18, %21 : vector<16x1xf32>
    %23 = math.rsqrt %22 : vector<16x1xf32>
    %24 = vector.broadcast %23 : vector<16x1xf32> to vector<16x128xf32>
    %25 = arith.mulf %20, %24 : vector<16x128xf32>
    %26 = vector.broadcast %5 : vector<1x128xf32> to vector<16x128xf32>
    %27 = arith.mulf %25, %26 : vector<16x128xf32>
    %28 = vector.broadcast %7 : vector<1x128xf32> to vector<16x128xf32>
    %29 = arith.addf %27, %28 : vector<16x128xf32>
    %c0_11 = arith.constant 0 : index
    %c0_12 = arith.constant 0 : index
    %c0_13 = arith.constant 0 : index
    %30 = vector.load %arg4[%c0_11, %c0_12, %c0_13] : memref<2x128x384xf32, #tpu.memory_space<vmem>>, vector<1x128x384xf32>
    %31 = vector.shape_cast %30 : vector<1x128x384xf32> to vector<128x384xf32>
    %cst_14 = arith.constant dense<0.000000e+00> : vector<16x384xf32>
    %32 = tpu.matmul %29, %31, %cst_14 {dimension_numbers = #tpu.dot_dimension_numbers<[1], [0], [0], [1], [0, 0, 1, 1], [], []>} : vector<16x128xf32>, vector<128x384xf32>, vector<16x384xf32> -> vector<16x384xf32>
    %c0_15 = arith.constant 0 : index
    %c0_16 = arith.constant 0 : index
    %c0_17 = arith.constant 0 : index
    %33 = vector.load %arg5[%c0_15, %c0_16, %c0_17] : memref<2x128x128xf32, #tpu.memory_space<vmem>>, vector<1x128x128xf32>
    %34 = vector.shape_cast %33 : vector<1x128x128xf32> to vector<128x128xf32>
    %cst_18 = arith.constant 0.000000e+00 : f32
    %35 = vector.broadcast %cst_18 : f32 to vector<16x128xf32>
    %36 = vector.extract_strided_slice %32 {offsets = [0, 0], sizes = [16, 32], strides = [1, 1]} : vector<16x384xf32> to vector<16x32xf32>
    %37 = vector.extract_strided_slice %32 {offsets = [0, 128], sizes = [16, 32], strides = [1, 1]} : vector<16x384xf32> to vector<16x32xf32>
    %38 = vector.extract_strided_slice %32 {offsets = [0, 256], sizes = [16, 32], strides = [1, 1]} : vector<16x384xf32> to vector<16x32xf32>
    %cst_19 = arith.constant dense<0.000000e+00> : vector<16x16xf32>
    %39 = tpu.matmul %36, %37, %cst_19 {dimension_numbers = #tpu.dot_dimension_numbers<[1], [1], [0], [0], [0, 0, 1, 0], [], []>} : vector<16x32xf32>, vector<16x32xf32>, vector<16x16xf32> -> vector<16x16xf32>
    %cst_20 = arith.constant 0.176776692 : f32
    %40 = vector.broadcast %cst_20 : f32 to vector<16x16xf32>
    %41 = arith.mulf %39, %40 : vector<16x16xf32>
    %cst_21 = arith.constant 0xFF800000 : f32
    %42 = vector.broadcast %cst_21 : f32 to vector<16x16xf32>
    %43 = arith.select %2, %41, %42 : vector<16x16xi1>, vector<16x16xf32>
    %cst_22 = arith.constant dense<0xFF800000> : vector<16xf32>
    %44 = vector.multi_reduction <maximumf>, %43, %cst_22 [1] : vector<16x16xf32> to vector<16xf32>
    %45 = vector.shape_cast %44 : vector<16xf32> to vector<16x1xf32>
    %46 = vector.broadcast %45 : vector<16x1xf32> to vector<16x16xf32>
    %47 = arith.subf %43, %46 : vector<16x16xf32>
    %48 = math.exp %47 : vector<16x16xf32>
    %cst_23 = arith.constant dense<0.000000e+00> : vector<16xf32>
    %49 = vector.multi_reduction <add>, %48, %cst_23 [1] : vector<16x16xf32> to vector<16xf32>
    %50 = vector.shape_cast %49 : vector<16xf32> to vector<16x1xf32>
    %51 = tpu.reciprocal %50 {approx = true} : vector<16x1xf32> -> vector<16x1xf32>
    %52 = vector.broadcast %51 : vector<16x1xf32> to vector<16x16xf32>
    %53 = arith.mulf %48, %52 : vector<16x16xf32>
    %cst_24 = arith.constant dense<0.000000e+00> : vector<16x32xf32>
    %54 = tpu.matmul %53, %38, %cst_24 {dimension_numbers = #tpu.dot_dimension_numbers<[1], [0], [0], [1], [0, 0, 1, 1], [], []>} : vector<16x16xf32>, vector<16x32xf32>, vector<16x32xf32> -> vector<16x32xf32>
    %55 = vector.extract_strided_slice %34 {offsets = [0, 0], sizes = [32, 128], strides = [1, 1]} : vector<128x128xf32> to vector<32x128xf32>
    %cst_25 = arith.constant dense<0.000000e+00> : vector<16x128xf32>
    %56 = tpu.matmul %54, %55, %cst_25 {dimension_numbers = #tpu.dot_dimension_numbers<[1], [0], [0], [1], [0, 0, 1, 1], [], []>} : vector<16x32xf32>, vector<32x128xf32>, vector<16x128xf32> -> vector<16x128xf32>
    %57 = arith.addf %35, %56 : vector<16x128xf32>
    %58 = vector.extract_strided_slice %32 {offsets = [0, 32], sizes = [16, 32], strides = [1, 1]} : vector<16x384xf32> to vector<16x32xf32>
    %59 = vector.extract_strided_slice %32 {offsets = [0, 160], sizes = [16, 32], strides = [1, 1]} : vector<16x384xf32> to vector<16x32xf32>
    %60 = vector.extract_strided_slice %32 {offsets = [0, 288], sizes = [16, 32], strides = [1, 1]} : vector<16x384xf32> to vector<16x32xf32>
    %cst_26 = arith.constant dense<0.000000e+00> : vector<16x16xf32>
    %61 = tpu.matmul %58, %59, %cst_26 {dimension_numbers = #tpu.dot_dimension_numbers<[1], [1], [0], [0], [0, 0, 1, 0], [], []>} : vector<16x32xf32>, vector<16x32xf32>, vector<16x16xf32> -> vector<16x16xf32>
    %cst_27 = arith.constant 0.176776692 : f32
    %62 = vector.broadcast %cst_27 : f32 to vector<16x16xf32>
    %63 = arith.mulf %61, %62 : vector<16x16xf32>
    %cst_28 = arith.constant 0xFF800000 : f32
    %64 = vector.broadcast %cst_28 : f32 to vector<16x16xf32>
    %65 = arith.select %2, %63, %64 : vector<16x16xi1>, vector<16x16xf32>
    %cst_29 = arith.constant dense<0xFF800000> : vector<16xf32>
    %66 = vector.multi_reduction <maximumf>, %65, %cst_29 [1] : vector<16x16xf32> to vector<16xf32>
    %67 = vector.shape_cast %66 : vector<16xf32> to vector<16x1xf32>
    %68 = vector.broadcast %67 : vector<16x1xf32> to vector<16x16xf32>
    %69 = arith.subf %65, %68 : vector<16x16xf32>
    %70 = math.exp %69 : vector<16x16xf32>
    %cst_30 = arith.constant dense<0.000000e+00> : vector<16xf32>
    %71 = vector.multi_reduction <add>, %70, %cst_30 [1] : vector<16x16xf32> to vector<16xf32>
    %72 = vector.shape_cast %71 : vector<16xf32> to vector<16x1xf32>
    %73 = tpu.reciprocal %72 {approx = true} : vector<16x1xf32> -> vector<16x1xf32>
    %74 = vector.broadcast %73 : vector<16x1xf32> to vector<16x16xf32>
    %75 = arith.mulf %70, %74 : vector<16x16xf32>
    %cst_31 = arith.constant dense<0.000000e+00> : vector<16x32xf32>
    %76 = tpu.matmul %75, %60, %cst_31 {dimension_numbers = #tpu.dot_dimension_numbers<[1], [0], [0], [1], [0, 0, 1, 1], [], []>} : vector<16x16xf32>, vector<16x32xf32>, vector<16x32xf32> -> vector<16x32xf32>
    %77 = vector.extract_strided_slice %34 {offsets = [32, 0], sizes = [32, 128], strides = [1, 1]} : vector<128x128xf32> to vector<32x128xf32>
    %cst_32 = arith.constant dense<0.000000e+00> : vector<16x128xf32>
    %78 = tpu.matmul %76, %77, %cst_32 {dimension_numbers = #tpu.dot_dimension_numbers<[1], [0], [0], [1], [0, 0, 1, 1], [], []>} : vector<16x32xf32>, vector<32x128xf32>, vector<16x128xf32> -> vector<16x128xf32>
    %79 = arith.addf %57, %78 : vector<16x128xf32>
    %80 = vector.extract_strided_slice %32 {offsets = [0, 64], sizes = [16, 32], strides = [1, 1]} : vector<16x384xf32> to vector<16x32xf32>
    %81 = vector.extract_strided_slice %32 {offsets = [0, 192], sizes = [16, 32], strides = [1, 1]} : vector<16x384xf32> to vector<16x32xf32>
    %82 = vector.extract_strided_slice %32 {offsets = [0, 320], sizes = [16, 32], strides = [1, 1]} : vector<16x384xf32> to vector<16x32xf32>
    %cst_33 = arith.constant dense<0.000000e+00> : vector<16x16xf32>
    %83 = tpu.matmul %80, %81, %cst_33 {dimension_numbers = #tpu.dot_dimension_numbers<[1], [1], [0], [0], [0, 0, 1, 0], [], []>} : vector<16x32xf32>, vector<16x32xf32>, vector<16x16xf32> -> vector<16x16xf32>
    %cst_34 = arith.constant 0.176776692 : f32
    %84 = vector.broadcast %cst_34 : f32 to vector<16x16xf32>
    %85 = arith.mulf %83, %84 : vector<16x16xf32>
    %cst_35 = arith.constant 0xFF800000 : f32
    %86 = vector.broadcast %cst_35 : f32 to vector<16x16xf32>
    %87 = arith.select %2, %85, %86 : vector<16x16xi1>, vector<16x16xf32>
    %cst_36 = arith.constant dense<0xFF800000> : vector<16xf32>
    %88 = vector.multi_reduction <maximumf>, %87, %cst_36 [1] : vector<16x16xf32> to vector<16xf32>
    %89 = vector.shape_cast %88 : vector<16xf32> to vector<16x1xf32>
    %90 = vector.broadcast %89 : vector<16x1xf32> to vector<16x16xf32>
    %91 = arith.subf %87, %90 : vector<16x16xf32>
    %92 = math.exp %91 : vector<16x16xf32>
    %cst_37 = arith.constant dense<0.000000e+00> : vector<16xf32>
    %93 = vector.multi_reduction <add>, %92, %cst_37 [1] : vector<16x16xf32> to vector<16xf32>
    %94 = vector.shape_cast %93 : vector<16xf32> to vector<16x1xf32>
    %95 = tpu.reciprocal %94 {approx = true} : vector<16x1xf32> -> vector<16x1xf32>
    %96 = vector.broadcast %95 : vector<16x1xf32> to vector<16x16xf32>
    %97 = arith.mulf %92, %96 : vector<16x16xf32>
    %cst_38 = arith.constant dense<0.000000e+00> : vector<16x32xf32>
    %98 = tpu.matmul %97, %82, %cst_38 {dimension_numbers = #tpu.dot_dimension_numbers<[1], [0], [0], [1], [0, 0, 1, 1], [], []>} : vector<16x16xf32>, vector<16x32xf32>, vector<16x32xf32> -> vector<16x32xf32>
    %99 = vector.extract_strided_slice %34 {offsets = [64, 0], sizes = [32, 128], strides = [1, 1]} : vector<128x128xf32> to vector<32x128xf32>
    %cst_39 = arith.constant dense<0.000000e+00> : vector<16x128xf32>
    %100 = tpu.matmul %98, %99, %cst_39 {dimension_numbers = #tpu.dot_dimension_numbers<[1], [0], [0], [1], [0, 0, 1, 1], [], []>} : vector<16x32xf32>, vector<32x128xf32>, vector<16x128xf32> -> vector<16x128xf32>
    %101 = arith.addf %79, %100 : vector<16x128xf32>
    %102 = vector.extract_strided_slice %32 {offsets = [0, 96], sizes = [16, 32], strides = [1, 1]} : vector<16x384xf32> to vector<16x32xf32>
    %103 = vector.extract_strided_slice %32 {offsets = [0, 224], sizes = [16, 32], strides = [1, 1]} : vector<16x384xf32> to vector<16x32xf32>
    %104 = vector.extract_strided_slice %32 {offsets = [0, 352], sizes = [16, 32], strides = [1, 1]} : vector<16x384xf32> to vector<16x32xf32>
    %cst_40 = arith.constant dense<0.000000e+00> : vector<16x16xf32>
    %105 = tpu.matmul %102, %103, %cst_40 {dimension_numbers = #tpu.dot_dimension_numbers<[1], [1], [0], [0], [0, 0, 1, 0], [], []>} : vector<16x32xf32>, vector<16x32xf32>, vector<16x16xf32> -> vector<16x16xf32>
    %cst_41 = arith.constant 0.176776692 : f32
    %106 = vector.broadcast %cst_41 : f32 to vector<16x16xf32>
    %107 = arith.mulf %105, %106 : vector<16x16xf32>
    %cst_42 = arith.constant 0xFF800000 : f32
    %108 = vector.broadcast %cst_42 : f32 to vector<16x16xf32>
    %109 = arith.select %2, %107, %108 : vector<16x16xi1>, vector<16x16xf32>
    %cst_43 = arith.constant dense<0xFF800000> : vector<16xf32>
    %110 = vector.multi_reduction <maximumf>, %109, %cst_43 [1] : vector<16x16xf32> to vector<16xf32>
    %111 = vector.shape_cast %110 : vector<16xf32> to vector<16x1xf32>
    %112 = vector.broadcast %111 : vector<16x1xf32> to vector<16x16xf32>
    %113 = arith.subf %109, %112 : vector<16x16xf32>
    %114 = math.exp %113 : vector<16x16xf32>
    %cst_44 = arith.constant dense<0.000000e+00> : vector<16xf32>
    %115 = vector.multi_reduction <add>, %114, %cst_44 [1] : vector<16x16xf32> to vector<16xf32>
    %116 = vector.shape_cast %115 : vector<16xf32> to vector<16x1xf32>
    %117 = tpu.reciprocal %116 {approx = true} : vector<16x1xf32> -> vector<16x1xf32>
    %118 = vector.broadcast %117 : vector<16x1xf32> to vector<16x16xf32>
    %119 = arith.mulf %114, %118 : vector<16x16xf32>
    %cst_45 = arith.constant dense<0.000000e+00> : vector<16x32xf32>
    %120 = tpu.matmul %119, %104, %cst_45 {dimension_numbers = #tpu.dot_dimension_numbers<[1], [0], [0], [1], [0, 0, 1, 1], [], []>} : vector<16x16xf32>, vector<16x32xf32>, vector<16x32xf32> -> vector<16x32xf32>
    %121 = vector.extract_strided_slice %34 {offsets = [96, 0], sizes = [32, 128], strides = [1, 1]} : vector<128x128xf32> to vector<32x128xf32>
    %cst_46 = arith.constant dense<0.000000e+00> : vector<16x128xf32>
    %122 = tpu.matmul %120, %121, %cst_46 {dimension_numbers = #tpu.dot_dimension_numbers<[1], [0], [0], [1], [0, 0, 1, 1], [], []>} : vector<16x32xf32>, vector<32x128xf32>, vector<16x128xf32> -> vector<16x128xf32>
    %123 = arith.addf %101, %122 : vector<16x128xf32>
    %124 = arith.addf %3, %123 : vector<16x128xf32>
    %c0_47 = arith.constant 0 : index
    %c0_48 = arith.constant 0 : index
    %c0_49 = arith.constant 0 : index
    %125 = vector.load %arg6[%c0_47, %c0_48, %c0_49] : memref<2x1x128xf32, #tpu.memory_space<vmem>>, vector<1x1x128xf32>
    %126 = vector.shape_cast %125 : vector<1x1x128xf32> to vector<1x128xf32>
    %127 = vector.broadcast %126 : vector<1x128xf32> to vector<16x128xf32>
    %128 = arith.addf %124, %127 : vector<16x128xf32>
    %c0_50 = arith.constant 0 : index
    %c0_51 = arith.constant 0 : index
    %c0_52 = arith.constant 0 : index
    %129 = vector.load %arg7[%c0_50, %c0_51, %c0_52] : memref<2x1x128xf32, #tpu.memory_space<vmem>>, vector<1x1x128xf32>
    %130 = vector.shape_cast %129 : vector<1x1x128xf32> to vector<1x128xf32>
    %c0_53 = arith.constant 0 : index
    %c0_54 = arith.constant 0 : index
    %c0_55 = arith.constant 0 : index
    %131 = vector.load %arg8[%c0_53, %c0_54, %c0_55] : memref<2x1x128xf32, #tpu.memory_space<vmem>>, vector<1x1x128xf32>
    %132 = vector.shape_cast %131 : vector<1x1x128xf32> to vector<1x128xf32>
    %cst_56 = arith.constant dense<0.000000e+00> : vector<16xf32>
    %133 = vector.multi_reduction <add>, %128, %cst_56 [1] : vector<16x128xf32> to vector<16xf32>
    %134 = vector.shape_cast %133 : vector<16xf32> to vector<16x1xf32>
    %cst_57 = arith.constant 1.280000e+02 : f32
    %135 = vector.broadcast %cst_57 : f32 to vector<16x1xf32>
    %136 = arith.divf %134, %135 : vector<16x1xf32>
    %137 = vector.broadcast %136 : vector<16x1xf32> to vector<16x128xf32>
    %138 = arith.subf %128, %137 : vector<16x128xf32>
    %139 = arith.mulf %138, %138 : vector<16x128xf32>
    %cst_58 = arith.constant dense<0.000000e+00> : vector<16xf32>
    %140 = vector.multi_reduction <add>, %139, %cst_58 [1] : vector<16x128xf32> to vector<16xf32>
    %141 = vector.shape_cast %140 : vector<16xf32> to vector<16x1xf32>
    %cst_59 = arith.constant 1.280000e+02 : f32
    %142 = vector.broadcast %cst_59 : f32 to vector<16x1xf32>
    %143 = arith.divf %141, %142 : vector<16x1xf32>
    %144 = vector.broadcast %136 : vector<16x1xf32> to vector<16x128xf32>
    %145 = arith.subf %128, %144 : vector<16x128xf32>
    %cst_60 = arith.constant 9.99999974E-6 : f32
    %146 = vector.broadcast %cst_60 : f32 to vector<16x1xf32>
    %147 = arith.addf %143, %146 : vector<16x1xf32>
    %148 = math.rsqrt %147 : vector<16x1xf32>
    %149 = vector.broadcast %148 : vector<16x1xf32> to vector<16x128xf32>
    %150 = arith.mulf %145, %149 : vector<16x128xf32>
    %151 = vector.broadcast %130 : vector<1x128xf32> to vector<16x128xf32>
    %152 = arith.mulf %150, %151 : vector<16x128xf32>
    %153 = vector.broadcast %132 : vector<1x128xf32> to vector<16x128xf32>
    %154 = arith.addf %152, %153 : vector<16x128xf32>
    %c0_61 = arith.constant 0 : index
    %c0_62 = arith.constant 0 : index
    %c0_63 = arith.constant 0 : index
    %155 = vector.load %arg9[%c0_61, %c0_62, %c0_63] : memref<2x128x512xf32, #tpu.memory_space<vmem>>, vector<1x128x512xf32>
    %156 = vector.shape_cast %155 : vector<1x128x512xf32> to vector<128x512xf32>
    %cst_64 = arith.constant dense<0.000000e+00> : vector<16x512xf32>
    %157 = tpu.matmul %154, %156, %cst_64 {dimension_numbers = #tpu.dot_dimension_numbers<[1], [0], [0], [1], [0, 0, 1, 1], [], []>} : vector<16x128xf32>, vector<128x512xf32>, vector<16x512xf32> -> vector<16x512xf32>
    %c0_65 = arith.constant 0 : index
    %c0_66 = arith.constant 0 : index
    %c0_67 = arith.constant 0 : index
    %158 = vector.load %arg10[%c0_65, %c0_66, %c0_67] : memref<2x1x512xf32, #tpu.memory_space<vmem>>, vector<1x1x512xf32>
    %159 = vector.shape_cast %158 : vector<1x1x512xf32> to vector<1x512xf32>
    %160 = vector.broadcast %159 : vector<1x512xf32> to vector<16x512xf32>
    %161 = arith.addf %157, %160 : vector<16x512xf32>
    %cst_68 = arith.constant 0.000000e+00 : f32
    %162 = vector.broadcast %cst_68 : f32 to vector<16x512xf32>
    %163 = arith.maximumf %161, %162 : vector<16x512xf32>
    %c0_69 = arith.constant 0 : index
    %c0_70 = arith.constant 0 : index
    %c0_71 = arith.constant 0 : index
    %164 = vector.load %arg11[%c0_69, %c0_70, %c0_71] : memref<2x512x128xf32, #tpu.memory_space<vmem>>, vector<1x512x128xf32>
    %165 = vector.shape_cast %164 : vector<1x512x128xf32> to vector<512x128xf32>
    %cst_72 = arith.constant dense<0.000000e+00> : vector<16x128xf32>
    %166 = tpu.matmul %163, %165, %cst_72 {dimension_numbers = #tpu.dot_dimension_numbers<[1], [0], [0], [1], [0, 0, 1, 1], [], []>} : vector<16x512xf32>, vector<512x128xf32>, vector<16x128xf32> -> vector<16x128xf32>
    %c0_73 = arith.constant 0 : index
    %c0_74 = arith.constant 0 : index
    %c0_75 = arith.constant 0 : index
    %167 = vector.load %arg12[%c0_73, %c0_74, %c0_75] : memref<2x1x128xf32, #tpu.memory_space<vmem>>, vector<1x1x128xf32>
    %168 = vector.shape_cast %167 : vector<1x1x128xf32> to vector<1x128xf32>
    %169 = vector.broadcast %168 : vector<1x128xf32> to vector<16x128xf32>
    %170 = arith.addf %166, %169 : vector<16x128xf32>
    %171 = arith.addf %128, %170 : vector<16x128xf32>
    %c1 = arith.constant 1 : index
    %c0_76 = arith.constant 0 : index
    %c0_77 = arith.constant 0 : index
    %172 = vector.load %arg2[%c1, %c0_76, %c0_77] : memref<2x1x128xf32, #tpu.memory_space<vmem>>, vector<1x1x128xf32>
    %173 = vector.shape_cast %172 : vector<1x1x128xf32> to vector<1x128xf32>
    %c1_78 = arith.constant 1 : index
    %c0_79 = arith.constant 0 : index
    %c0_80 = arith.constant 0 : index
    %174 = vector.load %arg3[%c1_78, %c0_79, %c0_80] : memref<2x1x128xf32, #tpu.memory_space<vmem>>, vector<1x1x128xf32>
    %175 = vector.shape_cast %174 : vector<1x1x128xf32> to vector<1x128xf32>
    %cst_81 = arith.constant dense<0.000000e+00> : vector<16xf32>
    %176 = vector.multi_reduction <add>, %171, %cst_81 [1] : vector<16x128xf32> to vector<16xf32>
    %177 = vector.shape_cast %176 : vector<16xf32> to vector<16x1xf32>
    %cst_82 = arith.constant 1.280000e+02 : f32
    %178 = vector.broadcast %cst_82 : f32 to vector<16x1xf32>
    %179 = arith.divf %177, %178 : vector<16x1xf32>
    %180 = vector.broadcast %179 : vector<16x1xf32> to vector<16x128xf32>
    %181 = arith.subf %171, %180 : vector<16x128xf32>
    %182 = arith.mulf %181, %181 : vector<16x128xf32>
    %cst_83 = arith.constant dense<0.000000e+00> : vector<16xf32>
    %183 = vector.multi_reduction <add>, %182, %cst_83 [1] : vector<16x128xf32> to vector<16xf32>
    %184 = vector.shape_cast %183 : vector<16xf32> to vector<16x1xf32>
    %cst_84 = arith.constant 1.280000e+02 : f32
    %185 = vector.broadcast %cst_84 : f32 to vector<16x1xf32>
    %186 = arith.divf %184, %185 : vector<16x1xf32>
    %187 = vector.broadcast %179 : vector<16x1xf32> to vector<16x128xf32>
    %188 = arith.subf %171, %187 : vector<16x128xf32>
    %cst_85 = arith.constant 9.99999974E-6 : f32
    %189 = vector.broadcast %cst_85 : f32 to vector<16x1xf32>
    %190 = arith.addf %186, %189 : vector<16x1xf32>
    %191 = math.rsqrt %190 : vector<16x1xf32>
    %192 = vector.broadcast %191 : vector<16x1xf32> to vector<16x128xf32>
    %193 = arith.mulf %188, %192 : vector<16x128xf32>
    %194 = vector.broadcast %173 : vector<1x128xf32> to vector<16x128xf32>
    %195 = arith.mulf %193, %194 : vector<16x128xf32>
    %196 = vector.broadcast %175 : vector<1x128xf32> to vector<16x128xf32>
    %197 = arith.addf %195, %196 : vector<16x128xf32>
    %c1_86 = arith.constant 1 : index
    %c0_87 = arith.constant 0 : index
    %c0_88 = arith.constant 0 : index
    %198 = vector.load %arg4[%c1_86, %c0_87, %c0_88] : memref<2x128x384xf32, #tpu.memory_space<vmem>>, vector<1x128x384xf32>
    %199 = vector.shape_cast %198 : vector<1x128x384xf32> to vector<128x384xf32>
    %cst_89 = arith.constant dense<0.000000e+00> : vector<16x384xf32>
    %200 = tpu.matmul %197, %199, %cst_89 {dimension_numbers = #tpu.dot_dimension_numbers<[1], [0], [0], [1], [0, 0, 1, 1], [], []>} : vector<16x128xf32>, vector<128x384xf32>, vector<16x384xf32> -> vector<16x384xf32>
    %c1_90 = arith.constant 1 : index
    %c0_91 = arith.constant 0 : index
    %c0_92 = arith.constant 0 : index
    %201 = vector.load %arg5[%c1_90, %c0_91, %c0_92] : memref<2x128x128xf32, #tpu.memory_space<vmem>>, vector<1x128x128xf32>
    %202 = vector.shape_cast %201 : vector<1x128x128xf32> to vector<128x128xf32>
    %cst_93 = arith.constant 0.000000e+00 : f32
    %203 = vector.broadcast %cst_93 : f32 to vector<16x128xf32>
    %204 = vector.extract_strided_slice %200 {offsets = [0, 0], sizes = [16, 32], strides = [1, 1]} : vector<16x384xf32> to vector<16x32xf32>
    %205 = vector.extract_strided_slice %200 {offsets = [0, 128], sizes = [16, 32], strides = [1, 1]} : vector<16x384xf32> to vector<16x32xf32>
    %206 = vector.extract_strided_slice %200 {offsets = [0, 256], sizes = [16, 32], strides = [1, 1]} : vector<16x384xf32> to vector<16x32xf32>
    %cst_94 = arith.constant dense<0.000000e+00> : vector<16x16xf32>
    %207 = tpu.matmul %204, %205, %cst_94 {dimension_numbers = #tpu.dot_dimension_numbers<[1], [1], [0], [0], [0, 0, 1, 0], [], []>} : vector<16x32xf32>, vector<16x32xf32>, vector<16x16xf32> -> vector<16x16xf32>
    %cst_95 = arith.constant 0.176776692 : f32
    %208 = vector.broadcast %cst_95 : f32 to vector<16x16xf32>
    %209 = arith.mulf %207, %208 : vector<16x16xf32>
    %cst_96 = arith.constant 0xFF800000 : f32
    %210 = vector.broadcast %cst_96 : f32 to vector<16x16xf32>
    %211 = arith.select %2, %209, %210 : vector<16x16xi1>, vector<16x16xf32>
    %cst_97 = arith.constant dense<0xFF800000> : vector<16xf32>
    %212 = vector.multi_reduction <maximumf>, %211, %cst_97 [1] : vector<16x16xf32> to vector<16xf32>
    %213 = vector.shape_cast %212 : vector<16xf32> to vector<16x1xf32>
    %214 = vector.broadcast %213 : vector<16x1xf32> to vector<16x16xf32>
    %215 = arith.subf %211, %214 : vector<16x16xf32>
    %216 = math.exp %215 : vector<16x16xf32>
    %cst_98 = arith.constant dense<0.000000e+00> : vector<16xf32>
    %217 = vector.multi_reduction <add>, %216, %cst_98 [1] : vector<16x16xf32> to vector<16xf32>
    %218 = vector.shape_cast %217 : vector<16xf32> to vector<16x1xf32>
    %219 = tpu.reciprocal %218 {approx = true} : vector<16x1xf32> -> vector<16x1xf32>
    %220 = vector.broadcast %219 : vector<16x1xf32> to vector<16x16xf32>
    %221 = arith.mulf %216, %220 : vector<16x16xf32>
    %cst_99 = arith.constant dense<0.000000e+00> : vector<16x32xf32>
    %222 = tpu.matmul %221, %206, %cst_99 {dimension_numbers = #tpu.dot_dimension_numbers<[1], [0], [0], [1], [0, 0, 1, 1], [], []>} : vector<16x16xf32>, vector<16x32xf32>, vector<16x32xf32> -> vector<16x32xf32>
    %223 = vector.extract_strided_slice %202 {offsets = [0, 0], sizes = [32, 128], strides = [1, 1]} : vector<128x128xf32> to vector<32x128xf32>
    %cst_100 = arith.constant dense<0.000000e+00> : vector<16x128xf32>
    %224 = tpu.matmul %222, %223, %cst_100 {dimension_numbers = #tpu.dot_dimension_numbers<[1], [0], [0], [1], [0, 0, 1, 1], [], []>} : vector<16x32xf32>, vector<32x128xf32>, vector<16x128xf32> -> vector<16x128xf32>
    %225 = arith.addf %203, %224 : vector<16x128xf32>
    %226 = vector.extract_strided_slice %200 {offsets = [0, 32], sizes = [16, 32], strides = [1, 1]} : vector<16x384xf32> to vector<16x32xf32>
    %227 = vector.extract_strided_slice %200 {offsets = [0, 160], sizes = [16, 32], strides = [1, 1]} : vector<16x384xf32> to vector<16x32xf32>
    %228 = vector.extract_strided_slice %200 {offsets = [0, 288], sizes = [16, 32], strides = [1, 1]} : vector<16x384xf32> to vector<16x32xf32>
    %cst_101 = arith.constant dense<0.000000e+00> : vector<16x16xf32>
    %229 = tpu.matmul %226, %227, %cst_101 {dimension_numbers = #tpu.dot_dimension_numbers<[1], [1], [0], [0], [0, 0, 1, 0], [], []>} : vector<16x32xf32>, vector<16x32xf32>, vector<16x16xf32> -> vector<16x16xf32>
    %cst_102 = arith.constant 0.176776692 : f32
    %230 = vector.broadcast %cst_102 : f32 to vector<16x16xf32>
    %231 = arith.mulf %229, %230 : vector<16x16xf32>
    %cst_103 = arith.constant 0xFF800000 : f32
    %232 = vector.broadcast %cst_103 : f32 to vector<16x16xf32>
    %233 = arith.select %2, %231, %232 : vector<16x16xi1>, vector<16x16xf32>
    %cst_104 = arith.constant dense<0xFF800000> : vector<16xf32>
    %234 = vector.multi_reduction <maximumf>, %233, %cst_104 [1] : vector<16x16xf32> to vector<16xf32>
    %235 = vector.shape_cast %234 : vector<16xf32> to vector<16x1xf32>
    %236 = vector.broadcast %235 : vector<16x1xf32> to vector<16x16xf32>
    %237 = arith.subf %233, %236 : vector<16x16xf32>
    %238 = math.exp %237 : vector<16x16xf32>
    %cst_105 = arith.constant dense<0.000000e+00> : vector<16xf32>
    %239 = vector.multi_reduction <add>, %238, %cst_105 [1] : vector<16x16xf32> to vector<16xf32>
    %240 = vector.shape_cast %239 : vector<16xf32> to vector<16x1xf32>
    %241 = tpu.reciprocal %240 {approx = true} : vector<16x1xf32> -> vector<16x1xf32>
    %242 = vector.broadcast %241 : vector<16x1xf32> to vector<16x16xf32>
    %243 = arith.mulf %238, %242 : vector<16x16xf32>
    %cst_106 = arith.constant dense<0.000000e+00> : vector<16x32xf32>
    %244 = tpu.matmul %243, %228, %cst_106 {dimension_numbers = #tpu.dot_dimension_numbers<[1], [0], [0], [1], [0, 0, 1, 1], [], []>} : vector<16x16xf32>, vector<16x32xf32>, vector<16x32xf32> -> vector<16x32xf32>
    %245 = vector.extract_strided_slice %202 {offsets = [32, 0], sizes = [32, 128], strides = [1, 1]} : vector<128x128xf32> to vector<32x128xf32>
    %cst_107 = arith.constant dense<0.000000e+00> : vector<16x128xf32>
    %246 = tpu.matmul %244, %245, %cst_107 {dimension_numbers = #tpu.dot_dimension_numbers<[1], [0], [0], [1], [0, 0, 1, 1], [], []>} : vector<16x32xf32>, vector<32x128xf32>, vector<16x128xf32> -> vector<16x128xf32>
    %247 = arith.addf %225, %246 : vector<16x128xf32>
    %248 = vector.extract_strided_slice %200 {offsets = [0, 64], sizes = [16, 32], strides = [1, 1]} : vector<16x384xf32> to vector<16x32xf32>
    %249 = vector.extract_strided_slice %200 {offsets = [0, 192], sizes = [16, 32], strides = [1, 1]} : vector<16x384xf32> to vector<16x32xf32>
    %250 = vector.extract_strided_slice %200 {offsets = [0, 320], sizes = [16, 32], strides = [1, 1]} : vector<16x384xf32> to vector<16x32xf32>
    %cst_108 = arith.constant dense<0.000000e+00> : vector<16x16xf32>
    %251 = tpu.matmul %248, %249, %cst_108 {dimension_numbers = #tpu.dot_dimension_numbers<[1], [1], [0], [0], [0, 0, 1, 0], [], []>} : vector<16x32xf32>, vector<16x32xf32>, vector<16x16xf32> -> vector<16x16xf32>
    %cst_109 = arith.constant 0.176776692 : f32
    %252 = vector.broadcast %cst_109 : f32 to vector<16x16xf32>
    %253 = arith.mulf %251, %252 : vector<16x16xf32>
    %cst_110 = arith.constant 0xFF800000 : f32
    %254 = vector.broadcast %cst_110 : f32 to vector<16x16xf32>
    %255 = arith.select %2, %253, %254 : vector<16x16xi1>, vector<16x16xf32>
    %cst_111 = arith.constant dense<0xFF800000> : vector<16xf32>
    %256 = vector.multi_reduction <maximumf>, %255, %cst_111 [1] : vector<16x16xf32> to vector<16xf32>
    %257 = vector.shape_cast %256 : vector<16xf32> to vector<16x1xf32>
    %258 = vector.broadcast %257 : vector<16x1xf32> to vector<16x16xf32>
    %259 = arith.subf %255, %258 : vector<16x16xf32>
    %260 = math.exp %259 : vector<16x16xf32>
    %cst_112 = arith.constant dense<0.000000e+00> : vector<16xf32>
    %261 = vector.multi_reduction <add>, %260, %cst_112 [1] : vector<16x16xf32> to vector<16xf32>
    %262 = vector.shape_cast %261 : vector<16xf32> to vector<16x1xf32>
    %263 = tpu.reciprocal %262 {approx = true} : vector<16x1xf32> -> vector<16x1xf32>
    %264 = vector.broadcast %263 : vector<16x1xf32> to vector<16x16xf32>
    %265 = arith.mulf %260, %264 : vector<16x16xf32>
    %cst_113 = arith.constant dense<0.000000e+00> : vector<16x32xf32>
    %266 = tpu.matmul %265, %250, %cst_113 {dimension_numbers = #tpu.dot_dimension_numbers<[1], [0], [0], [1], [0, 0, 1, 1], [], []>} : vector<16x16xf32>, vector<16x32xf32>, vector<16x32xf32> -> vector<16x32xf32>
    %267 = vector.extract_strided_slice %202 {offsets = [64, 0], sizes = [32, 128], strides = [1, 1]} : vector<128x128xf32> to vector<32x128xf32>
    %cst_114 = arith.constant dense<0.000000e+00> : vector<16x128xf32>
    %268 = tpu.matmul %266, %267, %cst_114 {dimension_numbers = #tpu.dot_dimension_numbers<[1], [0], [0], [1], [0, 0, 1, 1], [], []>} : vector<16x32xf32>, vector<32x128xf32>, vector<16x128xf32> -> vector<16x128xf32>
    %269 = arith.addf %247, %268 : vector<16x128xf32>
    %270 = vector.extract_strided_slice %200 {offsets = [0, 96], sizes = [16, 32], strides = [1, 1]} : vector<16x384xf32> to vector<16x32xf32>
    %271 = vector.extract_strided_slice %200 {offsets = [0, 224], sizes = [16, 32], strides = [1, 1]} : vector<16x384xf32> to vector<16x32xf32>
    %272 = vector.extract_strided_slice %200 {offsets = [0, 352], sizes = [16, 32], strides = [1, 1]} : vector<16x384xf32> to vector<16x32xf32>
    %cst_115 = arith.constant dense<0.000000e+00> : vector<16x16xf32>
    %273 = tpu.matmul %270, %271, %cst_115 {dimension_numbers = #tpu.dot_dimension_numbers<[1], [1], [0], [0], [0, 0, 1, 0], [], []>} : vector<16x32xf32>, vector<16x32xf32>, vector<16x16xf32> -> vector<16x16xf32>
    %cst_116 = arith.constant 0.176776692 : f32
    %274 = vector.broadcast %cst_116 : f32 to vector<16x16xf32>
    %275 = arith.mulf %273, %274 : vector<16x16xf32>
    %cst_117 = arith.constant 0xFF800000 : f32
    %276 = vector.broadcast %cst_117 : f32 to vector<16x16xf32>
    %277 = arith.select %2, %275, %276 : vector<16x16xi1>, vector<16x16xf32>
    %cst_118 = arith.constant dense<0xFF800000> : vector<16xf32>
    %278 = vector.multi_reduction <maximumf>, %277, %cst_118 [1] : vector<16x16xf32> to vector<16xf32>
    %279 = vector.shape_cast %278 : vector<16xf32> to vector<16x1xf32>
    %280 = vector.broadcast %279 : vector<16x1xf32> to vector<16x16xf32>
    %281 = arith.subf %277, %280 : vector<16x16xf32>
    %282 = math.exp %281 : vector<16x16xf32>
    %cst_119 = arith.constant dense<0.000000e+00> : vector<16xf32>
    %283 = vector.multi_reduction <add>, %282, %cst_119 [1] : vector<16x16xf32> to vector<16xf32>
    %284 = vector.shape_cast %283 : vector<16xf32> to vector<16x1xf32>
    %285 = tpu.reciprocal %284 {approx = true} : vector<16x1xf32> -> vector<16x1xf32>
    %286 = vector.broadcast %285 : vector<16x1xf32> to vector<16x16xf32>
    %287 = arith.mulf %282, %286 : vector<16x16xf32>
    %cst_120 = arith.constant dense<0.000000e+00> : vector<16x32xf32>
    %288 = tpu.matmul %287, %272, %cst_120 {dimension_numbers = #tpu.dot_dimension_numbers<[1], [0], [0], [1], [0, 0, 1, 1], [], []>} : vector<16x16xf32>, vector<16x32xf32>, vector<16x32xf32> -> vector<16x32xf32>
    %289 = vector.extract_strided_slice %202 {offsets = [96, 0], sizes = [32, 128], strides = [1, 1]} : vector<128x128xf32> to vector<32x128xf32>
    %cst_121 = arith.constant dense<0.000000e+00> : vector<16x128xf32>
    %290 = tpu.matmul %288, %289, %cst_121 {dimension_numbers = #tpu.dot_dimension_numbers<[1], [0], [0], [1], [0, 0, 1, 1], [], []>} : vector<16x32xf32>, vector<32x128xf32>, vector<16x128xf32> -> vector<16x128xf32>
    %291 = arith.addf %269, %290 : vector<16x128xf32>
    %292 = arith.addf %171, %291 : vector<16x128xf32>
    %c1_122 = arith.constant 1 : index
    %c0_123 = arith.constant 0 : index
    %c0_124 = arith.constant 0 : index
    %293 = vector.load %arg6[%c1_122, %c0_123, %c0_124] : memref<2x1x128xf32, #tpu.memory_space<vmem>>, vector<1x1x128xf32>
    %294 = vector.shape_cast %293 : vector<1x1x128xf32> to vector<1x128xf32>
    %295 = vector.broadcast %294 : vector<1x128xf32> to vector<16x128xf32>
    %296 = arith.addf %292, %295 : vector<16x128xf32>
    %c1_125 = arith.constant 1 : index
    %c0_126 = arith.constant 0 : index
    %c0_127 = arith.constant 0 : index
    %297 = vector.load %arg7[%c1_125, %c0_126, %c0_127] : memref<2x1x128xf32, #tpu.memory_space<vmem>>, vector<1x1x128xf32>
    %298 = vector.shape_cast %297 : vector<1x1x128xf32> to vector<1x128xf32>
    %c1_128 = arith.constant 1 : index
    %c0_129 = arith.constant 0 : index
    %c0_130 = arith.constant 0 : index
    %299 = vector.load %arg8[%c1_128, %c0_129, %c0_130] : memref<2x1x128xf32, #tpu.memory_space<vmem>>, vector<1x1x128xf32>
    %300 = vector.shape_cast %299 : vector<1x1x128xf32> to vector<1x128xf32>
    %cst_131 = arith.constant dense<0.000000e+00> : vector<16xf32>
    %301 = vector.multi_reduction <add>, %296, %cst_131 [1] : vector<16x128xf32> to vector<16xf32>
    %302 = vector.shape_cast %301 : vector<16xf32> to vector<16x1xf32>
    %cst_132 = arith.constant 1.280000e+02 : f32
    %303 = vector.broadcast %cst_132 : f32 to vector<16x1xf32>
    %304 = arith.divf %302, %303 : vector<16x1xf32>
    %305 = vector.broadcast %304 : vector<16x1xf32> to vector<16x128xf32>
    %306 = arith.subf %296, %305 : vector<16x128xf32>
    %307 = arith.mulf %306, %306 : vector<16x128xf32>
    %cst_133 = arith.constant dense<0.000000e+00> : vector<16xf32>
    %308 = vector.multi_reduction <add>, %307, %cst_133 [1] : vector<16x128xf32> to vector<16xf32>
    %309 = vector.shape_cast %308 : vector<16xf32> to vector<16x1xf32>
    %cst_134 = arith.constant 1.280000e+02 : f32
    %310 = vector.broadcast %cst_134 : f32 to vector<16x1xf32>
    %311 = arith.divf %309, %310 : vector<16x1xf32>
    %312 = vector.broadcast %304 : vector<16x1xf32> to vector<16x128xf32>
    %313 = arith.subf %296, %312 : vector<16x128xf32>
    %cst_135 = arith.constant 9.99999974E-6 : f32
    %314 = vector.broadcast %cst_135 : f32 to vector<16x1xf32>
    %315 = arith.addf %311, %314 : vector<16x1xf32>
    %316 = math.rsqrt %315 : vector<16x1xf32>
    %317 = vector.broadcast %316 : vector<16x1xf32> to vector<16x128xf32>
    %318 = arith.mulf %313, %317 : vector<16x128xf32>
    %319 = vector.broadcast %298 : vector<1x128xf32> to vector<16x128xf32>
    %320 = arith.mulf %318, %319 : vector<16x128xf32>
    %321 = vector.broadcast %300 : vector<1x128xf32> to vector<16x128xf32>
    %322 = arith.addf %320, %321 : vector<16x128xf32>
    %c1_136 = arith.constant 1 : index
    %c0_137 = arith.constant 0 : index
    %c0_138 = arith.constant 0 : index
    %323 = vector.load %arg9[%c1_136, %c0_137, %c0_138] : memref<2x128x512xf32, #tpu.memory_space<vmem>>, vector<1x128x512xf32>
    %324 = vector.shape_cast %323 : vector<1x128x512xf32> to vector<128x512xf32>
    %cst_139 = arith.constant dense<0.000000e+00> : vector<16x512xf32>
    %325 = tpu.matmul %322, %324, %cst_139 {dimension_numbers = #tpu.dot_dimension_numbers<[1], [0], [0], [1], [0, 0, 1, 1], [], []>} : vector<16x128xf32>, vector<128x512xf32>, vector<16x512xf32> -> vector<16x512xf32>
    %c1_140 = arith.constant 1 : index
    %c0_141 = arith.constant 0 : index
    %c0_142 = arith.constant 0 : index
    %326 = vector.load %arg10[%c1_140, %c0_141, %c0_142] : memref<2x1x512xf32, #tpu.memory_space<vmem>>, vector<1x1x512xf32>
    %327 = vector.shape_cast %326 : vector<1x1x512xf32> to vector<1x512xf32>
    %328 = vector.broadcast %327 : vector<1x512xf32> to vector<16x512xf32>
    %329 = arith.addf %325, %328 : vector<16x512xf32>
    %cst_143 = arith.constant 0.000000e+00 : f32
    %330 = vector.broadcast %cst_143 : f32 to vector<16x512xf32>
    %331 = arith.maximumf %329, %330 : vector<16x512xf32>
    %c1_144 = arith.constant 1 : index
    %c0_145 = arith.constant 0 : index
    %c0_146 = arith.constant 0 : index
    %332 = vector.load %arg11[%c1_144, %c0_145, %c0_146] : memref<2x512x128xf32, #tpu.memory_space<vmem>>, vector<1x512x128xf32>
    %333 = vector.shape_cast %332 : vector<1x512x128xf32> to vector<512x128xf32>
    %cst_147 = arith.constant dense<0.000000e+00> : vector<16x128xf32>
    %334 = tpu.matmul %331, %333, %cst_147 {dimension_numbers = #tpu.dot_dimension_numbers<[1], [0], [0], [1], [0, 0, 1, 1], [], []>} : vector<16x512xf32>, vector<512x128xf32>, vector<16x128xf32> -> vector<16x128xf32>
    %c1_148 = arith.constant 1 : index
    %c0_149 = arith.constant 0 : index
    %c0_150 = arith.constant 0 : index
    %335 = vector.load %arg12[%c1_148, %c0_149, %c0_150] : memref<2x1x128xf32, #tpu.memory_space<vmem>>, vector<1x1x128xf32>
    %336 = vector.shape_cast %335 : vector<1x1x128xf32> to vector<1x128xf32>
    %337 = vector.broadcast %336 : vector<1x128xf32> to vector<16x128xf32>
    %338 = arith.addf %334, %337 : vector<16x128xf32>
    %339 = arith.addf %296, %338 : vector<16x128xf32>
    %c0_151 = arith.constant 0 : index
    %c0_152 = arith.constant 0 : index
    %340 = vector.load %arg13[%c0_151, %c0_152] : memref<1x128xf32, #tpu.memory_space<vmem>>, vector<1x128xf32>
    %c0_153 = arith.constant 0 : index
    %c0_154 = arith.constant 0 : index
    %341 = vector.load %arg14[%c0_153, %c0_154] : memref<1x128xf32, #tpu.memory_space<vmem>>, vector<1x128xf32>
    %cst_155 = arith.constant dense<0.000000e+00> : vector<16xf32>
    %342 = vector.multi_reduction <add>, %339, %cst_155 [1] : vector<16x128xf32> to vector<16xf32>
    %343 = vector.shape_cast %342 : vector<16xf32> to vector<16x1xf32>
    %cst_156 = arith.constant 1.280000e+02 : f32
    %344 = vector.broadcast %cst_156 : f32 to vector<16x1xf32>
    %345 = arith.divf %343, %344 : vector<16x1xf32>
    %346 = vector.broadcast %345 : vector<16x1xf32> to vector<16x128xf32>
    %347 = arith.subf %339, %346 : vector<16x128xf32>
    %348 = arith.mulf %347, %347 : vector<16x128xf32>
    %cst_157 = arith.constant dense<0.000000e+00> : vector<16xf32>
    %349 = vector.multi_reduction <add>, %348, %cst_157 [1] : vector<16x128xf32> to vector<16xf32>
    %350 = vector.shape_cast %349 : vector<16xf32> to vector<16x1xf32>
    %cst_158 = arith.constant 1.280000e+02 : f32
    %351 = vector.broadcast %cst_158 : f32 to vector<16x1xf32>
    %352 = arith.divf %350, %351 : vector<16x1xf32>
    %353 = vector.broadcast %345 : vector<16x1xf32> to vector<16x128xf32>
    %354 = arith.subf %339, %353 : vector<16x128xf32>
    %cst_159 = arith.constant 9.99999974E-6 : f32
    %355 = vector.broadcast %cst_159 : f32 to vector<16x1xf32>
    %356 = arith.addf %352, %355 : vector<16x1xf32>
    %357 = math.rsqrt %356 : vector<16x1xf32>
    %358 = vector.broadcast %357 : vector<16x1xf32> to vector<16x128xf32>
    %359 = arith.mulf %354, %358 : vector<16x128xf32>
    %360 = vector.broadcast %340 : vector<1x128xf32> to vector<16x128xf32>
    %361 = arith.mulf %359, %360 : vector<16x128xf32>
    %362 = vector.broadcast %341 : vector<1x128xf32> to vector<16x128xf32>
    %363 = arith.addf %361, %362 : vector<16x128xf32>
    %c0_160 = arith.constant 0 : index
    %c0_161 = arith.constant 0 : index
    %364 = vector.load %arg15[%c0_160, %c0_161] : memref<128x128xf32, #tpu.memory_space<vmem>>, vector<128x128xf32>
    %cst_162 = arith.constant dense<0.000000e+00> : vector<16x128xf32>
    %365 = tpu.matmul %363, %364, %cst_162 {dimension_numbers = #tpu.dot_dimension_numbers<[1], [0], [0], [1], [0, 0, 1, 1], [], []>} : vector<16x128xf32>, vector<128x128xf32>, vector<16x128xf32> -> vector<16x128xf32>
    %c0_163 = arith.constant 0 : index
    %c0_164 = arith.constant 0 : index
    %366 = vector.load %arg16[%c0_163, %c0_164] : memref<1x128xf32, #tpu.memory_space<vmem>>, vector<1x128xf32>
    %367 = vector.broadcast %366 : vector<1x128xf32> to vector<16x128xf32>
    %368 = arith.addf %365, %367 : vector<16x128xf32>
    %c0_165 = arith.constant 0 : index
    %c0_166 = arith.constant 0 : index
    %369 = vector.load %arg17[%c0_165, %c0_166] : memref<16x128xf32, #tpu.memory_space<vmem>>, vector<16x128xf32>
    tpu.vector_store %arg17[%c0_165, %c0_166], %368 {strides = array<i32>} : memref<16x128xf32, #tpu.memory_space<vmem>>, vector<16x128xf32>,
    return
  }
  func.func @transform_0(%arg0: i32) -> (i32, i32) {
    %c0_i32 = arith.constant 0 : i32
    %c0_i32_0 = arith.constant 0 : i32
    return %arg0, %c0_i32 : i32, i32
  }
  func.func @transform_1(%arg0: i32) -> (i32, i32, i32) {
    %c0_i32 = arith.constant 0 : i32
    %c0_i32_0 = arith.constant 0 : i32
    %c0_i32_1 = arith.constant 0 : i32
    %c0_i32_2 = arith.constant 0 : i32
    return %c0_i32, %c0_i32_0, %c0_i32_1 : i32, i32, i32
  }
  func.func @transform_2(%arg0: i32) -> (i32, i32, i32) {
    %c0_i32 = arith.constant 0 : i32
    %c0_i32_0 = arith.constant 0 : i32
    %c0_i32_1 = arith.constant 0 : i32
    %c0_i32_2 = arith.constant 0 : i32
    return %c0_i32, %c0_i32_0, %c0_i32_1 : i32, i32, i32
  }
  func.func @transform_3(%arg0: i32) -> (i32, i32, i32) {
    %c0_i32 = arith.constant 0 : i32
    %c0_i32_0 = arith.constant 0 : i32
    %c0_i32_1 = arith.constant 0 : i32
    %c0_i32_2 = arith.constant 0 : i32
    return %c0_i32, %c0_i32_0, %c0_i32_1 : i32, i32, i32
  }
  func.func @transform_4(%arg0: i32) -> (i32, i32, i32) {
    %c0_i32 = arith.constant 0 : i32
    %c0_i32_0 = arith.constant 0 : i32
    %c0_i32_1 = arith.constant 0 : i32
    %c0_i32_2 = arith.constant 0 : i32
    return %c0_i32, %c0_i32_0, %c0_i32_1 : i32, i32, i32
  }
  func.func @transform_5(%arg0: i32) -> (i32, i32, i32) {
    %c0_i32 = arith.constant 0 : i32
    %c0_i32_0 = arith.constant 0 : i32
    %c0_i32_1 = arith.constant 0 : i32
    %c0_i32_2 = arith.constant 0 : i32
    return %c0_i32, %c0_i32_0, %c0_i32_1 : i32, i32, i32
  }
  func.func @transform_6(%arg0: i32) -> (i32, i32, i32) {
    %c0_i32 = arith.constant 0 : i32
    %c0_i32_0 = arith.constant 0 : i32
    %c0_i32_1 = arith.constant 0 : i32
    %c0_i32_2 = arith.constant 0 : i32
    return %c0_i32, %c0_i32_0, %c0_i32_1 : i32, i32, i32
  }
  func.func @transform_7(%arg0: i32) -> (i32, i32, i32) {
    %c0_i32 = arith.constant 0 : i32
    %c0_i32_0 = arith.constant 0 : i32
    %c0_i32_1 = arith.constant 0 : i32
    %c0_i32_2 = arith.constant 0 : i32
    return %c0_i32, %c0_i32_0, %c0_i32_1 : i32, i32, i32
  }
  func.func @transform_8(%arg0: i32) -> (i32, i32, i32) {
    %c0_i32 = arith.constant 0 : i32
    %c0_i32_0 = arith.constant 0 : i32
    %c0_i32_1 = arith.constant 0 : i32
    %c0_i32_2 = arith.constant 0 : i32
    return %c0_i32, %c0_i32_0, %c0_i32_1 : i32, i32, i32
  }
  func.func @transform_9(%arg0: i32) -> (i32, i32, i32) {
    %c0_i32 = arith.constant 0 : i32
    %c0_i32_0 = arith.constant 0 : i32
    %c0_i32_1 = arith.constant 0 : i32
    %c0_i32_2 = arith.constant 0 : i32
    return %c0_i32, %c0_i32_0, %c0_i32_1 : i32, i32, i32
  }
  func.func @transform_10(%arg0: i32) -> (i32, i32, i32) {
    %c0_i32 = arith.constant 0 : i32
    %c0_i32_0 = arith.constant 0 : i32
    %c0_i32_1 = arith.constant 0 : i32
    %c0_i32_2 = arith.constant 0 : i32
    return %c0_i32, %c0_i32_0, %c0_i32_1 : i32, i32, i32
  }
  func.func @transform_11(%arg0: i32) -> (i32, i32, i32) {
    %c0_i32 = arith.constant 0 : i32
    %c0_i32_0 = arith.constant 0 : i32
    %c0_i32_1 = arith.constant 0 : i32
    %c0_i32_2 = arith.constant 0 : i32
    return %c0_i32, %c0_i32_0, %c0_i32_1 : i32, i32, i32
  }
  func.func @transform_12(%arg0: i32) -> (i32, i32) {
    %c0_i32 = arith.constant 0 : i32
    %c0_i32_0 = arith.constant 0 : i32
    %c0_i32_1 = arith.constant 0 : i32
    return %c0_i32, %c0_i32_0 : i32, i32
  }
  func.func @transform_13(%arg0: i32) -> (i32, i32) {
    %c0_i32 = arith.constant 0 : i32
    %c0_i32_0 = arith.constant 0 : i32
    %c0_i32_1 = arith.constant 0 : i32
    return %c0_i32, %c0_i32_0 : i32, i32
  }
  func.func @transform_14(%arg0: i32) -> (i32, i32) {
    %c0_i32 = arith.constant 0 : i32
    %c0_i32_0 = arith.constant 0 : i32
    %c0_i32_1 = arith.constant 0 : i32
    return %c0_i32, %c0_i32_0 : i32, i32
  }
  func.func @transform_15(%arg0: i32) -> (i32, i32) {
    %c0_i32 = arith.constant 0 : i32
    %c0_i32_0 = arith.constant 0 : i32
    %c0_i32_1 = arith.constant 0 : i32
    return %c0_i32, %c0_i32_0 : i32, i32
  }
  func.func @transform_16(%arg0: i32) -> (i32, i32) {
    %c0_i32 = arith.constant 0 : i32
    %c0_i32_0 = arith.constant 0 : i32
    return %arg0, %c0_i32 : i32, i32
  }
}

</mosaic_0001>

<bundles_post_ra>
// kernel: _lambda_.1
= control target key start
LH: loop header
LB: loop body
LE: loop exit
PB: predicated region body
PF: predicated region fallthrough
CT: control target
= control target key end

     0   :  { %s4256_s0 = inlined_call_operand.vmem [shape: f32[32,128], index: 0, kind: input, shape index: {}]   ;;  %s4257_s1 = inlined_call_operand.vmem [shape: f32[2,1,128], index: 1, kind: input, shape index: {}]   ;;  %s4258_s2 = inlined_call_operand.vmem [shape: f32[2,1,128], index: 2, kind: input, shape index: {}]   ;;  %s4259_s3 = inlined_call_operand.hbm [shape: f32[2,128,384], index: 3, kind: input, shape index: {}]   ;;  %s4260_s4 = inlined_call_operand.vmem [shape: f32[2,128,128], index: 4, kind: input, shape index: {}]   ;;  %s4261_s5 = inlined_call_operand.vmem [shape: f32[2,1,128], index: 5, kind: input, shape index: {}]   ;;  %s4262_s6 = inlined_call_operand.vmem [shape: f32[2,1,128], index: 6, kind: input, shape index: {}]   ;;  %s4263_s7 = inlined_call_operand.vmem [shape: f32[2,1,128], index: 7, kind: input, shape index: {}]   ;;  %s4264_s8 = inlined_call_operand.hbm [shape: f32[2,128,512], index: 8, kind: input, shape index: {}]   ;;  %s4265_s9 = inlined_call_operand.vmem [shape: f32[2,1,512], index: 9, kind: input, shape index: {}]   ;;  %s4266_s10 = inlined_call_operand.hbm [shape: f32[2,512,128], index: 10, kind: input, shape index: {}]   ;;  %s4267_s11 = inlined_call_operand.vmem [shape: f32[2,1,128], index: 11, kind: input, shape index: {}]   ;;  %s4268_s12 = inlined_call_operand.vmem [shape: f32[1,128], index: 12, kind: input, shape index: {}]   ;;  %s4269_s13 = inlined_call_operand.vmem [shape: f32[1,128], index: 13, kind: input, shape index: {}]   ;;  %s4270_s14 = inlined_call_operand.vmem [shape: f32[128,128], index: 14, kind: input, shape index: {}]   ;;  %s4271_s15 = inlined_call_operand.vmem [shape: f32[1,128], index: 15, kind: input, shape index: {}]   ;;  %s4272_s16 = inlined_call_operand.hbm [shape: f32[32,128], index: 16, kind: output, shape index: {}]  }
   0x1   :  { %4283 = sst [smem:[#allocation20_spill]] %s4256_s0 }
   0x2   :  { %4284 = sst [smem:[#allocation21_spill]] %s4259_s3 }
   0x3   :  { %4285 = sst [smem:[#allocation22_spill]] %s4264_s8 }
   0x4   :  { %4286 = sst [smem:[#allocation23_spill]] %s4271_s15 }
   0x5   :  { %4287 = sst [smem:[#allocation24_spill]] %s4272_s16 }
   0x6   :  { %21 = vsyncpa [#allocation3], 0 }
   0x7   :  { %22 = vsyncpa [#allocation6], 0 }
   0x8   :  { %23 = vsyncpa [#allocation4], 0 }
   0x9   :  { %25 = vsyncpa [#allocation4 + $0x1], 0  ;;  %s3577_s21 = smov 0   ;;  %s3579_s22 = smov 0  }
   0xa   :  { %s3581_s23 = smov 0   ;;  %s3583_s24 = smov 0  }
   0xb LB: > { %4288 = sst [smem:[#allocation12_spill]] %s3463_s21  ;;  %s3598_s25 = sadd.s32 4294967295, %s3475_s24   ;;  %s3475_s24 = sphi %s3583_s24, %s4314_s24   ;;  %s3471_s23 = sphi %s3581_s23, %s4317_s23   ;;  %s3467_s22 = sphi %s3579_s22, %s4316_s22   ;;  %s3463_s21 = sphi %s3577_s21, %s4315_s21  }
   0xc   : > { %4289 = sst [smem:[#allocation13_spill]] %s3467_s22  ;;  %s2994_s26 = sadd.s32 4294967294, %s3475_s24  }
   0xd   : > { %4290 = sst [smem:[#allocation14_spill]] %s3471_s23  ;;  %s3602_s27 = sadd.s32 1, %s3475_s24  }
   0xe   : > { %4291 = sst [smem:[#allocation15_spill]] %s3475_s24  ;;  %s379_s28 = sadd.s32 1, %s3471_s23 }
   0xf   : > { %4292 = sst [smem:[#allocation16_spill]] %s3602_s27  ;;  %s376_s29 = ssub.s32 %s3475_s24, %s3602_s27 }
  0x10   : > { %p389_p0 = scmp.ne.s32.totalorder %s3471_s23, %s3467_s22  ;;  %p377_p1 = scmp.eq.s32.totalorder %s376_s29, 0 }
  0x11   : > { %p390_p2 = scmp.eq.s32.totalorder %s3598_s25, 1  ;;  %p395_p3 = scmp.ne.s32.totalorder %s3467_s22, %s3463_s21 }
  0x12   : > { %p396_p4 = scmp.eq.s32.totalorder %s2994_s26, 1  ;;  %p2995_p7 = scmp.ge.s32.totalorder %s3475_s24, 1 }
  0x13   : > { %s3613_s30 = scalar_select %p377_p1, %s3471_s23, %s379_s28  }
  0x14   : > { %p3615_p5 = por %p390_p2, %p389_p0  ;;  %p3619_p6 = por %p396_p4, %p395_p3 }
  0x15   : > { %4293 = sst [smem:[#allocation17_spill]] %s3613_s30  ;;  %p403_p8 = scmp.lt.s32.totalorder %s3475_s24, 3 }
  0x16   : > { %s4294_s0 = scalar_select %p3615_p5, 1, 0 }
  0x17   : > { %s4296_s17 = scalar_select %p3619_p6, 1, 0 }
  0x18   : > { %4295 = sst [smem:[#allocation18_spill]] %s4294_s0  ;;  %p3130_p9 = scmp.eq.s32.totalorder %s3598_s25, 0 }
  0x19   : > { %4297 = sst [smem:[#allocation19_spill]] %s4296_s17  ;;  %p3626_p10 = pnand %p2995_p7, %p403_p8 }
  0x1a   : > { %s4299_s8 = sld [smem:[#allocation22_spill]]  ;;  %s3477_s28 = smov [#allocation5]  }
  0x1b   : > { %p3116_p11 = pneg %p3626_p10  ;;  %s448_s29 = sshll.u32 %s3477_s28, 4  ;;  %s449_s29 = int_to_ptr.vmem [resolvable:$true] %s448_s29 }
  0x1c   : > { %s4301_s3 = sld [smem:[#allocation21_spill]]  ;;  %s3478_s19 = smov 512  }
  0x1d   : > { %p3637_p12 = pnand %p3130_p9, %p3116_p11  ;;  %s3479_s20 = smov 32  }
  0x1e   : > { %s3481_s21 = smov 384   ;;  %s3482_s24 = smov 24  }
  0x1f   : > { %s463_s23 = sshll.u32 %s4266_s10, 4  ;;  %s3483_s27 = smov [#allocation7]   ;;  %s464_s23 = int_to_ptr.hbm [resolvable:$true] %s463_s23 }
  0x20   : > { %s446_s26 = sshll.u32 %s4299_s8, 4  ;;  %s3480_s8 = smov [#allocation2]   ;;  %s447_s26 = int_to_ptr.hbm [resolvable:$true] %s446_s26 }
  0x21   : > { %3122 = dma.hbm_to_vmem [thread:$0]  (!%p3637_p12), %s447_s26, 16384, %s449_s29, [#allocation6], %s3478_s19, %s3478_s19, %s3479_s20  }
  0x22   : > { %s420_s17 = sshll.u32 %s4301_s3, 4  ;;  %s422_s28 = sshll.u32 %s3480_s8, 4  ;;  %s421_s17 = int_to_ptr.hbm [resolvable:$true] %s420_s17  ;;  %s423_s28 = int_to_ptr.vmem [resolvable:$true] %s422_s28 }
  0x23   : > { %3119 = dma.hbm_to_vmem [thread:$0]  (!%p3637_p12), %s421_s17, 12288, %s423_s28, [#allocation3], %s3481_s21, %s3481_s21, %s3482_s24  }
  0x24   : > { %s465_s3 = sshll.u32 %s3483_s27, 4  ;;  %s3484_s15 = smov 128   ;;  %s466_s3 = int_to_ptr.vmem [resolvable:$true] %s465_s3 }
  0x25   : > { %s3485_s22 = smov 8   ;;  %505 = sbr.rel (%p3626_p10) target bundleno = 4747 (0x128b), region = 84 }
  0x26   : > { %3125 = dma.hbm_to_vmem [thread:$0]  (!%p3637_p12), %s464_s23, 16384, %s466_s3, [#allocation6], %s3484_s15, %s3484_s15, %s3485_s22  }
  0x2a   : > { %3450 = dma.done.wait (%p3130_p9), [#allocation3], 12288  }
  0x2b   : > { %3452 = vsyncadd (%p3130_p9), [#allocation3], 4294955008 }
  0x2c   : > { %3454 = dma.done.wait (%p3130_p9), [#allocation6], 32768  }
  0x2d   : > { %3456 = vsyncadd (%p3130_p9), [#allocation6], 4294934528  ;;  %s3005_s8 = sshll.u32 %s3598_s25, 1  ;;  %s4302_s21 = sld [smem:[#allocation20_spill]]  ;;  %v3486_v2 = vmov 128.0   ;;  %v686_v5 = vld [vmem:[#allocation2 + $0x168] sm:$0xff] }
  0x2e   : > { %p567_p13 = scmp.lt.s32.totalorder %s3005_s8, 3  ;;  %3229 = vrcp.f32 %v3486_v2  ;;  %v687_v6 = vld [vmem:[#allocation2 + $0x170] sm:$0xff]  ;;  %v688_v7 = vld [vmem:[#allocation2 + $0x178] sm:$0xff]  ;;  %689 = vmatpush.msra.mxu0 %v686_v5  ;;  %v685_v10 = vld [vmem:[#allocation2 + $0x160] sm:$0xff]  ;;  %vm774_vm7 = vcmask 261120   ;;  %vm814_vm9 = vcmask 130048  }
  0x2f   : > { %712 = vmatpush.msra.mxu1 %v687_v6  ;;  %v683_v8 = vld [vmem:[#allocation2 + $0x150] sm:$0xff]  ;;  %v684_v9 = vld [vmem:[#allocation2 + $0x158] sm:$0xff]  ;;  %735 = vmatpush.msra.mxu2 %v688_v7  ;;  %v681_v24 = vld [vmem:[#allocation2 + $0x140] sm:$0xff]  ;;  %s3487_s18 = smov 96   ;;  %s3488_s26 = smov 32  }
  0x30   : > { %s4319_s8 = smov (!%p567_p13, %s3005_s8), 3  ;;  %690 = vmatpush.msra.mxu0 %v683_v8  ;;  %v680_v23 = vld [vmem:[#allocation2 + $0x138] sm:$0xff]  ;;  %v682_v25 = vld [vmem:[#allocation2 + $0x148] sm:$0xff]  ;;  %v677_v26 = vld [vmem:[#allocation2 + $0x120] sm:$0xff]  ;;  %s3489_s29 = smov 64  }
  0x31   : > { %s3006_s3 = sshll.u32 %s4319_s8, 3  ;;  %713 = vmatpush.msra.mxu1 %v684_v9  ;;  %736 = vmatpush.msra.mxu2 %v685_v10  ;;  %v678_v27 = vld [vmem:[#allocation2 + $0x128] sm:$0xff]  ;;  %v679_v28 = vld [vmem:[#allocation2 + $0x130] sm:$0xff]  ;;  %v676_v31 = vld [vmem:[#allocation2 + $0x118] sm:$0xff]  ;;  %s4307_s15 = sld [smem:[#allocation13_spill]] }
  0x32   : > { %691 = vmatpush.msra.mxu0 %v680_v23  ;;  %v674_v29 = vld [vmem:[#allocation2 + $0x108] sm:$0xff]  ;;  %v675_v30 = vld [vmem:[#allocation2 + $0x110] sm:$0xff]  ;;  %v672_v33 = vld [vmem:[#allocation2 + $0xf8] sm:$0xff]  ;;  %s4310_s19 = sld [smem:[#allocation24_spill]] }
  0x33   : > { %s570_s22 = scalar_lea.vmem %s4302_s21, %s3006_s3  ;;  %714 = vmatpush.msra.mxu1 %v681_v24  ;;  %737 = vmatpush.msra.mxu2 %v682_v25  ;;  %v671_v32 = vld [vmem:[#allocation2 + $0xf0] sm:$0xff]  ;;  %v673_v34 = vld [vmem:[#allocation2 + $0x100] sm:$0xff]  ;;  %v668_v35 = vld [vmem:[#allocation2 + $0xd8] sm:$0xff]  ;;  %s4308_s21 = sld [smem:[#allocation23_spill]] }
  0x34   : > { %v3667_v0 = vld [vmem:[%s570_s22] sm:$0xff]  ;;  %v3670_v1 = vld [vmem:[%s570_s22 + $0x8] sm:$0xff]  ;;  %v3230_v3 = vpop.eup %3229  ;;  %692 = vmatpush.msra.mxu0 %v677_v26  ;;  %v667_v40 = vld [vmem:[#allocation2 + $0xd0] sm:$0xff]  ;;  %s3099_s22 = sshll.u32 %s3598_s25, 4 }
  0x35   : > { %584 = vadd.xlane.f32.xlu0 %v3667_v0  ;;  %v589_v4 = vmul.f32 128.0, %v3230_v3  ;;  %vm593_vm0 = vweird.f32 %v3230_v3  ;;  %715 = vmatpush.msra.mxu1 %v678_v27  ;;  %v669_v36 = vld [vmem:[#allocation2 + $0xe0] sm:$0xff]  ;;  %v670_v37 = vld [vmem:[#allocation2 + $0xe8] sm:$0xff]  ;;  %v663_v42 = vld [vmem:[#allocation2 + $0xb0] sm:$0xff] }
  0x36   : > { %738 = vmatpush.msra.mxu2 %v679_v28  ;;  %693 = vmatpush.msra.mxu0 %v674_v29  ;;  %v665_v38 = vld [vmem:[#allocation2 + $0xc0] sm:$0xff]  ;;  %v666_v39 = vld [vmem:[#allocation2 + $0xc8] sm:$0xff]  ;;  %v664_v43 = vld [vmem:[#allocation2 + $0xb8] sm:$0xff] }
  0x37   : > { %v590_v11 = vsub.f32 1.0, %v589_v4  ;;  %716 = vmatpush.msra.mxu1 %v675_v30  ;;  %v662_v41 = vld [vmem:[#allocation2 + $0xa8] sm:$0xff]  ;;  %v659_v44 = vld [vmem:[#allocation2 + $0x90] sm:$0xff]  ;;  %v660_v45 = vld [vmem:[#allocation2 + $0x98] sm:$0xff]  ;;  %s563_s16 = sand.u32 1, %s4307_s15  }
  0x38   : > { %739 = vmatpush.msra.mxu2 %v676_v31  ;;  %694 = vmatpush.msra.mxu0 %v671_v32  ;;  %v661_v46 = vld [vmem:[#allocation2 + $0xa0] sm:$0xff]  ;;  %v656_v47 = vld [vmem:[#allocation2 + $0x78] sm:$0xff]  ;;  %v658_v49 = vld [vmem:[#allocation2 + $0x88] sm:$0xff]  ;;  %s2897_s20 = scalar_lea.hbm %s4310_s19, %s3099_s22  ;;  %s2886_s27 = scalar_lea.sflag [#allocation4], %s563_s16 }
  0x39   : > { %v591_v12 = vmul.f32 %v3230_v3, %v590_v11  ;;  %717 = vmatpush.msra.mxu1 %v672_v33  ;;  %v657_v48 = vld [vmem:[#allocation2 + $0x80] sm:$0xff]  ;;  %v654_v51 = vld [vmem:[#allocation2 + $0x68] sm:$0xff]  ;;  %v655_v52 = vld [vmem:[#allocation2 + $0x70] sm:$0xff]  ;;  %s2900_s23 = sshll.u32 %s2897_s20, 4  ;;  %s2901_s23 = int_to_ptr.hbm [resolvable:$true] %s2900_s23 }
  0x3a   : > { %740 = vmatpush.msra.mxu2 %v673_v34  ;;  %695 = vmatpush.msra.mxu0 %v668_v35  ;;  %v653_v50 = vld [vmem:[#allocation2 + $0x60] sm:$0xff]  ;;  %v650_v53 = vld [vmem:[#allocation2 + $0x48] sm:$0xff]  ;;  %v651_v54 = vld [vmem:[#allocation2 + $0x50] sm:$0xff]  ;;  %s3419_s8 = sshra.s32 %s2901_s23, 4  ;;  %s3420_s8 = int_to_ptr.hbm [resolvable:$true] %s3419_s8 }
  0x3b   : > { %v592_v13 = vadd.f32 %v3230_v3, %v591_v12  ;;  %718 = vmatpush.msra.mxu1 %v669_v36  ;;  %v652_v55 = vld [vmem:[#allocation2 + $0x58] sm:$0xff]  ;;  %v647_v56 = vld [vmem:[#allocation2 + $0x30] sm:$0xff]  ;;  %v649_v58 = vld [vmem:[#allocation2 + $0x40] sm:$0xff]  ;;  %s3421_s3 = scalar_lea.hbm %s3420_s8, 16  ;;  %p3426_p3 = scmp.lt.s32.totalorder %s3420_s8, %s4310_s19 }
  0x3c   : > { %741 = vmatpush.msra.mxu2 %v670_v37  ;;  %696 = vmatpush.msra.mxu0 %v665_v38  ;;  %v648_v57 = vld [vmem:[#allocation2 + $0x38] sm:$0xff]  ;;  %v645_v60 = vld [vmem:[#allocation2 + $0x20] sm:$0xff]  ;;  %v646_v61 = vld [vmem:[#allocation2 + $0x28] sm:$0xff]  ;;  %v573_v38 = vlaneseq  ;;  %p3422_p0 = scmp.ne.s32.totalorder %s3420_s8, %s3421_s3 }
  0x3d   : > { %586 = vadd.xlane.f32.xlu0 %v3670_v1  ;;  %v3673_v14 = vsel %vm593_vm0, %v3230_v3, %v592_v13  ;;  %719 = vmatpush.msra.mxu1 %v666_v39  ;;  %v644_v59 = vld [vmem:[#allocation2 + $0x18] sm:$0xff]  ;;  %v641_v62 = vld [vmem:[#allocation2] sm:$0xff]  ;;  %v642_v63 = vld [vmem:[#allocation2 + $0x8] sm:$0xff] }
  0x3e   : > { %742 = vmatpush.msra.mxu2 %v667_v40  ;;  %697 = vmatpush.msra.mxu0 %v662_v41  ;;  %v643_v2 = vld [vmem:[#allocation2 + $0x10] sm:$0xff]  ;;  %v3215_v24 = vld [vmem:[%s4258_s2] ss:$0 sm:$0xff]  ;;  %v577_v39 = vand.u32 127, %v573_v38  ;;  %v574_v40 = vshrl.u32 %v573_v38, 7  ;;  %p3423_p1 = pnand %p3422_p0, %p3615_p5 }
  0x3f   : > { %720 = vmatpush.msra.mxu1 %v663_v42 }
  0x40   : > { %743 = vmatpush.msra.mxu2 %v664_v43  ;;  %698 = vmatpush.msra.mxu0 %v659_v44  ;;  %vm3716_vm8 = vcmp.le.s32.totalorder %v577_v39, %v574_v40  ;;  %p3424_p2 = pneg %p3423_p1 }
  0x41   : > { %721 = vmatpush.msra.mxu1 %v660_v45  ;;  %v575_v45 = vadd.s32 8, %v574_v40 }
  0x42   : > { %744 = vmatpush.msra.mxu2 %v661_v46  ;;  %699 = vmatpush.msra.mxu0 %v656_v47 }
  0x43   : > { %722 = vmatpush.msra.mxu1 %v657_v48  ;;  %vm3723_vm10 = vcmp.le.s32.totalorder %v577_v39, %v575_v45 }
  0x44   : > { %745 = vmatpush.msra.mxu2 %v658_v49  ;;  %700 = vmatpush.msra.mxu0 %v653_v50 }
  0x45   : > { %723 = vmatpush.msra.mxu1 %v654_v51 }
  0x46   : > { %746 = vmatpush.msra.mxu2 %v655_v52  ;;  %701 = vmatpush.msra.mxu0 %v650_v53  ;;  %v761_v52 = vld [vmem:[%s4260_s4 + $0x18] sm:$0xff]  ;;  %v760_v53 = vld [vmem:[%s4260_s4 + $0x10] sm:$0xff] }
  0x47   : > { %724 = vmatpush.msra.mxu1 %v651_v54  ;;  %v759_v54 = vld [vmem:[%s4260_s4 + $0x8] sm:$0xff] }
  0x48   : > { %747 = vmatpush.msra.mxu2 %v652_v55  ;;  %702 = vmatpush.msra.mxu0 %v647_v56  ;;  %v758_v55 = vld [vmem:[%s4260_s4] sm:$0xff] }
  0x49   : > { %725 = vmatpush.msra.mxu1 %v648_v57 }
  0x4a   : > { %748 = vmatpush.msra.mxu2 %v649_v58  ;;  %703 = vmatpush.msra.mxu0 %v644_v59 }
  0x4b   : > { %726 = vmatpush.msra.mxu1 %v645_v60 }
  0x4c   : > { %749 = vmatpush.msra.mxu2 %v646_v61  ;;  %704 = vmatpush.msra.mxu0 %v641_v62 }
  0x4d   : > { %727 = vmatpush.msra.mxu1 %v642_v63 }
  0x4e   : > { %750 = vmatpush.msra.mxu2 %v643_v2 }
  0x50   : > { %1015 = vmatpush.msrb.mxu2 %v761_v52 }
  0x52   : > { %1016 = vmatpush.msrb.mxu2 %v760_v53 }
  0x54   : > { %1017 = vmatpush.msrb.mxu2 %v759_v54 }
  0x56   : > { %1018 = vmatpush.msrb.mxu2 %v758_v55 }
  0xa8   : > { %v585_v15 = vpop.xlane.xlu0 %584 }
  0xa9   : > { %v595_v16 = vmul.f32 %v3673_v14, %v585_v15 }
  0xab   : > { %v3677_v17 = vsub.f32 %v3667_v0, %v595_v16 }
  0xad   : > { %v599_v18 = vmul.f32 %v3677_v17, %v3677_v17 }
  0xaf   : > { %601 = vadd.xlane.f32.xlu1 %v599_v18 }
  0xb0   : > { %v587_v19 = vpop.xlane.xlu0 %586 }
  0xb1   : > { %v596_v20 = vmul.f32 %v3673_v14, %v587_v19  ;;  %v3214_v19 = vld [vmem:[%s4257_s1] ss:$0 sm:$0xff] }
  0xb3   : > { %v3683_v21 = vsub.f32 %v3670_v1, %v596_v20 }
  0xb5   : > { %v600_v22 = vmul.f32 %v3683_v21, %v3683_v21 }
  0xb7   : > { %603 = vadd.xlane.f32.xlu1 %v600_v22 }
 0x122   : > { %v602_v3 = vpop.xlane.xlu1 %601 }
 0x123   : > { %v605_v4 = vmul.f32 %v602_v3, %v3673_v14 }
 0x125   : > { %v607_v5 = vadd.f32 1e-05, %v605_v4 }
 0x127   : > { %3231 = vrsqrt.f32 %v607_v5  ;;  %vm615_vm2 = vweird.f32 %v607_v5 }
 0x12a   : > { %v604_v6 = vpop.xlane.xlu1 %603 }
 0x12b   : > { %v606_v7 = vmul.f32 %v604_v6, %v3673_v14 }
 0x12d   : > { %v3232_v8 = vpop.eup %3231  ;;  %v608_v9 = vadd.f32 1e-05, %v606_v7 }
 0x12e   : > { %v610_v10 = vmul.f32 %v3232_v8, %v607_v5  ;;  %vm616_vm1 = vweird.f32 %v3232_v8 }
 0x12f   : > { %3233 = vrsqrt.f32 %v608_v9  ;;  %vm617_vm3 = vmor %vm615_vm2, %vm616_vm1  ;;  %vm625_vm5 = vweird.f32 %v608_v9 }
 0x130   : > { %v611_v11 = vmul.f32 %v3232_v8, %v610_v10 }
 0x132   : > { %v612_v12 = vmul.f32 0.5, %v611_v11 }
 0x134   : > { %v613_v13 = vsub.f32 1.5, %v612_v12 }
 0x135   : > { %v3234_v15 = vpop.eup %3233 }
 0x136   : > { %v614_v16 = vmul.f32 %v3232_v8, %v613_v13  ;;  %v620_v18 = vmul.f32 %v3234_v15, %v608_v9  ;;  %vm626_vm4 = vweird.f32 %v3234_v15 }
 0x137   : > { %vm627_vm6 = vmor %vm625_vm5, %vm626_vm4 }
 0x138   : > { %v618_v20 = vsel %vm617_vm3, %v3232_v8, %v614_v16  ;;  %v621_v22 = vmul.f32 %v3234_v15, %v620_v18 }
 0x139   : > { %v629_v23 = vmul.f32 %v618_v20, %v3677_v17 }
 0x13a   : > { %v622_v25 = vmul.f32 0.5, %v621_v22 }
 0x13b   : > { %v634_v26 = vmul.f32 %v3214_v19, %v629_v23 }
 0x13c   : > { %v623_v27 = vsub.f32 1.5, %v622_v25 }
 0x13d   : > { %v639_v28 = vadd.f32 %v3215_v24, %v634_v26 }
 0x13e   : > { %v624_v29 = vmul.f32 %v3234_v15, %v623_v27 }
 0x13f   : > { %705 = vmatmul.f32.vlgmr.msra.gmra.mxu0 %v639_v28  ;;  %728 = vmatmul.f32.vlgmr.msra.gmra.mxu1 %v639_v28 }
 0x140   : > { %v628_v30 = vsel %vm627_vm6, %v3234_v15, %v624_v29  ;;  %751 = vmatmul.f32.vlgmr.msra.gmra.mxu2 %v639_v28 }
 0x141   : > { %v630_v31 = vmul.f32 %v628_v30, %v3683_v21 }
 0x143   : > { %v635_v32 = vmul.f32 %v3214_v19, %v630_v31 }
 0x145   : > { %v640_v17 = vadd.f32 %v3215_v24, %v635_v32 }
 0x147   : > { %708 = vmatmul.f32.gmra.mxu0 %v640_v17  ;;  %731 = vmatmul.f32.gmra.mxu1 %v640_v17 }
 0x148   : > { %754 = vmatmul.f32.gmra.mxu2 %v640_v17 }
 0x1bc   : > { %v3697_v33 = vpop.f32.mrf.mxu1  ;;  %v3699_v34 = vpop.f32.mrf.mxu0 }
 0x1c3   : > { %v3701_v35 = vpop.f32.mrf.mxu2 }
 0x1c4   : > { %v732_v36 = vpop.f32.mrf.mxu1  ;;  %v709_v37 = vpop.f32.mrf.mxu0 }
 0x1c5   : > { %3007 = vmatpush.xpose.msk.msrb.mxu0 %vm774_vm7, %v732_v36  ;;  %3100 = vmatpush.xpose.msk.msrb.mxu1 %vm774_vm7, %v732_v36 }
 0x1c9   : > { %3008 = vmatpush.xpose.msk.msrb.mxu0 %vm774_vm7, %v3697_v33  ;;  %3101 = vmatpush.xpose.msk.msrb.mxu1 %vm774_vm7, %v3697_v33 }
 0x1cb   : > { %v3709_v21 = vpop.f32.mrf.mxu2 }
 0x1cc   : > { %857 = vmatpush.msra.mxu3 %v3709_v21  ;;  %3009 = vmatmul.msk.f32.vlgmr.msrb.gmra.mxu0 %vm774_vm7, %v3699_v34 }
 0x1cd   : > { %3010 = vmatmul.msk.f32.vlgmr.msrb.gmra.mxu1 %vm774_vm7, %v709_v37 }
 0x1ce   : > { %858 = vmatpush.msra.mxu3 %v3701_v35 }
 0x249   : > { %v804_v41 = vpop.f32.mrf.mxu0 }
 0x24a   : > { %v810_v43 = vmul.f32 0.17677669, %v804_v41  ;;  %v807_v44 = vpop.f32.mrf.mxu1 }
 0x24b   : > { %v811_v48 = vmul.f32 0.17677669, %v807_v44 }
 0x24c   : > { %v812_v46 = vsel %vm3716_vm8, %v810_v43, -inf }
 0x24d   : > { %v815_v47 = vsel %vm814_vm9, %v812_v46, -inf  ;;  %v813_v50 = vsel %vm3723_vm10, %v811_v48, -inf }
 0x24e   : > { %816 = vmax.xlane.f32.xlu2 %v815_v47  ;;  %v818_v51 = vsel %vm814_vm9, %v813_v50, -inf }
 0x256   : > { %819 = vmax.xlane.f32.xlu2 %v818_v51 }
 0x26e   : > { %872 = vrot.lane.b32.xlu2 %v732_v36, %s3487_s18 }
 0x276   : > { %1163 = vrot.lane.b32.xlu2 %v732_v36, %s3488_s26 }
 0x27e   : > { %1032 = vrot.lane.b32.xlu2 %v732_v36, %s3489_s29 }
 0x286   : > { %1030 = vrot.lane.b32.xlu2 %v3697_v33, %s3489_s29 }
 0x28e   : > { %1028 = vrot.lane.b32.xlu2 %v709_v37, %s3489_s29 }
 0x2c1   : > { %v817_v56 = vpop.xlane.xlu2 %816 }
 0x2c2   : > { %v821_v57 = vsub.f32 %v812_v46, %v817_v56 }
 0x2c4   : > { %v823_v58 = vmul.f32 1.442695, %v821_v57 }
 0x2c6   : > { %3235 = vpow2.f32 %v823_v58 }
 0x2c9   : > { %v820_v59 = vpop.xlane.xlu2 %819 }
 0x2ca   : > { %v822_v60 = vsub.f32 %v813_v50, %v820_v59 }
 0x2cc   : > { %v3236_v61 = vpop.eup %3235  ;;  %v825_v62 = vmul.f32 1.442695, %v822_v60 }
 0x2cd   : > { %v827_v63 = vsel %vm814_vm9, %v3236_v61, 0.0 }
 0x2ce   : > { %3237 = vpow2.f32 %v825_v62  ;;  %828 = vadd.xlane.f32.xlu0 %v827_v63 }
 0x2d1   : > { %v873_v2 = vpop.permute.xlu2 %872 }
 0x2d2   : > { %3013 = vmatpush.xpose.msk.msrb.mxu3 %vm774_vm7, %v873_v2 }
 0x2d4   : > { %v3238_v3 = vpop.eup %3237 }
 0x2d5   : > { %v830_v4 = vsel %vm814_vm9, %v3238_v3, 0.0 }
 0x2d6   : > { %831 = vadd.xlane.f32.xlu1 %v830_v4 }
 0x2d9   : > { %v1164_v5 = vpop.permute.xlu2 %1163 }
 0x2da   : > { %3031 = vmatpush.xpose.msk.msra.mxu2 %vm774_vm7, %v1164_v5 }
 0x2e1   : > { %v1033_v10 = vpop.permute.xlu2 %1032 }
 0x2e2   : > { %870 = vrot.lane.b32.xlu0 %v3697_v33, %s3487_s18 }
 0x2e9   : > { %v1031_v15 = vpop.permute.xlu2 %1030 }
 0x2ea   : > { %868 = vrot.lane.b32.xlu0 %v709_v37, %s3487_s18 }
 0x2ef   : > { %866 = vrot.lane.b32.xlu1 %v3699_v34, %s3487_s18 }
 0x2f1   : > { %v1029_v22 = vpop.permute.xlu2 %1028 }
 0x2f2   : > { %1157 = vrot.lane.b32.xlu0 %v3699_v34, %s3488_s26 }
 0x2f7   : > { %1161 = vrot.lane.b32.xlu1 %v3697_v33, %s3488_s26 }
 0x2fa   : > { %1159 = vrot.lane.b32.xlu0 %v709_v37, %s3488_s26 }
 0x2ff   : > { %1026 = vrot.lane.b32.xlu1 %v3699_v34, %s3489_s29 }
 0x341   : > { %v829_v6 = vpop.xlane.xlu0 %828 }
 0x342   : > { %3239 = vrcp.f32 %v829_v6 }
 0x348   : > { %v3240_v7 = vpop.eup %3239 }
 0x349   : > { %v832_v8 = vpop.xlane.xlu1 %831  ;;  %v835_v9 = vmul.f32 %v3240_v7, %v3236_v61 }
 0x34a   : > { %3241 = vrcp.f32 %v832_v8  ;;  %v3184_v8 = vpack.i.bf16 %v3701_v35, %v3709_v21 }
 0x34b   : > { %3011 = vmatmul.msk.f32.vlgmr.msra.gmra.mxu3 %vm814_vm9, %v835_v9 }
 0x350   : > { %v3242_v11 = vpop.eup %3241 }
 0x351   : > { %v836_v12 = vmul.f32 %v3242_v11, %v3238_v3 }
 0x353   : > { %3012 = vmatmul.msk.f32.gmra.mxu3 %vm814_vm9, %v836_v12 }
 0x354   : > { %v871_v13 = vpop.permute.xlu0 %870 }
 0x355   : > { %3014 = vmatpush.xpose.msk.msrb.mxu3 %vm774_vm7, %v871_v13 }
 0x359   : > { %3023 = vmatpush.xpose.msk.msra.mxu3 %vm774_vm7, %v1033_v10 }
 0x35c   : > { %v869_v18 = vpop.permute.xlu0 %868 }
 0x35d   : > { %3024 = vmatpush.xpose.msk.msra.mxu3 %vm774_vm7, %v1031_v15 }
 0x361   : > { %v867_v16 = vpop.permute.xlu1 %866 }
 0x362   : > { %3015 = vmatmul.msk.f32.vlgmr.msrb.gmra.mxu3 %vm774_vm7, %v867_v16 }
 0x364   : > { %v1158_v25 = vpop.permute.xlu0 %1157 }
 0x369   : > { %v1162_v19 = vpop.permute.xlu1 %1161 }
 0x36a   : > { %3016 = vmatmul.msk.f32.gmra.mxu3 %vm774_vm7, %v869_v18  ;;  %3032 = vmatpush.xpose.msk.msra.mxu2 %vm774_vm7, %v1162_v19 }
 0x36c   : > { %v1160_v27 = vpop.permute.xlu0 %1159 }
 0x371   : > { %v1027_v20 = vpop.permute.xlu1 %1026 }
 0x372   : > { %3025 = vmatmul.msk.f32.vlgmr.msra.gmra.mxu3 %vm774_vm7, %v1027_v20 }
 0x37a   : > { %3026 = vmatmul.msk.f32.gmra.mxu3 %vm774_vm7, %v1029_v22 }
 0x3ce   : > { %v860_v23 = vpop.f32.mrf.mxu3 }
 0x3cf   : > { %3021 = vmatmul.msk.f32.vlgmr.msrb.gmra.mxu2 %vm774_vm7, %v860_v23 }
 0x3d6   : > { %v863_v24 = vpop.f32.mrf.mxu3 }
 0x3d7   : > { %3022 = vmatmul.msk.f32.gmra.mxu2 %vm774_vm7, %v863_v24 }
 0x3df   : > { %3033 = vmatmul.msk.f32.vlgmr.msra.gmra.mxu2 %vm774_vm7, %v1158_v25 }
 0x3e5   : > { %v899_v26 = vpop.f32.mrf.mxu3 }
 0x3e6   : > { %v905_v28 = vmul.f32 0.17677669, %v899_v26 }
 0x3e7   : > { %3034 = vmatmul.msk.f32.gmra.mxu2 %vm774_vm7, %v1160_v27 }
 0x3e8   : > { %v907_v29 = vsel %vm3716_vm8, %v905_v28, -inf }
 0x3e9   : > { %v909_v30 = vsel %vm814_vm9, %v907_v29, -inf }
 0x3ea   : > { %910 = vmax.xlane.f32.xlu1 %v909_v30 }
 0x3ed   : > { %v902_v31 = vpop.f32.mrf.mxu3 }
 0x3ee   : > { %v906_v32 = vmul.f32 0.17677669, %v902_v31 }
 0x3f0   : > { %v908_v17 = vsel %vm3723_vm10, %v906_v32, -inf }
 0x3f1   : > { %v912_v33 = vsel %vm814_vm9, %v908_v17, -inf }
 0x3f2   : > { %913 = vmax.xlane.f32.xlu0 %v912_v33 }
 0x3f5   : > { %v1059_v34 = vpop.f32.mrf.mxu3 }
 0x3f6   : > { %v1065_v36 = vmul.f32 0.17677669, %v1059_v34 }
 0x3f8   : > { %v1067_v37 = vsel %vm3716_vm8, %v1065_v36, -inf }
 0x3f9   : > { %v1069_v38 = vsel %vm814_vm9, %v1067_v37, -inf }
 0x3fa   : > { %1070 = vmax.xlane.f32.xlu1 %v1069_v38 }
 0x3fd   : > { %v1062_v47 = vpop.f32.mrf.mxu3 }
 0x3fe   : > { %v1066_v53 = vmul.f32 0.17677669, %v1062_v47  ;;  %v769_v47 = vld [vmem:[%s4260_s4 + $0x58] sm:$0xff] }
 0x400   : > { %v1068_v59 = vsel %vm3723_vm10, %v1066_v53, -inf }
 0x401   : > { %v1072_v2 = vsel %vm814_vm9, %v1068_v59, -inf }
 0x452   : > { %v3787_v39 = vpop.f32.mrf.mxu2 }
 0x45a   : > { %v3789_v40 = vpop.f32.mrf.mxu2 }
 0x45d   : > { %v911_v41 = vpop.xlane.xlu1 %910 }
 0x45e   : > { %v915_v43 = vsub.f32 %v907_v29, %v911_v41 }
 0x460   : > { %v917_v44 = vmul.f32 1.442695, %v915_v43  ;;  %v765_v43 = vld [vmem:[%s4260_s4 + $0x38] sm:$0xff] }
 0x461   : > { %986 = vmatpush.msra.mxu1 %v765_v43 }
 0x462   : > { %3243 = vpow2.f32 %v917_v44  ;;  %v1190_v45 = vpop.f32.mrf.mxu2  ;;  %v764_v44 = vld [vmem:[%s4260_s4 + $0x30] sm:$0xff] }
 0x463   : > { %v1196_v46 = vmul.f32 0.17677669, %v1190_v45  ;;  %987 = vmatpush.msra.mxu1 %v764_v44  ;;  %v763_v45 = vld [vmem:[%s4260_s4 + $0x28] sm:$0xff] }
 0x465   : > { %v914_v48 = vpop.xlane.xlu0 %913  ;;  %v1198_v50 = vsel %vm3716_vm8, %v1196_v46, -inf  ;;  %988 = vmatpush.msra.mxu1 %v763_v45  ;;  %v762_v46 = vld [vmem:[%s4260_s4 + $0x20] sm:$0xff] }
 0x466   : > { %v916_v51 = vsub.f32 %v908_v17, %v914_v48  ;;  %v1200_v52 = vsel %vm814_vm9, %v1198_v50, -inf  ;;  %v768_v48 = vld [vmem:[%s4260_s4 + $0x50] sm:$0xff]  ;;  %v1400_v45 = vld [vmem:[#allocation5 + $0x1a0] sm:$0xff] }
 0x467   : > { %1201 = vmax.xlane.f32.xlu2 %v1200_v52  ;;  %989 = vmatpush.msra.mxu1 %v762_v46  ;;  %v766_v52 = vld [vmem:[%s4260_s4 + $0x40] sm:$0xff]  ;;  %v1401_v46 = vld [vmem:[#allocation5 + $0x1a8] sm:$0xff] }
 0x468   : > { %v3244_v54 = vpop.eup %3243  ;;  %v919_v55 = vmul.f32 1.442695, %v916_v51  ;;  %v767_v51 = vld [vmem:[%s4260_s4 + $0x48] sm:$0xff] }
 0x469   : > { %v921_v56 = vsel %vm814_vm9, %v3244_v54, 0.0  ;;  %1144 = vmatpush.msrb.mxu1 %v769_v47  ;;  %v1402_v47 = vld [vmem:[#allocation5 + $0x1b0] sm:$0xff] }
 0x46a   : > { %v1193_v57 = vpop.f32.mrf.mxu2  ;;  %922 = vadd.xlane.f32.xlu1 %v921_v56  ;;  %3245 = vpow2.f32 %v919_v55 }
 0x46b   : > { %v1197_v58 = vmul.f32 0.17677669, %v1193_v57  ;;  %1145 = vmatpush.msrb.mxu1 %v768_v48  ;;  %v1403_v48 = vld [vmem:[#allocation5 + $0x1b8] sm:$0xff] }
 0x46d   : > { %v1071_v60 = vpop.xlane.xlu1 %1070  ;;  %v1199_v61 = vsel %vm3723_vm10, %v1197_v58, -inf  ;;  %1146 = vmatpush.msrb.mxu1 %v767_v51  ;;  %v1397_v51 = vld [vmem:[#allocation5 + $0x188] sm:$0xff] }
 0x46e   : > { %v1075_v62 = vsub.f32 %v1067_v37, %v1071_v60  ;;  %v1203_v63 = vsel %vm814_vm9, %v1199_v61, -inf }
 0x46f   : > { %1204 = vmax.xlane.f32.xlu0 %v1203_v63  ;;  %1073 = vmax.xlane.f32.xlu2 %v1072_v2 }
 0x470   : > { %v1077_v3 = vmul.f32 1.442695, %v1075_v62  ;;  %v3246_v4 = vpop.eup %3245  ;;  %1147 = vmatpush.msrb.mxu1 %v766_v52  ;;  %v1398_v52 = vld [vmem:[#allocation5 + $0x190] sm:$0xff] }
 0x471   : > { %v924_v5 = vsel %vm814_vm9, %v3246_v4, 0.0 }
 0x472   : > { %3247 = vpow2.f32 %v1077_v3 }
 0x477   : > { %925 = vadd.xlane.f32.xlu2 %v924_v5  ;;  %v773_v5 = vld [vmem:[%s4260_s4 + $0x78] sm:$0xff] }
 0x478   : > { %v3248_v6 = vpop.eup %3247 }
 0x479   : > { %v1081_v7 = vsel %vm814_vm9, %v3248_v6, 0.0 }
 0x47f   : > { %1082 = vadd.xlane.f32.xlu2 %v1081_v7  ;;  %v771_v7 = vld [vmem:[%s4260_s4 + $0x68] sm:$0xff] }
 0x483   : > { %3185 = vrot.lane.b32.xlu0 %v3184_v8, %s3487_s18 }
 0x48b   : > { %3195 = vrot.lane.b32.xlu0 %v3184_v8, %s3489_s29 }
 0x4da   : > { %v1202_v9 = vpop.xlane.xlu2 %1201 }
 0x4db   : > { %v1206_v10 = vsub.f32 %v1198_v50, %v1202_v9 }
 0x4dd   : > { %v1208_v11 = vmul.f32 1.442695, %v1206_v10  ;;  %v923_v22 = vpop.xlane.xlu1 %922 }
 0x4df   : > { %3249 = vpow2.f32 %v1208_v11 }
 0x4e2   : > { %v1205_v12 = vpop.xlane.xlu0 %1204  ;;  %v1074_v13 = vpop.xlane.xlu2 %1073 }
 0x4e3   : > { %v1207_v15 = vsub.f32 %v1199_v61, %v1205_v12  ;;  %v1076_v19 = vsub.f32 %v1068_v59, %v1074_v13 }
 0x4e5   : > { %v3807_v16 = vpop.eup %3249  ;;  %v1210_v18 = vmul.f32 1.442695, %v1207_v15  ;;  %v1079_v35 = vmul.f32 1.442695, %v1076_v19 }
 0x4e6   : > { %v1212_v20 = vsel %vm814_vm9, %v3807_v16, 0.0 }
 0x4e7   : > { %3251 = vpow2.f32 %v1210_v18  ;;  %1213 = vadd.xlane.f32.xlu1 %v1212_v20 }
 0x4e8   : > { %3253 = vpow2.f32 %v1079_v35  ;;  %v3216_v35 = vld [vmem:[%s4261_s5] ss:$0 sm:$0xff] }
 0x4e9   : > { %3255 = vrcp.f32 %v923_v22 }
 0x4ea   : > { %v926_v25 = vpop.xlane.xlu2 %925 }
 0x4eb   : > { %3257 = vrcp.f32 %v926_v25 }
 0x4ed   : > { %v3811_v21 = vpop.eup %3251 }
 0x4ee   : > { %v1215_v23 = vsel %vm814_vm9, %v3811_v21, 0.0  ;;  %v3254_v24 = vpop.eup %3253 }
 0x4ef   : > { %1216 = vadd.xlane.f32.xlu2 %v1215_v23  ;;  %v3256_v27 = vpop.eup %3255  ;;  %v1084_v29 = vsel %vm814_vm9, %v3254_v24, 0.0 }
 0x4f0   : > { %v929_v31 = vmul.f32 %v3256_v27, %v3244_v54 }
 0x4f1   : > { %v3258_v33 = vpop.eup %3257 }
 0x4f2   : > { %v1083_v32 = vpop.xlane.xlu2 %1082  ;;  %v930_v37 = vmul.f32 %v3258_v33, %v3246_v4  ;;  %v1407_v33 = vld [vmem:[#allocation5 + $0x1d8] sm:$0xff] }
 0x4f3   : > { %3259 = vrcp.f32 %v1083_v32  ;;  %v1405_v32 = vld [vmem:[#allocation5 + $0x1c8] sm:$0xff] }
 0x4f5   : > { %v3186_v26 = vpop.permute.xlu0 %3185 }
 0x4f6   : > { %v3187_v28 = vunpack.i.l.bf16 %v3186_v26  ;;  %v3188_v30 = vunpack.i.h.bf16 %v3186_v26 }
 0x4f7   : > { %1085 = vadd.xlane.f32.xlu2 %v1084_v29  ;;  %v1408_v29 = vld [vmem:[#allocation5 + $0x1e0] sm:$0xff] }
 0x4f8   : > { %959 = vmatpush.msra.mxu0 %v3187_v28 }
 0x4f9   : > { %v3260_v38 = vpop.eup %3259 }
 0x4fa   : > { %960 = vmatpush.msra.mxu0 %v3188_v30  ;;  %v1089_v41 = vmul.f32 %v3260_v38, %v3248_v6  ;;  %v772_v6 = vld [vmem:[%s4260_s4 + $0x70] sm:$0xff]  ;;  %v1409_v30 = vld [vmem:[#allocation5 + $0x1e8] sm:$0xff] }
 0x4fb   : > { %3017 = vmatmul.msk.f32.vlgmr.msra.gmra.mxu0 %vm814_vm9, %v929_v31  ;;  %v1410_v31 = vld [vmem:[#allocation5 + $0x1f0] sm:$0xff]  ;;  %1445 = vmatpush.msrb.mxu2 %v1409_v30  ;;  %v1356_v30 = vld [vmem:[#allocation5 + $0x40] sm:$0xff] }
 0x4fd   : > { %v3196_v17 = vpop.permute.xlu0 %3195  ;;  %1446 = vmatpush.msrb.mxu2 %v1405_v32  ;;  %v1352_v32 = vld [vmem:[#allocation5 + $0x20] sm:$0xff] }
 0x4fe   : > { %v3197_v34 = vunpack.i.l.bf16 %v3196_v17  ;;  %v3198_v36 = vunpack.i.h.bf16 %v3196_v17  ;;  %v1406_v17 = vld [vmem:[#allocation5 + $0x1d0] sm:$0xff] }
 0x4ff   : > { %1447 = vmatpush.msrb.mxu2 %v1401_v46 }
 0x500   : > { %1117 = vmatpush.msrb.mxu0 %v3197_v34  ;;  %3190 = vrot.lane.b32.xlu1 %v3184_v8, %s3488_s26  ;;  %v770_v8 = vld [vmem:[%s4260_s4 + $0x60] sm:$0xff] }
 0x501   : > { %1448 = vmatpush.msrb.mxu2 %v1397_v51  ;;  %v1584_v51 = vld [vmem:[#allocation7 + $0x1f0] sm:$0xff] }
 0x502   : > { %1118 = vmatpush.msrb.mxu0 %v3198_v36 }
 0x503   : > { %3018 = vmatmul.msk.f32.gmra.mxu0 %vm814_vm9, %v930_v37 }
 0x504   : > { %1275 = vmatpush.msra.mxu0 %v773_v5  ;;  %v1381_v5 = vld [vmem:[#allocation5 + $0x108] sm:$0xff] }
 0x506   : > { %1276 = vmatpush.msra.mxu0 %v772_v6  ;;  %v1382_v6 = vld [vmem:[#allocation5 + $0x110] sm:$0xff] }
 0x508   : > { %1277 = vmatpush.msra.mxu0 %v771_v7  ;;  %v1383_v7 = vld [vmem:[#allocation5 + $0x118] sm:$0xff] }
 0x50a   : > { %1278 = vmatpush.msra.mxu0 %v770_v8  ;;  %v1376_v8 = vld [vmem:[#allocation5 + $0xe0] sm:$0xff] }
 0x50b   : > { %3027 = vmatmul.msk.f32.vlgmr.msrb.gmra.mxu0 %vm814_vm9, %v1089_v41 }
 0x55a   : > { %v1214_v53 = vpop.xlane.xlu1 %1213 }
 0x562   : > { %v1217_v50 = vpop.xlane.xlu2 %1216 }
 0x56a   : > { %v1086_v54 = vpop.xlane.xlu2 %1085 }
 0x56b   : > { %3261 = vrcp.f32 %v1086_v54  ;;  %v1392_v54 = vld [vmem:[#allocation5 + $0x160] sm:$0xff] }
 0x56c   : > { %3263 = vrcp.f32 %v1214_v53  ;;  %v1399_v53 = vld [vmem:[#allocation5 + $0x198] sm:$0xff] }
 0x56d   : > { %3265 = vrcp.f32 %v1217_v50  ;;  %v1396_v50 = vld [vmem:[#allocation5 + $0x180] sm:$0xff] }
 0x571   : > { %v3262_v55 = vpop.eup %3261 }
 0x572   : > { %v3191_v56 = vpop.permute.xlu1 %3190  ;;  %v1090_v57 = vmul.f32 %v3262_v55, %v3254_v24  ;;  %v3264_v58 = vpop.eup %3263  ;;  %v1393_v55 = vld [vmem:[#allocation5 + $0x168] sm:$0xff] }
 0x573   : > { %v3192_v59 = vunpack.i.l.bf16 %v3191_v56  ;;  %v3193_v60 = vunpack.i.h.bf16 %v3191_v56  ;;  %v1220_v61 = vmul.f32 %v3264_v58, %v3807_v16  ;;  %v3266_v63 = vpop.eup %3265  ;;  %v1394_v56 = vld [vmem:[#allocation5 + $0x170] sm:$0xff]  ;;  %1449 = vmatpush.msrb.mxu2 %v1393_v55  ;;  %v1388_v58 = vld [vmem:[#allocation5 + $0x140] sm:$0xff]  ;;  %v1553_v55 = vld [vmem:[#allocation7 + $0xf8] sm:$0xff] }
 0x574   : > { %3028 = vmatmul.msk.f32.gmra.mxu0 %vm814_vm9, %v1090_v57  ;;  %v1221_v2 = vmul.f32 %v3266_v63, %v3811_v21  ;;  %v1395_v57 = vld [vmem:[#allocation5 + $0x178] sm:$0xff]  ;;  %v1385_v63 = vld [vmem:[#allocation5 + $0x128] sm:$0xff] }
 0x575   : > { %1248 = vmatpush.msrb.mxu3 %v3192_v59  ;;  %v1389_v59 = vld [vmem:[#allocation5 + $0x148] sm:$0xff] }
 0x576   : > { %1450 = vmatpush.msrb.mxu2 %v1389_v59  ;;  %v1534_v59 = vld [vmem:[#allocation7 + $0x60] sm:$0xff] }
 0x577   : > { %1249 = vmatpush.msrb.mxu3 %v3193_v60  ;;  %v1390_v60 = vld [vmem:[#allocation5 + $0x150] sm:$0xff] }
 0x578   : > { %v962_v62 = vpop.f32.mrf.mxu0  ;;  %3035 = vmatmul.msk.f32.vlgmr.msrb.gmra.mxu3 %vm814_vm9, %v1220_v61  ;;  %v1391_v61 = vld [vmem:[#allocation5 + $0x158] sm:$0xff]  ;;  %1451 = vmatpush.msrb.mxu2 %v1385_v63 }
 0x579   : > { %3019 = vmatmul.msk.f32.vlgmr.msra.gmra.mxu1 %vm774_vm7, %v962_v62  ;;  %1468 = vmatpush.msra.mxu3 %v1410_v31  ;;  %v1384_v62 = vld [vmem:[#allocation5 + $0x120] sm:$0xff]  ;;  %v1357_v31 = vld [vmem:[#allocation5 + $0x48] sm:$0xff] }
 0x57a   : > { %1422 = vmatpush.msra.mxu1 %v1408_v29  ;;  %1452 = vmatpush.msrb.mxu2 %v1381_v5  ;;  %v1363_v29 = vld [vmem:[#allocation5 + $0x78] sm:$0xff] }
 0x57b   : > { %1469 = vmatpush.msra.mxu3 %v1406_v17  ;;  %v1353_v17 = vld [vmem:[#allocation5 + $0x28] sm:$0xff]  ;;  %v1533_v5 = vld [vmem:[#allocation7 + $0x58] sm:$0xff] }
 0x57d   : > { %1470 = vmatpush.msra.mxu3 %v1402_v47  ;;  %v1537_v47 = vld [vmem:[#allocation7 + $0x78] sm:$0xff] }
 0x57f   : > { %1471 = vmatpush.msra.mxu3 %v1398_v52  ;;  %v1535_v52 = vld [vmem:[#allocation7 + $0x68] sm:$0xff] }
 0x580   : > { %v965_v3 = vpop.f32.mrf.mxu0  ;;  %3036 = vmatmul.msk.f32.gmra.mxu3 %vm814_vm9, %v1221_v2  ;;  %v1386_v2 = vld [vmem:[#allocation5 + $0x130] sm:$0xff] }
 0x581   : > { %3020 = vmatmul.msk.f32.gmra.mxu1 %vm774_vm7, %v965_v3  ;;  %1472 = vmatpush.msra.mxu3 %v1394_v56  ;;  %v1387_v3 = vld [vmem:[#allocation5 + $0x138] sm:$0xff] }
 0x582   : > { %v1569_v56 = vld [vmem:[#allocation7 + $0x178] sm:$0xff] }
 0x583   : > { %1473 = vmatpush.msra.mxu3 %v1390_v60  ;;  %v1582_v60 = vld [vmem:[#allocation7 + $0x1e0] sm:$0xff] }
 0x585   : > { %1474 = vmatpush.msra.mxu3 %v1386_v2  ;;  %v1551_v2 = vld [vmem:[#allocation7 + $0xe8] sm:$0xff] }
 0x587   : > { %1475 = vmatpush.msra.mxu3 %v1382_v6  ;;  %v1581_v6 = vld [vmem:[#allocation7 + $0x1d8] sm:$0xff] }
 0x588   : > { %v1120_v4 = vpop.f32.mrf.mxu0 }
 0x589   : > { %3029 = vmatmul.msk.f32.vlgmr.msrb.gmra.mxu1 %vm774_vm7, %v1120_v4  ;;  %v1380_v4 = vld [vmem:[#allocation5 + $0x100] sm:$0xff] }
 0x5f1   : > { %v1123_v9 = vpop.f32.mrf.mxu0 }
 0x5f2   : > { %3030 = vmatmul.msk.f32.gmra.mxu1 %vm774_vm7, %v1123_v9  ;;  %v1377_v9 = vld [vmem:[#allocation5 + $0xe8] sm:$0xff] }
 0x5f3   : > { %1453 = vmatpush.msrb.mxu2 %v1377_v9 }
 0x5f6   : > { %v991_v12 = vpop.f32.mrf.mxu1 }
 0x5f7   : > { %v1021_v16 = vadd.f32 %v3787_v39, %v991_v12  ;;  %v1372_v12 = vld [vmem:[#allocation5 + $0xc0] sm:$0xff] }
 0x5fb   : > { %v1251_v10 = vpop.f32.mrf.mxu3 }
 0x5fc   : > { %3037 = vmatmul.msk.f32.vlgmr.msra.gmra.mxu0 %vm774_vm7, %v1251_v10  ;;  %v1378_v10 = vld [vmem:[#allocation5 + $0xf0] sm:$0xff] }
 0x5fd   : > { %1476 = vmatpush.msra.mxu3 %v1378_v10  ;;  %v1532_v10 = vld [vmem:[#allocation7 + $0x50] sm:$0xff] }
 0x5fe   : > { %v994_v13 = vpop.f32.mrf.mxu1 }
 0x5ff   : > { %v1024_v23 = vadd.f32 %v3789_v40, %v994_v13  ;;  %v1404_v40 = vld [vmem:[#allocation5 + $0x1c0] sm:$0xff]  ;;  %v1373_v13 = vld [vmem:[#allocation5 + $0xc8] sm:$0xff] }
 0x600   : > { %1423 = vmatpush.msra.mxu1 %v1404_v40  ;;  %1454 = vmatpush.msrb.mxu2 %v1373_v13  ;;  %v1359_v40 = vld [vmem:[#allocation5 + $0x58] sm:$0xff] }
 0x601   : > { %v1565_v13 = vld [vmem:[#allocation7 + $0x158] sm:$0xff] }
 0x602   : > { %1424 = vmatpush.msra.mxu1 %v1400_v45 }
 0x603   : > { %v1254_v11 = vpop.f32.mrf.mxu3 }
 0x604   : > { %3038 = vmatmul.msk.f32.gmra.mxu0 %vm774_vm7, %v1254_v11  ;;  %1425 = vmatpush.msra.mxu1 %v1396_v50  ;;  %v1379_v11 = vld [vmem:[#allocation5 + $0xf8] sm:$0xff]  ;;  %v1536_v50 = vld [vmem:[#allocation7 + $0x70] sm:$0xff] }
 0x606   : > { %v1149_v15 = vpop.f32.mrf.mxu1  ;;  %1426 = vmatpush.msra.mxu1 %v1392_v54  ;;  %v1583_v54 = vld [vmem:[#allocation7 + $0x1e8] sm:$0xff] }
 0x607   : > { %v1155_v18 = vadd.f32 %v1149_v15, %v1021_v16  ;;  %v1374_v15 = vld [vmem:[#allocation5 + $0xd0] sm:$0xff]  ;;  %v1375_v16 = vld [vmem:[#allocation5 + $0xd8] sm:$0xff] }
 0x608   : > { %1427 = vmatpush.msra.mxu1 %v1388_v58  ;;  %1477 = vmatpush.msra.mxu3 %v1374_v15  ;;  %v1552_v58 = vld [vmem:[#allocation7 + $0xf0] sm:$0xff] }
 0x60a   : > { %1428 = vmatpush.msra.mxu1 %v1384_v62 }
 0x60c   : > { %1429 = vmatpush.msra.mxu1 %v1380_v4 }
 0x60e   : > { %1430 = vmatpush.msra.mxu1 %v1376_v8  ;;  %v1566_v8 = vld [vmem:[#allocation7 + $0x160] sm:$0xff] }
 0x610   : > { %1431 = vmatpush.msra.mxu1 %v1372_v12  ;;  %v1549_v12 = vld [vmem:[#allocation7 + $0xd8] sm:$0xff] }
 0x66f   : > { %v1152_v22 = vpop.f32.mrf.mxu1 }
 0x670   : > { %v1156_v25 = vadd.f32 %v1152_v22, %v1024_v23  ;;  %v1365_v22 = vld [vmem:[#allocation5 + $0x88] sm:$0xff]  ;;  %v1366_v23 = vld [vmem:[#allocation5 + $0x90] sm:$0xff] }
 0x679   : > { %v1280_v19 = vpop.f32.mrf.mxu0 }
 0x67a   : > { %v1286_v20 = vadd.f32 %v1280_v19, %v1155_v18  ;;  %v1368_v18 = vld [vmem:[#allocation5 + $0xa0] sm:$0xff]  ;;  %v1369_v19 = vld [vmem:[#allocation5 + $0xa8] sm:$0xff] }
 0x67b   : > { %1432 = vmatpush.msra.mxu1 %v1368_v18  ;;  %1455 = vmatpush.msrb.mxu2 %v1369_v19  ;;  %v1579_v18 = vld [vmem:[#allocation7 + $0x1c8] sm:$0xff]  ;;  %v1548_v19 = vld [vmem:[#allocation7 + $0xd0] sm:$0xff] }
 0x67c   : > { %v1288_v21 = vadd.f32 %v1286_v20, %v3667_v0  ;;  %v1411_v0 = vld [vmem:[#allocation5 + $0x1f8] sm:$0xff]  ;;  %v1370_v20 = vld [vmem:[#allocation5 + $0xb0] sm:$0xff] }
 0x67d   : > { %1491 = vmatpush.msrb.mxu0 %v1411_v0  ;;  %1478 = vmatpush.msra.mxu3 %v1370_v20  ;;  %v1358_v0 = vld [vmem:[#allocation5 + $0x50] sm:$0xff] }
 0x67e   : > { %v3873_v24 = vadd.f32 %v3216_v35, %v1288_v21  ;;  %v1364_v21 = vld [vmem:[#allocation5 + $0x80] sm:$0xff]  ;;  %1456 = vmatpush.msrb.mxu2 %v1365_v22  ;;  %v1564_v20 = vld [vmem:[#allocation7 + $0x150] sm:$0xff] }
 0x67f   : > { %1492 = vmatpush.msrb.mxu0 %v1407_v33  ;;  %1433 = vmatpush.msra.mxu1 %v1364_v21  ;;  %v1354_v33 = vld [vmem:[#allocation5 + $0x30] sm:$0xff]  ;;  %v1530_v21 = vld [vmem:[#allocation7 + $0x40] sm:$0xff] }
 0x680   : > { %1298 = vadd.xlane.f32.xlu0 %v3873_v24  ;;  %1479 = vmatpush.msra.mxu3 %v1366_v23  ;;  %v1578_v22 = vld [vmem:[#allocation7 + $0x1c0] sm:$0xff] }
 0x681   : > { %v1283_v26 = vpop.f32.mrf.mxu0  ;;  %1493 = vmatpush.msrb.mxu0 %v1403_v48  ;;  %v1585_v48 = vld [vmem:[#allocation7 + $0x1f8] sm:$0xff] }
 0x682   : > { %v1287_v27 = vadd.f32 %v1283_v26, %v1156_v25  ;;  %v1367_v25 = vld [vmem:[#allocation5 + $0x98] sm:$0xff]  ;;  %v1360_v26 = vld [vmem:[#allocation5 + $0x60] sm:$0xff] }
 0x683   : > { %1494 = vmatpush.msrb.mxu0 %v1399_v53  ;;  %1434 = vmatpush.msra.mxu1 %v1360_v26  ;;  %v1563_v26 = vld [vmem:[#allocation7 + $0x148] sm:$0xff] }
 0x684   : > { %v1289_v39 = vadd.f32 %v1287_v27, %v3670_v1  ;;  %v1361_v27 = vld [vmem:[#allocation5 + $0x68] sm:$0xff] }
 0x685   : > { %1495 = vmatpush.msrb.mxu0 %v1395_v57  ;;  %1457 = vmatpush.msrb.mxu2 %v1361_v27 }
 0x686   : > { %v3877_v28 = vadd.f32 %v3216_v35, %v1289_v39  ;;  %v1371_v35 = vld [vmem:[#allocation5 + $0xb8] sm:$0xff]  ;;  %v1362_v39 = vld [vmem:[#allocation5 + $0x70] sm:$0xff]  ;;  %1435 = vmatpush.msra.mxu1 %v1356_v30 }
 0x687   : > { %1496 = vmatpush.msrb.mxu0 %v1391_v61  ;;  %1480 = vmatpush.msra.mxu3 %v1362_v39  ;;  %v1568_v61 = vld [vmem:[#allocation7 + $0x170] sm:$0xff]  ;;  %v1529_v30 = vld [vmem:[#allocation7 + $0x38] sm:$0xff] }
 0x688   : > { %1300 = vadd.xlane.f32.xlu2 %v3877_v28  ;;  %1458 = vmatpush.msrb.mxu2 %v1357_v31  ;;  %v1577_v31 = vld [vmem:[#allocation7 + $0x1b8] sm:$0xff] }
 0x689   : > { %1497 = vmatpush.msrb.mxu0 %v1387_v3  ;;  %1481 = vmatpush.msra.mxu3 %v1358_v0  ;;  %v1567_v3 = vld [vmem:[#allocation7 + $0x168] sm:$0xff]  ;;  %v1546_v0 = vld [vmem:[#allocation7 + $0xc0] sm:$0xff] }
 0x68a   : > { %1436 = vmatpush.msra.mxu1 %v1352_v32  ;;  %1459 = vmatpush.msrb.mxu2 %v1353_v17 }
 0x68b   : > { %1498 = vmatpush.msrb.mxu0 %v1383_v7  ;;  %1482 = vmatpush.msra.mxu3 %v1354_v33  ;;  %v1550_v7 = vld [vmem:[#allocation7 + $0xe0] sm:$0xff]  ;;  %v1528_v33 = vld [vmem:[#allocation7 + $0x30] sm:$0xff] }
 0x68d   : > { %1499 = vmatpush.msrb.mxu0 %v1379_v11  ;;  %v1580_v11 = vld [vmem:[#allocation7 + $0x1d0] sm:$0xff] }
 0x68f   : > { %1500 = vmatpush.msrb.mxu0 %v1375_v16  ;;  %v1531_v16 = vld [vmem:[#allocation7 + $0x48] sm:$0xff] }
 0x691   : > { %1501 = vmatpush.msrb.mxu0 %v1371_v35 }
 0x693   : > { %1502 = vmatpush.msrb.mxu0 %v1367_v25  ;;  %v1547_v25 = vld [vmem:[#allocation7 + $0xc8] sm:$0xff] }
 0x695   : > { %1503 = vmatpush.msrb.mxu0 %v1363_v29  ;;  %v3217_v29 = vld [vmem:[%s4262_s6] ss:$0 sm:$0xff] }
 0x697   : > { %1504 = vmatpush.msrb.mxu0 %v1359_v40  ;;  %v1562_v40 = vld [vmem:[#allocation7 + $0x140] sm:$0xff] }
 0x6f3   : > { %v1299_v1 = vpop.xlane.xlu0 %1298 }
 0x6f4   : > { %v1302_v34 = vmul.f32 %v1299_v1, %v3673_v14  ;;  %v1355_v1 = vld [vmem:[#allocation5 + $0x38] sm:$0xff] }
 0x6f5   : > { %1505 = vmatpush.msrb.mxu0 %v1355_v1  ;;  %v1576_v1 = vld [vmem:[#allocation7 + $0x1b0] sm:$0xff] }
 0x6f6   : > { %v3882_v36 = vsub.f32 %v3873_v24, %v1302_v34  ;;  %v1348_v34 = vld [vmem:[#allocation5] sm:$0xff] }
 0x6f7   : > { %1437 = vmatpush.msra.mxu1 %v1348_v34 }
 0x6f8   : > { %v1306_v37 = vmul.f32 %v3882_v36, %v3882_v36 }
 0x6f9   : > { %1590 = vmatpush.msrb.mxu1 %v1537_v47 }
 0x6fa   : > { %1308 = vadd.xlane.f32.xlu1 %v1306_v37  ;;  %v1349_v37 = vld [vmem:[#allocation5 + $0x8] sm:$0xff] }
 0x6fb   : > { %v1301_v38 = vpop.xlane.xlu2 %1300  ;;  %1460 = vmatpush.msrb.mxu2 %v1349_v37  ;;  %1591 = vmatpush.msrb.mxu1 %v1536_v50  ;;  %v3218_v37 = vld [vmem:[%s4263_s7] ss:$0 sm:$0xff]  ;;  %v1560_v50 = vld [vmem:[#allocation7 + $0x130] sm:$0xff] }
 0x6fc   : > { %v1303_v41 = vmul.f32 %v1301_v38, %v3673_v14  ;;  %v1350_v38 = vld [vmem:[#allocation5 + $0x10] sm:$0xff] }
 0x6fd   : > { %1483 = vmatpush.msra.mxu3 %v1350_v38  ;;  %1613 = vmatpush.msra.mxu2 %v1553_v55  ;;  %v1545_v38 = vld [vmem:[#allocation7 + $0xb8] sm:$0xff] }
 0x6fe   : > { %v3888_v43 = vsub.f32 %v3877_v28, %v1303_v41  ;;  %v1351_v41 = vld [vmem:[#allocation5 + $0x18] sm:$0xff]  ;;  %1592 = vmatpush.msrb.mxu1 %v1535_v52 }
 0x6ff   : > { %1506 = vmatpush.msrb.mxu0 %v1351_v41  ;;  %1636 = vmatpush.msrb.mxu3 %v1569_v56  ;;  %v1561_v41 = vld [vmem:[#allocation7 + $0x138] sm:$0xff] }
 0x700   : > { %v1307_v44 = vmul.f32 %v3888_v43, %v3888_v43  ;;  %1614 = vmatpush.msra.mxu2 %v1552_v58  ;;  %1593 = vmatpush.msrb.mxu1 %v1534_v59  ;;  %v1525_v56 = vld [vmem:[#allocation7 + $0x18] sm:$0xff] }
 0x701   : > { %1659 = vmatpush.msra.mxu0 %v1585_v48  ;;  %1637 = vmatpush.msrb.mxu3 %v1568_v61  ;;  %v1544_v48 = vld [vmem:[#allocation7 + $0xb0] sm:$0xff] }
 0x702   : > { %1310 = vadd.xlane.f32.xlu2 %v1307_v44  ;;  %1615 = vmatpush.msra.mxu2 %v1551_v2  ;;  %v1524_v61 = vld [vmem:[#allocation7 + $0x10] sm:$0xff] }
 0x703   : > { %1660 = vmatpush.msra.mxu0 %v1584_v51  ;;  %1638 = vmatpush.msrb.mxu3 %v1567_v3  ;;  %v1572_v2 = vld [vmem:[#allocation7 + $0x190] sm:$0xff]  ;;  %v1523_v3 = vld [vmem:[#allocation7 + $0x8] sm:$0xff] }
 0x704   : > { %1594 = vmatpush.msrb.mxu1 %v1533_v5  ;;  %1616 = vmatpush.msra.mxu2 %v1550_v7  ;;  %v1571_v5 = vld [vmem:[#allocation7 + $0x188] sm:$0xff]  ;;  %v1541_v7 = vld [vmem:[#allocation7 + $0x98] sm:$0xff] }
 0x705   : > { %1661 = vmatpush.msra.mxu0 %v1583_v54  ;;  %1639 = vmatpush.msrb.mxu3 %v1566_v8  ;;  %v1574_v54 = vld [vmem:[#allocation7 + $0x1a0] sm:$0xff]  ;;  %v1557_v8 = vld [vmem:[#allocation7 + $0x118] sm:$0xff] }
 0x706   : > { %1595 = vmatpush.msrb.mxu1 %v1532_v10  ;;  %1617 = vmatpush.msra.mxu2 %v1549_v12  ;;  %v1540_v10 = vld [vmem:[#allocation7 + $0x90] sm:$0xff]  ;;  %v1539_v12 = vld [vmem:[#allocation7 + $0x88] sm:$0xff] }
 0x707   : > { %1662 = vmatpush.msra.mxu0 %v1582_v60  ;;  %1640 = vmatpush.msrb.mxu3 %v1565_v13  ;;  %v1555_v13 = vld [vmem:[#allocation7 + $0x108] sm:$0xff] }
 0x708   : > { %1596 = vmatpush.msrb.mxu1 %v1531_v16  ;;  %1618 = vmatpush.msra.mxu2 %v1548_v19  ;;  %v1554_v16 = vld [vmem:[#allocation7 + $0x100] sm:$0xff] }
 0x709   : > { %1663 = vmatpush.msra.mxu0 %v1581_v6  ;;  %1641 = vmatpush.msrb.mxu3 %v1564_v20  ;;  %v1522_v6 = vld [vmem:[#allocation7] sm:$0xff] }
 0x70a   : > { %1597 = vmatpush.msrb.mxu1 %v1530_v21  ;;  %1619 = vmatpush.msra.mxu2 %v1547_v25 }
 0x70b   : > { %1664 = vmatpush.msra.mxu0 %v1580_v11  ;;  %1642 = vmatpush.msrb.mxu3 %v1563_v26  ;;  %v1556_v11 = vld [vmem:[#allocation7 + $0x110] sm:$0xff] }
 0x70c   : > { %1598 = vmatpush.msrb.mxu1 %v1529_v30  ;;  %1620 = vmatpush.msra.mxu2 %v1546_v0 }
 0x70d   : > { %1665 = vmatpush.msra.mxu0 %v1579_v18  ;;  %1643 = vmatpush.msrb.mxu3 %v1562_v40  ;;  %v1412_v18 = vld [vmem:[%s4265_s9] sm:$0xf] }
 0x70e   : > { %1599 = vmatpush.msrb.mxu1 %v1528_v33  ;;  %1621 = vmatpush.msra.mxu2 %v1545_v38  ;;  %v1414_v19 = vperm.slane %v1412_v18, 0  ;;  %v1417_v20 = vperm.slane %v1412_v18, 3  ;;  %v1415_v26 = vperm.slane %v1412_v18, 1 }
 0x70f   : > { %1666 = vmatpush.msra.mxu0 %v1578_v22  ;;  %1644 = vmatpush.msrb.mxu3 %v1561_v41 }
 0x710   : > { %1622 = vmatpush.msra.mxu2 %v1544_v48 }
 0x711   : > { %1667 = vmatpush.msra.mxu0 %v1577_v31  ;;  %1645 = vmatpush.msrb.mxu3 %v1560_v50 }
 0x713   : > { %1668 = vmatpush.msra.mxu0 %v1576_v1 }
 0x76d   : > { %v1309_v44 = vpop.xlane.xlu1 %1308 }
 0x76e   : > { %v1312_v45 = vmul.f32 %v1309_v44, %v3673_v14 }
 0x770   : > { %v3893_v46 = vadd.f32 1e-05, %v1312_v45  ;;  %v1527_v45 = vld [vmem:[#allocation7 + $0x28] sm:$0xff] }
 0x771   : > { %1600 = vmatpush.msrb.mxu1 %v1527_v45 }
 0x772   : > { %3267 = vrsqrt.f32 %v3893_v46  ;;  %vm1322_vm12 = vweird.f32 %v3893_v46 }
 0x775   : > { %v1311_v53 = vpop.xlane.xlu2 %1310 }
 0x776   : > { %v1313_v57 = vmul.f32 %v1311_v53, %v3673_v14  ;;  %v1526_v53 = vld [vmem:[#allocation7 + $0x20] sm:$0xff] }
 0x777   : > { %1601 = vmatpush.msrb.mxu1 %v1526_v53 }
 0x778   : > { %v3897_v62 = vpop.eup %3267  ;;  %v3899_v63 = vadd.f32 1e-05, %v1313_v57  ;;  %v1573_v57 = vld [vmem:[#allocation7 + $0x198] sm:$0xff] }
 0x779   : > { %v1317_v4 = vmul.f32 %v3897_v62, %v3893_v46  ;;  %vm1323_vm11 = vweird.f32 %v3897_v62  ;;  %v1575_v46 = vld [vmem:[#allocation7 + $0x1a8] sm:$0xff]  ;;  %1602 = vmatpush.msrb.mxu1 %v1525_v56 }
 0x77a   : > { %3269 = vrsqrt.f32 %v3899_v63  ;;  %vm1324_vm13 = vmor %vm1322_vm12, %vm1323_vm11  ;;  %1669 = vmatpush.msra.mxu0 %v1575_v46  ;;  %vm1332_vm15 = vweird.f32 %v3899_v63 }
 0x77b   : > { %v1318_v9 = vmul.f32 %v3897_v62, %v1317_v4  ;;  %1603 = vmatpush.msrb.mxu1 %v1524_v61  ;;  %v1558_v4 = vld [vmem:[#allocation7 + $0x120] sm:$0xff] }
 0x77c   : > { %1670 = vmatpush.msra.mxu0 %v1574_v54 }
 0x77d   : > { %v1319_v15 = vmul.f32 0.5, %v1318_v9  ;;  %1604 = vmatpush.msrb.mxu1 %v1523_v3  ;;  %v1570_v9 = vld [vmem:[#allocation7 + $0x180] sm:$0xff] }
 0x77e   : > { %1671 = vmatpush.msra.mxu0 %v1573_v57 }
 0x77f   : > { %v1320_v35 = vsub.f32 1.5, %v1319_v15  ;;  %1605 = vmatpush.msrb.mxu1 %v1522_v6  ;;  %v1538_v15 = vld [vmem:[#allocation7 + $0x80] sm:$0xff]  ;;  %v1785_v6 = vld [vmem:[#allocation2 + $0x2f0] sm:$0xff] }
 0x780   : > { %v3270_v23 = vpop.eup %3269  ;;  %1672 = vmatpush.msra.mxu0 %v1572_v2 }
 0x781   : > { %v1321_v27 = vmul.f32 %v3897_v62, %v1320_v35  ;;  %v1327_v39 = vmul.f32 %v3270_v23, %v3899_v63  ;;  %vm1333_vm14 = vweird.f32 %v3270_v23  ;;  %v1559_v63 = vld [vmem:[#allocation7 + $0x128] sm:$0xff] }
 0x782   : > { %vm1334_vm0 = vmor %vm1332_vm15, %vm1333_vm14  ;;  %1646 = vmatpush.msrb.mxu3 %v1559_v63  ;;  %1673 = vmatpush.msra.mxu0 %v1571_v5  ;;  %v1784_v5 = vld [vmem:[#allocation2 + $0x2e8] sm:$0xff] }
 0x783   : > { %v1325_v32 = vsel %vm1324_vm13, %v3897_v62, %v1321_v27  ;;  %v1328_v17 = vmul.f32 %v3270_v23, %v1327_v39  ;;  %v1543_v62 = vld [vmem:[#allocation7 + $0xa8] sm:$0xff]  ;;  %v1416_v39 = vperm.slane %v1412_v18, 2 }
 0x784   : > { %v1336_v34 = vmul.f32 %v1325_v32, %v3882_v36  ;;  %1623 = vmatpush.msra.mxu2 %v1543_v62  ;;  %1647 = vmatpush.msrb.mxu3 %v1558_v4 }
 0x785   : > { %v1329_v44 = vmul.f32 0.5, %v1328_v17  ;;  %1674 = vmatpush.msra.mxu0 %v1570_v9  ;;  %v1783_v9 = vld [vmem:[#allocation2 + $0x2e0] sm:$0xff] }
 0x786   : > { %v1341_v47 = vmul.f32 %v3217_v29, %v1336_v34  ;;  %1648 = vmatpush.msrb.mxu3 %v1557_v8  ;;  %v1782_v8 = vld [vmem:[#allocation2 + $0x2d8] sm:$0xff] }
 0x787   : > { %v1330_v51 = vsub.f32 1.5, %v1329_v44 }
 0x788   : > { %v1346_v36 = vadd.f32 %v3218_v37, %v1341_v47  ;;  %1649 = vmatpush.msrb.mxu3 %v1556_v11 }
 0x789   : > { %v1331_v52 = vmul.f32 %v3270_v23, %v1330_v51  ;;  %v3219_v51 = vld [vmem:[%s4267_s11] ss:$0 sm:$0xff] }
 0x78a   : > { %1438 = vmatmul.f32.vlgmr.msra.gmra.mxu1 %v1346_v36  ;;  %1461 = vmatmul.f32.vlgmr.msrb.gmra.mxu2 %v1346_v36 }
 0x78b   : > { %v1335_v55 = vsel %vm1334_vm0, %v3270_v23, %v1331_v52  ;;  %1484 = vmatmul.f32.vlgmr.msra.gmra.mxu3 %v1346_v36  ;;  %1507 = vmatmul.f32.vlgmr.msrb.gmra.mxu0 %v1346_v36 }
 0x78c   : > { %v1337_v58 = vmul.f32 %v1335_v55, %v3888_v43  ;;  %v1542_v43 = vld [vmem:[#allocation7 + $0xa0] sm:$0xff]  ;;  %1650 = vmatpush.msrb.mxu3 %v1555_v13  ;;  %1787 = vmatpush.msra.mxu1 %v1784_v5 }
 0x78d   : > { %1624 = vmatpush.msra.mxu2 %v1542_v43 }
 0x78e   : > { %v1342_v59 = vmul.f32 %v3217_v29, %v1337_v58  ;;  %1651 = vmatpush.msrb.mxu3 %v1554_v16 }
 0x78f   : > { %1625 = vmatpush.msra.mxu2 %v1541_v7  ;;  %v1786_v7 = vld [vmem:[#allocation2 + $0x2f8] sm:$0xff] }
 0x790   : > { %v1347_v60 = vadd.f32 %v3218_v37, %v1342_v59  ;;  %1833 = vmatpush.msra.mxu3 %v1786_v7 }
 0x791   : > { %1626 = vmatpush.msra.mxu2 %v1540_v10 }
 0x792   : > { %1441 = vmatmul.f32.gmra.mxu1 %v1347_v60  ;;  %1464 = vmatmul.f32.gmra.mxu2 %v1347_v60 }
 0x793   : > { %1487 = vmatmul.f32.gmra.mxu3 %v1347_v60  ;;  %1510 = vmatmul.f32.gmra.mxu0 %v1347_v60 }
 0x794   : > { %1627 = vmatpush.msra.mxu2 %v1539_v12  ;;  %1834 = vmatpush.msra.mxu3 %v1783_v9 }
 0x796   : > { %1628 = vmatpush.msra.mxu2 %v1538_v15 }
 0x798   : > { %1810 = vmatpush.msrb.mxu2 %v1785_v6 }
 0x79a   : > { %1811 = vmatpush.msrb.mxu2 %v1782_v8 }
 0x807   : > { %v1439_v35 = vpop.f32.mrf.mxu1 }
 0x808   : > { %v1440_v21 = vadd.f32 %v1439_v35, %v1414_v19  ;;  %v1508_v22 = vpop.f32.mrf.mxu0  ;;  %v1780_v35 = vld [vmem:[#allocation2 + $0x2c8] sm:$0xff] }
 0x809   : > { %v1509_v23 = vadd.f32 %v1508_v22, %v1417_v20  ;;  %1835 = vmatpush.msra.mxu3 %v1780_v35  ;;  %v1776_v22 = vld [vmem:[#allocation2 + $0x2a8] sm:$0xff] }
 0x80a   : > { %v1514_v25 = vmax.f32 %v1440_v21, 0.0  ;;  %v1775_v21 = vld [vmem:[#allocation2 + $0x2a0] sm:$0xff] }
 0x80b   : > { %v1517_v27 = vmax.f32 %v1509_v23, 0.0  ;;  %v1777_v23 = vld [vmem:[#allocation2 + $0x2b0] sm:$0xff] }
 0x80c   : > { %1606 = vmatmul.f32.vlgmr.msrb.gmra.mxu1 %v1514_v25  ;;  %1836 = vmatpush.msra.mxu3 %v1777_v23  ;;  %v1772_v25 = vld [vmem:[#allocation2 + $0x288] sm:$0xff] }
 0x80d   : > { %1675 = vmatmul.f32.vlgmr.msra.gmra.mxu0 %v1517_v27  ;;  %v1462_v29 = vpop.f32.mrf.mxu2  ;;  %v1774_v27 = vld [vmem:[#allocation2 + $0x298] sm:$0xff] }
 0x80e   : > { %v1463_v30 = vadd.f32 %v1462_v29, %v1415_v26  ;;  %v1485_v31 = vpop.f32.mrf.mxu3  ;;  %1837 = vmatpush.msra.mxu3 %v1774_v27  ;;  %v1770_v29 = vld [vmem:[#allocation2 + $0x278] sm:$0xff] }
 0x80f   : > { %v1486_v0 = vadd.f32 %v1485_v31, %v1416_v39  ;;  %v1442_v40 = vpop.f32.mrf.mxu1  ;;  %v1766_v31 = vld [vmem:[#allocation2 + $0x258] sm:$0xff] }
 0x810   : > { %v1515_v32 = vmax.f32 %v1463_v30, 0.0  ;;  %v1443_v17 = vadd.f32 %v1442_v40, %v1414_v19  ;;  %v1511_v33 = vpop.f32.mrf.mxu0  ;;  %v1778_v19 = vld [vmem:[#allocation2 + $0x2b8] sm:$0xff]  ;;  %v1771_v30 = vld [vmem:[#allocation2 + $0x280] sm:$0xff]  ;;  %v1768_v40 = vld [vmem:[#allocation2 + $0x268] sm:$0xff] }
 0x811   : > { %v1516_v1 = vmax.f32 %v1486_v0, 0.0  ;;  %v1512_v34 = vadd.f32 %v1511_v33, %v1417_v20  ;;  %v1779_v20 = vld [vmem:[#allocation2 + $0x2c0] sm:$0xff]  ;;  %1838 = vmatpush.msra.mxu3 %v1771_v30  ;;  %v1765_v33 = vld [vmem:[#allocation2 + $0x250] sm:$0xff] }
 0x812   : > { %v1518_v37 = vmax.f32 %v1443_v17, 0.0  ;;  %1629 = vmatmul.f32.vlgmr.msra.gmra.mxu2 %v1515_v32  ;;  %v1767_v0 = vld [vmem:[#allocation2 + $0x260] sm:$0xff]  ;;  %v1764_v17 = vld [vmem:[#allocation2 + $0x248] sm:$0xff] }
 0x813   : > { %v1521_v38 = vmax.f32 %v1512_v34, 0.0  ;;  %1652 = vmatmul.f32.vlgmr.msrb.gmra.mxu3 %v1516_v1  ;;  %1812 = vmatpush.msrb.mxu2 %v1779_v20  ;;  %v1763_v32 = vld [vmem:[#allocation2 + $0x240] sm:$0xff]  ;;  %v1760_v1 = vld [vmem:[#allocation2 + $0x228] sm:$0xff]  ;;  %v1761_v34 = vld [vmem:[#allocation2 + $0x230] sm:$0xff] }
 0x814   : > { %1609 = vmatmul.f32.gmra.mxu1 %v1518_v37  ;;  %1839 = vmatpush.msra.mxu3 %v1768_v40  ;;  %v1762_v37 = vld [vmem:[#allocation2 + $0x238] sm:$0xff] }
 0x815   : > { %1678 = vmatmul.f32.gmra.mxu0 %v1521_v38  ;;  %v1465_v41 = vpop.f32.mrf.mxu2  ;;  %1813 = vmatpush.msrb.mxu2 %v1776_v22  ;;  %v1757_v38 = vld [vmem:[#allocation2 + $0x210] sm:$0xff] }
 0x816   : > { %v1466_v44 = vadd.f32 %v1465_v41, %v1415_v26  ;;  %v1488_v45 = vpop.f32.mrf.mxu3  ;;  %v1773_v26 = vld [vmem:[#allocation2 + $0x290] sm:$0xff]  ;;  %1840 = vmatpush.msra.mxu3 %v1765_v33  ;;  %v1758_v41 = vld [vmem:[#allocation2 + $0x218] sm:$0xff] }
 0x817   : > { %v1489_v46 = vadd.f32 %v1488_v45, %v1416_v39  ;;  %1814 = vmatpush.msrb.mxu2 %v1773_v26  ;;  %v1769_v39 = vld [vmem:[#allocation2 + $0x270] sm:$0xff]  ;;  %v1754_v45 = vld [vmem:[#allocation2 + $0x1f8] sm:$0xff] }
 0x818   : > { %v1519_v47 = vmax.f32 %v1466_v44, 0.0  ;;  %1841 = vmatpush.msra.mxu3 %v1762_v37  ;;  %v1759_v44 = vld [vmem:[#allocation2 + $0x220] sm:$0xff] }
 0x819   : > { %v1520_v48 = vmax.f32 %v1489_v46, 0.0  ;;  %1815 = vmatpush.msrb.mxu2 %v1770_v29  ;;  %v1755_v46 = vld [vmem:[#allocation2 + $0x200] sm:$0xff] }
 0x81a   : > { %1632 = vmatmul.f32.gmra.mxu2 %v1519_v47  ;;  %1842 = vmatpush.msra.mxu3 %v1759_v44  ;;  %v1756_v47 = vld [vmem:[#allocation2 + $0x208] sm:$0xff] }
 0x81b   : > { %1655 = vmatmul.f32.gmra.mxu3 %v1520_v48  ;;  %1816 = vmatpush.msrb.mxu2 %v1767_v0  ;;  %v1751_v48 = vld [vmem:[#allocation2 + $0x1e0] sm:$0xff] }
 0x81c   : > { %1843 = vmatpush.msra.mxu3 %v1756_v47 }
 0x81d   : > { %1817 = vmatpush.msrb.mxu2 %v1764_v17 }
 0x81f   : > { %1818 = vmatpush.msrb.mxu2 %v1761_v34 }
 0x821   : > { %1819 = vmatpush.msrb.mxu2 %v1758_v41 }
 0x823   : > { %1820 = vmatpush.msrb.mxu2 %v1755_v46 }
 0x889   : > { %v1607_v50 = vpop.f32.mrf.mxu1 }
 0x88a   : > { %v1608_v36 = vadd.f32 %v3219_v51, %v1607_v50  ;;  %v1676_v55 = vpop.f32.mrf.mxu0  ;;  %v1752_v50 = vld [vmem:[#allocation2 + $0x1e8] sm:$0xff] }
 0x88b   : > { %1821 = vmatpush.msrb.mxu2 %v1752_v50 }
 0x891   : > { %v1610_v57 = vpop.f32.mrf.mxu1 }
 0x892   : > { %v1611_v59 = vadd.f32 %v3219_v51, %v1610_v57  ;;  %v1679_v3 = vpop.f32.mrf.mxu0  ;;  %v1753_v51 = vld [vmem:[#allocation2 + $0x1f0] sm:$0xff]  ;;  %v1742_v57 = vld [vmem:[#allocation2 + $0x198] sm:$0xff] }
 0x893   : > { %1844 = vmatpush.msra.mxu3 %v1753_v51 }
 0x895   : > { %v1630_v52 = vpop.f32.mrf.mxu2 }
 0x896   : > { %v1631_v53 = vadd.f32 %v1630_v52, %v1608_v36  ;;  %v1653_v54 = vpop.f32.mrf.mxu3  ;;  %v1748_v36 = vld [vmem:[#allocation2 + $0x1c8] sm:$0xff]  ;;  %v1749_v52 = vld [vmem:[#allocation2 + $0x1d0] sm:$0xff] }
 0x897   : > { %1822 = vmatpush.msrb.mxu2 %v1749_v52 }
 0x898   : > { %v1654_v56 = vadd.f32 %v1653_v54, %v1631_v53  ;;  %v1750_v53 = vld [vmem:[#allocation2 + $0x1d8] sm:$0xff]  ;;  %v1745_v54 = vld [vmem:[#allocation2 + $0x1b0] sm:$0xff] }
 0x899   : > { %1845 = vmatpush.msra.mxu3 %v1750_v53 }
 0x89a   : > { %v1677_v58 = vadd.f32 %v1676_v55, %v1654_v56  ;;  %v1746_v55 = vld [vmem:[#allocation2 + $0x1b8] sm:$0xff]  ;;  %v1747_v56 = vld [vmem:[#allocation2 + $0x1c0] sm:$0xff] }
 0x89b   : > { %1823 = vmatpush.msrb.mxu2 %v1746_v55  ;;  %1846 = vmatpush.msra.mxu3 %v1747_v56 }
 0x89c   : > { %v3928_v60 = vadd.f32 %v1677_v58, %v3873_v24  ;;  %v1781_v24 = vld [vmem:[#allocation2 + $0x2d0] sm:$0xff]  ;;  %v1743_v58 = vld [vmem:[#allocation2 + $0x1a0] sm:$0xff] }
 0x89d   : > { %v1633_v61 = vpop.f32.mrf.mxu2  ;;  %1788 = vmatpush.msra.mxu1 %v1781_v24  ;;  %1824 = vmatpush.msrb.mxu2 %v1743_v58  ;;  %v3044_v58 = vld [vmem:[%s4260_s4 + $0x98] sm:$0xff] }
 0x89e   : > { %v1634_v62 = vadd.f32 %v1633_v61, %v1611_v59  ;;  %1688 = vadd.xlane.f32.xlu2 %v3928_v60  ;;  %v1656_v63 = vpop.f32.mrf.mxu3  ;;  %v1744_v59 = vld [vmem:[#allocation2 + $0x1a8] sm:$0xff]  ;;  %v1739_v61 = vld [vmem:[#allocation2 + $0x180] sm:$0xff] }
 0x89f   : > { %1789 = vmatpush.msra.mxu1 %v1778_v19  ;;  %1847 = vmatpush.msra.mxu3 %v1744_v59  ;;  %v3043_v59 = vld [vmem:[%s4260_s4 + $0x90] sm:$0xff] }
 0x8a0   : > { %v1657_v2 = vadd.f32 %v1656_v63, %v1634_v62  ;;  %v1740_v62 = vld [vmem:[#allocation2 + $0x188] sm:$0xff]  ;;  %v1741_v63 = vld [vmem:[#allocation2 + $0x190] sm:$0xff] }
 0x8a1   : > { %1790 = vmatpush.msra.mxu1 %v1775_v21  ;;  %1825 = vmatpush.msrb.mxu2 %v1740_v62  ;;  %v3221_v21 = vld [vmem:[%s4258_s2 + $0x1] ss:$0 sm:$0xff] }
 0x8a2   : > { %v1680_v43 = vadd.f32 %v1679_v3, %v1657_v2  ;;  %1848 = vmatpush.msra.mxu3 %v1741_v63  ;;  %v3041_v62 = vld [vmem:[%s4260_s4 + $0x80] sm:$0xff] }
 0x8a3   : > { %1791 = vmatpush.msra.mxu1 %v1772_v25 }
 0x8a4   : > { %v3932_v4 = vadd.f32 %v1680_v43, %v3877_v28 }
 0x8a5   : > { %1792 = vmatpush.msra.mxu1 %v1769_v39 }
 0x8a6   : > { %1690 = vadd.xlane.f32.xlu2 %v3932_v4 }
 0x8a7   : > { %1793 = vmatpush.msra.mxu1 %v1766_v31 }
 0x8a9   : > { %1794 = vmatpush.msra.mxu1 %v1763_v32 }
 0x8ab   : > { %1795 = vmatpush.msra.mxu1 %v1760_v1 }
 0x8ad   : > { %1796 = vmatpush.msra.mxu1 %v1757_v38 }
 0x8af   : > { %1797 = vmatpush.msra.mxu1 %v1754_v45 }
 0x8b1   : > { %1798 = vmatpush.msra.mxu1 %v1751_v48 }
 0x8b3   : > { %1799 = vmatpush.msra.mxu1 %v1748_v36 }
 0x8b5   : > { %1800 = vmatpush.msra.mxu1 %v1745_v54 }
 0x8b7   : > { %1801 = vmatpush.msra.mxu1 %v1742_v57 }
 0x8b9   : > { %1802 = vmatpush.msra.mxu1 %v1739_v61  ;;  %v3042_v61 = vld [vmem:[%s4260_s4 + $0x88] sm:$0xff] }
 0x911   : > { %v1689_v10 = vpop.xlane.xlu2 %1688 }
 0x912   : > { %v1692_v11 = vmul.f32 %v1689_v10, %v3673_v14 }
 0x914   : > { %v3937_v28 = vsub.f32 %v3928_v60, %v1692_v11 }
 0x916   : > { %v1696_v12 = vmul.f32 %v3937_v28, %v3937_v28 }
 0x918   : > { %1698 = vadd.xlane.f32.xlu2 %v1696_v12 }
 0x919   : > { %v1691_v13 = vpop.xlane.xlu2 %1690 }
 0x91a   : > { %v1693_v15 = vmul.f32 %v1691_v13, %v3673_v14 }
 0x91c   : > { %v3943_v16 = vsub.f32 %v3932_v4, %v1693_v15 }
 0x91e   : > { %v1697_v18 = vmul.f32 %v3943_v16, %v3943_v16 }
 0x920   : > { %1700 = vadd.xlane.f32.xlu0 %v1697_v18  ;;  %v3220_v18 = vld [vmem:[%s4257_s1 + $0x1] ss:$0 sm:$0xff] }
 0x98b   : > { %v1699_v2 = vpop.xlane.xlu2 %1698 }
 0x98c   : > { %v1702_v3 = vmul.f32 %v1699_v2, %v3673_v14 }
 0x98e   : > { %v1704_v43 = vadd.f32 1e-05, %v1702_v3 }
 0x990   : > { %3271 = vrsqrt.f32 %v1704_v43  ;;  %vm1712_vm2 = vweird.f32 %v1704_v43 }
 0x993   : > { %v1701_v5 = vpop.xlane.xlu0 %1700 }
 0x994   : > { %v1703_v6 = vmul.f32 %v1701_v5, %v3673_v14 }
 0x996   : > { %v3272_v7 = vpop.eup %3271  ;;  %v1705_v24 = vadd.f32 1e-05, %v1703_v6 }
 0x997   : > { %v1707_v8 = vmul.f32 %v3272_v7, %v1704_v43  ;;  %vm1713_vm1 = vweird.f32 %v3272_v7 }
 0x998   : > { %3273 = vrsqrt.f32 %v1705_v24  ;;  %vm1714_vm3 = vmor %vm1712_vm2, %vm1713_vm1  ;;  %vm1722_vm5 = vweird.f32 %v1705_v24 }
 0x999   : > { %v1708_v9 = vmul.f32 %v3272_v7, %v1707_v8 }
 0x99b   : > { %v1709_v10 = vmul.f32 0.5, %v1708_v9 }
 0x99d   : > { %v1710_v11 = vsub.f32 1.5, %v1709_v10 }
 0x99e   : > { %v3274_v12 = vpop.eup %3273 }
 0x99f   : > { %v1711_v13 = vmul.f32 %v3272_v7, %v1710_v11  ;;  %v1717_v15 = vmul.f32 %v3274_v12, %v1705_v24  ;;  %vm1723_vm4 = vweird.f32 %v3274_v12 }
 0x9a0   : > { %vm1724_vm6 = vmor %vm1722_vm5, %vm1723_vm4 }
 0x9a1   : > { %v1715_v19 = vsel %vm1714_vm3, %v3272_v7, %v1711_v13  ;;  %v1718_v20 = vmul.f32 %v3274_v12, %v1717_v15 }
 0x9a2   : > { %v1726_v35 = vmul.f32 %v1715_v19, %v3937_v28 }
 0x9a3   : > { %v1719_v22 = vmul.f32 0.5, %v1718_v20 }
 0x9a4   : > { %v1731_v23 = vmul.f32 %v3220_v18, %v1726_v35 }
 0x9a5   : > { %v1720_v25 = vsub.f32 1.5, %v1719_v22 }
 0x9a6   : > { %v1736_v26 = vadd.f32 %v3221_v21, %v1731_v23 }
 0x9a7   : > { %v1721_v27 = vmul.f32 %v3274_v12, %v1720_v25 }
 0x9a8   : > { %1803 = vmatmul.f32.vlgmr.msra.gmra.mxu1 %v1736_v26  ;;  %1826 = vmatmul.f32.vlgmr.msrb.gmra.mxu2 %v1736_v26 }
 0x9a9   : > { %v1725_v39 = vsel %vm1724_vm6, %v3274_v12, %v1721_v27  ;;  %1849 = vmatmul.f32.vlgmr.msra.gmra.mxu3 %v1736_v26 }
 0x9aa   : > { %v1727_v29 = vmul.f32 %v1725_v39, %v3943_v16 }
 0x9ac   : > { %v1732_v30 = vmul.f32 %v3220_v18, %v1727_v29 }
 0x9ae   : > { %v1737_v28 = vadd.f32 %v3221_v21, %v1732_v30 }
 0x9b0   : > { %1806 = vmatmul.f32.gmra.mxu1 %v1737_v28  ;;  %1829 = vmatmul.f32.gmra.mxu2 %v1737_v28 }
 0x9b1   : > { %1852 = vmatmul.f32.gmra.mxu3 %v1737_v28 }
 0xa25   : > { %v1804_v32 = vpop.f32.mrf.mxu1 }
 0xa2b   : > { %v1827_v31 = vpop.f32.mrf.mxu2 }
 0xa2c   : > { %v3957_v0 = vpop.f32.mrf.mxu3 }
 0xa2d   : > { %v1807_v16 = vpop.f32.mrf.mxu1 }
 0xa33   : > { %v1830_v40 = vpop.f32.mrf.mxu2 }
 0xa34   : > { %3057 = vmatpush.xpose.msk.msrb.mxu0 %vm774_vm7, %v1830_v40  ;;  %v3960_v17 = vpop.f32.mrf.mxu3 }
 0xa35   : > { %v3199_v49 = vpack.i.bf16 %v3957_v0, %v3960_v17 }
 0xa38   : > { %3058 = vmatpush.xpose.msk.msrb.mxu0 %vm774_vm7, %v1827_v31 }
 0xa3b   : > { %3059 = vmatmul.msk.f32.vlgmr.msrb.gmra.mxu0 %vm774_vm7, %v1804_v32 }
 0xa3c   : > { %1954 = vmatpush.msra.mxu0 %v3960_v17 }
 0xa3e   : > { %1955 = vmatpush.msra.mxu0 %v3957_v0 }
 0xa40   : > { %2112 = vmatpush.msrb.mxu0 %v3044_v58 }
 0xa42   : > { %2113 = vmatpush.msrb.mxu0 %v3043_v59 }
 0xa43   : > { %3060 = vmatmul.msk.f32.gmra.mxu0 %vm774_vm7, %v1807_v16 }
 0xa44   : > { %2114 = vmatpush.msrb.mxu0 %v3042_v61 }
 0xa46   : > { %2115 = vmatpush.msrb.mxu0 %v3041_v62 }
 0xab8   : > { %v1902_v33 = vpop.f32.mrf.mxu0 }
 0xab9   : > { %v1908_v1 = vmul.f32 0.17677669, %v1902_v33 }
 0xabb   : > { %v1910_v34 = vsel %vm3716_vm8, %v1908_v1, -inf }
 0xabc   : > { %v1912_v37 = vsel %vm814_vm9, %v1910_v34, -inf }
 0xabd   : > { %1913 = vmax.xlane.f32.xlu2 %v1912_v37 }
 0xac0   : > { %v1905_v38 = vpop.f32.mrf.mxu0 }
 0xac1   : > { %v1909_v41 = vmul.f32 0.17677669, %v1905_v38 }
 0xac3   : > { %v1911_v44 = vsel %vm3723_vm10, %v1909_v41, -inf }
 0xac4   : > { %v1915_v45 = vsel %vm814_vm9, %v1911_v44, -inf }
 0xac5   : > { %1916 = vmax.xlane.f32.xlu0 %v1915_v45 }
 0xad9   : > { %1969 = vrot.lane.b32.xlu0 %v1830_v40, %s3487_s18 }
 0xae1   : > { %1965 = vrot.lane.b32.xlu0 %v1807_v16, %s3487_s18 }
 0xae9   : > { %2127 = vrot.lane.b32.xlu0 %v1827_v31, %s3489_s29 }
 0xaf1   : > { %2258 = vrot.lane.b32.xlu0 %v1827_v31, %s3488_s26 }
 0xaf9   : > { %2256 = vrot.lane.b32.xlu0 %v1807_v16, %s3488_s26 }
 0xb30   : > { %v1914_v46 = vpop.xlane.xlu2 %1913 }
 0xb31   : > { %v1918_v47 = vsub.f32 %v1910_v34, %v1914_v46 }
 0xb33   : > { %v1920_v48 = vmul.f32 1.442695, %v1918_v47 }
 0xb35   : > { %3275 = vpow2.f32 %v1920_v48 }
 0xb38   : > { %v1917_v50 = vpop.xlane.xlu0 %1916 }
 0xb39   : > { %v1919_v51 = vsub.f32 %v1911_v44, %v1917_v50 }
 0xb3b   : > { %v3276_v36 = vpop.eup %3275  ;;  %v1922_v52 = vmul.f32 1.442695, %v1919_v51 }
 0xb3c   : > { %v1924_v53 = vsel %vm814_vm9, %v3276_v36, 0.0 }
 0xb3d   : > { %3277 = vpow2.f32 %v1922_v52  ;;  %1925 = vadd.xlane.f32.xlu1 %v1924_v53 }
 0xb43   : > { %v3278_v54 = vpop.eup %3277 }
 0xb44   : > { %v1927_v55 = vsel %vm814_vm9, %v3278_v54, 0.0 }
 0xb45   : > { %1928 = vadd.xlane.f32.xlu2 %v1927_v55 }
 0xb4b   : > { %v1970_v56 = vpop.permute.xlu0 %1969 }
 0xb4c   : > { %3063 = vmatpush.xpose.msk.msrb.mxu1 %vm774_vm7, %v1970_v56 }
 0xb53   : > { %v1966_v6 = vpop.permute.xlu0 %1965 }
 0xb56   : > { %1967 = vrot.lane.b32.xlu1 %v1827_v31, %s3487_s18 }
 0xb5b   : > { %v2128_v9 = vpop.permute.xlu0 %2127 }
 0xb5d   : > { %1963 = vrot.lane.b32.xlu2 %v1804_v32, %s3487_s18 }
 0xb5e   : > { %2129 = vrot.lane.b32.xlu1 %v1830_v40, %s3489_s29 }
 0xb63   : > { %v2259_v12 = vpop.permute.xlu0 %2258 }
 0xb65   : > { %2123 = vrot.lane.b32.xlu2 %v1804_v32, %s3489_s29 }
 0xb66   : > { %2260 = vrot.lane.b32.xlu1 %v1830_v40, %s3488_s26 }
 0xb6b   : > { %v2257_v23 = vpop.permute.xlu0 %2256 }
 0xb6d   : > { %2125 = vrot.lane.b32.xlu2 %v1807_v16, %s3489_s29 }
 0xb6e   : > { %2254 = vrot.lane.b32.xlu1 %v1804_v32, %s3488_s26 }
 0xbb0   : > { %v1926_v57 = vpop.xlane.xlu1 %1925 }
 0xbb1   : > { %3279 = vrcp.f32 %v1926_v57 }
 0xbb7   : > { %v3280_v63 = vpop.eup %3279 }
 0xbb8   : > { %v1932_v2 = vmul.f32 %v3280_v63, %v3276_v36  ;;  %v1929_v3 = vpop.xlane.xlu2 %1928 }
 0xbb9   : > { %3281 = vrcp.f32 %v1929_v3 }
 0xbba   : > { %3061 = vmatmul.msk.f32.vlgmr.msra.gmra.mxu0 %vm814_vm9, %v1932_v2 }
 0xbbf   : > { %v3282_v43 = vpop.eup %3281 }
 0xbc0   : > { %v1933_v5 = vmul.f32 %v3282_v43, %v3278_v54  ;;  %v1964_v24 = vpop.permute.xlu2 %1963 }
 0xbc2   : > { %3062 = vmatmul.msk.f32.gmra.mxu0 %vm814_vm9, %v1933_v5 }
 0xbc8   : > { %v1968_v7 = vpop.permute.xlu1 %1967  ;;  %v2124_v11 = vpop.permute.xlu2 %2123 }
 0xbc9   : > { %3064 = vmatpush.xpose.msk.msrb.mxu1 %vm774_vm7, %v1968_v7 }
 0xbcc   : > { %3065 = vmatmul.msk.f32.vlgmr.msrb.gmra.mxu1 %vm774_vm7, %v1964_v24 }
 0xbd0   : > { %v2130_v8 = vpop.permute.xlu1 %2129  ;;  %v2126_v13 = vpop.permute.xlu2 %2125 }
 0xbd1   : > { %3073 = vmatpush.xpose.msk.msra.mxu1 %vm774_vm7, %v2130_v8 }
 0xbd4   : > { %3066 = vmatmul.msk.f32.gmra.mxu1 %vm774_vm7, %v1966_v6 }
 0xbd5   : > { %3074 = vmatpush.xpose.msk.msra.mxu1 %vm774_vm7, %v2128_v9 }
 0xbd8   : > { %v2261_v10 = vpop.permute.xlu1 %2260 }
 0xbd9   : > { %3081 = vmatpush.xpose.msk.msra.mxu0 %vm774_vm7, %v2261_v10 }
 0xbdc   : > { %3075 = vmatmul.msk.f32.vlgmr.msra.gmra.mxu1 %vm774_vm7, %v2124_v11 }
 0xbdd   : > { %3082 = vmatpush.xpose.msk.msra.mxu0 %vm774_vm7, %v2259_v12 }
 0xbe0   : > { %v2255_v19 = vpop.permute.xlu1 %2254 }
 0xbe4   : > { %3076 = vmatmul.msk.f32.gmra.mxu1 %vm774_vm7, %v2126_v13 }
 0xc37   : > { %v1957_v15 = vpop.f32.mrf.mxu0 }
 0xc38   : > { %3071 = vmatmul.msk.f32.vlgmr.msrb.gmra.mxu0 %vm774_vm7, %v1957_v15 }
 0xc3f   : > { %v1960_v18 = vpop.f32.mrf.mxu0 }
 0xc40   : > { %3072 = vmatmul.msk.f32.gmra.mxu0 %vm774_vm7, %v1960_v18 }
 0xc48   : > { %3083 = vmatmul.msk.f32.vlgmr.msra.gmra.mxu0 %vm774_vm7, %v2255_v19 }
 0xc49   : > { %v1996_v20 = vpop.f32.mrf.mxu1 }
 0xc4a   : > { %v2002_v35 = vmul.f32 0.17677669, %v1996_v20 }
 0xc4c   : > { %v2004_v21 = vsel %vm3716_vm8, %v2002_v35, -inf }
 0xc4d   : > { %v2006_v22 = vsel %vm814_vm9, %v2004_v21, -inf }
 0xc4e   : > { %2007 = vmax.xlane.f32.xlu2 %v2006_v22 }
 0xc50   : > { %3084 = vmatmul.msk.f32.gmra.mxu0 %vm774_vm7, %v2257_v23 }
 0xc51   : > { %v1999_v25 = vpop.f32.mrf.mxu1 }
 0xc52   : > { %v2003_v26 = vmul.f32 0.17677669, %v1999_v25 }
 0xc54   : > { %v2005_v27 = vsel %vm3723_vm10, %v2003_v26, -inf }
 0xc55   : > { %v2009_v39 = vsel %vm814_vm9, %v2005_v27, -inf }
 0xc56   : > { %2010 = vmax.xlane.f32.xlu1 %v2009_v39 }
 0xc59   : > { %v2156_v29 = vpop.f32.mrf.mxu1 }
 0xc5a   : > { %v2162_v30 = vmul.f32 0.17677669, %v2156_v29 }
 0xc5c   : > { %v2164_v28 = vsel %vm3716_vm8, %v2162_v30, -inf }
 0xc5d   : > { %v2166_v31 = vsel %vm814_vm9, %v2164_v28, -inf }
 0xc5e   : > { %2167 = vmax.xlane.f32.xlu0 %v2166_v31 }
 0xc61   : > { %v2159_v40 = vpop.f32.mrf.mxu1 }
 0xc62   : > { %v2163_v32 = vmul.f32 0.17677669, %v2159_v40 }
 0xc64   : > { %v2165_v16 = vsel %vm3723_vm10, %v2163_v32, -inf }
 0xc65   : > { %v2169_v33 = vsel %vm814_vm9, %v2165_v16, -inf }
 0xc66   : > { %2170 = vmax.xlane.f32.xlu2 %v2169_v33 }
 0xcb5   : > { %v4027_v1 = vpop.f32.mrf.mxu0 }
 0xcbd   : > { %v4029_v34 = vpop.f32.mrf.mxu0 }
 0xcc1   : > { %v2008_v37 = vpop.xlane.xlu2 %2007 }
 0xcc2   : > { %v2012_v38 = vsub.f32 %v2004_v21, %v2008_v37 }
 0xcc4   : > { %v2014_v41 = vmul.f32 1.442695, %v2012_v38  ;;  %v3048_v38 = vld [vmem:[%s4260_s4 + $0xb8] sm:$0xff] }
 0xcc5   : > { %v2287_v44 = vpop.f32.mrf.mxu0  ;;  %2083 = vmatpush.msrb.mxu3 %v3048_v38  ;;  %v2499_v38 = vld [vmem:[#allocation5 + $0x390] sm:$0xff] }
 0xcc6   : > { %3283 = vpow2.f32 %v2014_v41  ;;  %v2293_v45 = vmul.f32 0.17677669, %v2287_v44  ;;  %v3047_v41 = vld [vmem:[%s4260_s4 + $0xb0] sm:$0xff]  ;;  %v3046_v44 = vld [vmem:[%s4260_s4 + $0xa8] sm:$0xff] }
 0xcc7   : > { %2084 = vmatpush.msrb.mxu3 %v3047_v41  ;;  %v2500_v41 = vld [vmem:[#allocation5 + $0x398] sm:$0xff] }
 0xcc8   : > { %v2295_v46 = vsel %vm3716_vm8, %v2293_v45, -inf }
 0xcc9   : > { %v2011_v47 = vpop.xlane.xlu1 %2010  ;;  %v2297_v48 = vsel %vm814_vm9, %v2295_v46, -inf  ;;  %2085 = vmatpush.msrb.mxu3 %v3046_v44  ;;  %v2493_v44 = vld [vmem:[#allocation5 + $0x360] sm:$0xff] }
 0xcca   : > { %v2013_v50 = vsub.f32 %v2005_v27, %v2011_v47  ;;  %2298 = vmax.xlane.f32.xlu1 %v2297_v48 }
 0xccc   : > { %v3284_v51 = vpop.eup %3283  ;;  %v2016_v36 = vmul.f32 1.442695, %v2013_v50 }
 0xccd   : > { %v2290_v52 = vpop.f32.mrf.mxu0  ;;  %v2018_v53 = vsel %vm814_vm9, %v3284_v51, 0.0 }
 0xcce   : > { %v2294_v54 = vmul.f32 0.17677669, %v2290_v52  ;;  %2019 = vadd.xlane.f32.xlu2 %v2018_v53  ;;  %3285 = vpow2.f32 %v2016_v36  ;;  %v3051_v36 = vld [vmem:[%s4260_s4 + $0xd0] sm:$0xff]  ;;  %v3050_v52 = vld [vmem:[%s4260_s4 + $0xc8] sm:$0xff] }
 0xcd0   : > { %v2296_v55 = vsel %vm3723_vm10, %v2294_v54, -inf }
 0xcd1   : > { %v2168_v56 = vpop.xlane.xlu0 %2167  ;;  %v2300_v42 = vsel %vm814_vm9, %v2296_v55, -inf }
 0xcd2   : > { %v2172_v57 = vsub.f32 %v2164_v28, %v2168_v56  ;;  %2301 = vmax.xlane.f32.xlu0 %v2300_v42  ;;  %v3056_v56 = vld [vmem:[%s4260_s4 + $0xf8] sm:$0xff]  ;;  %v3055_v42 = vld [vmem:[%s4260_s4 + $0xf0] sm:$0xff] }
 0xcd4   : > { %v2174_v58 = vmul.f32 1.442695, %v2172_v57  ;;  %v3286_v59 = vpop.eup %3285  ;;  %v3054_v57 = vld [vmem:[%s4260_s4 + $0xe8] sm:$0xff] }
 0xcd5   : > { %v2021_v62 = vsel %vm814_vm9, %v3286_v59, 0.0 }
 0xcd6   : > { %3287 = vpow2.f32 %v2174_v58 }
 0xcd9   : > { %v2171_v61 = vpop.xlane.xlu2 %2170 }
 0xcda   : > { %v2173_v63 = vsub.f32 %v2165_v16, %v2171_v61  ;;  %2022 = vadd.xlane.f32.xlu0 %v2021_v62 }
 0xcdc   : > { %v3288_v2 = vpop.eup %3287  ;;  %v2176_v3 = vmul.f32 1.442695, %v2173_v63  ;;  %v3053_v63 = vld [vmem:[%s4260_s4 + $0xe0] sm:$0xff] }
 0xcdd   : > { %v2178_v43 = vsel %vm814_vm9, %v3288_v2, 0.0 }
 0xcde   : > { %3289 = vpow2.f32 %v2176_v3  ;;  %2179 = vadd.xlane.f32.xlu2 %v2178_v43 }
 0xce3   : > { %3200 = vrot.lane.b32.xlu1 %v3199_v49, %s3487_s18  ;;  %s3004_s18 = sshll.u32 %s563_s16, 4 }
 0xce4   : > { %v3290_v5 = vpop.eup %3289  ;;  %s565_s30 = scalar_lea.vmem [#allocation8], %s3004_s18  ;;  %s3425_s18 = scalar_lea.hbm %s4310_s19, 32 }
 0xce5   : > { %v2181_v6 = vsel %vm814_vm9, %v3290_v5, 0.0  ;;  %s2898_s28 = sshll.u32 %s565_s30, 4  ;;  %p3427_p4 = scmp.lt.s32.totalorder %s3425_s18, %s3421_s3  ;;  %s2899_s28 = int_to_ptr.vmem [resolvable:$true] %s2898_s28 }
 0xce6   : > { %2182 = vadd.xlane.f32.xlu2 %v2181_v6 }
 0xce7   : > { %p3428_p7 = por %p3427_p4, %p3426_p3 }
 0xce9   : > { %p3429_p8 = pnand %p3428_p7, %p3424_p2 }
 0xceb   : > { %3210 = vrot.lane.b32.xlu1 %v3199_v49, %s3488_s26 }
 0xcee   : > { %3205 = vrot.lane.b32.xlu0 %v3199_v49, %s3489_s29 }
 0xd3d   : > { %v2299_v7 = vpop.xlane.xlu1 %2298 }
 0xd3e   : > { %v2303_v24 = vsub.f32 %v2295_v46, %v2299_v7  ;;  %v3045_v46 = vld [vmem:[%s4260_s4 + $0xa0] sm:$0xff] }
 0xd3f   : > { %2086 = vmatpush.msrb.mxu3 %v3045_v46  ;;  %v2495_v46 = vld [vmem:[#allocation5 + $0x370] sm:$0xff] }
 0xd40   : > { %v2305_v8 = vmul.f32 1.442695, %v2303_v24 }
 0xd41   : > { %v2020_v17 = vpop.xlane.xlu2 %2019 }
 0xd42   : > { %3291 = vpow2.f32 %v2305_v8 }
 0xd45   : > { %v2302_v9 = vpop.xlane.xlu0 %2301 }
 0xd46   : > { %v2304_v10 = vsub.f32 %v2296_v55, %v2302_v9  ;;  %v3049_v55 = vld [vmem:[%s4260_s4 + $0xc0] sm:$0xff] }
 0xd47   : > { %v3222_v9 = vld [vmem:[%s4261_s5 + $0x1] ss:$0 sm:$0xff] }
 0xd48   : > { %v3292_v11 = vpop.eup %3291  ;;  %v2307_v12 = vmul.f32 1.442695, %v2304_v10 }
 0xd49   : > { %v2309_v0 = vsel %vm814_vm9, %v3292_v11, 0.0 }
 0xd4a   : > { %3293 = vpow2.f32 %v2307_v12  ;;  %2310 = vadd.xlane.f32.xlu2 %v2309_v0 }
 0xd4b   : > { %3295 = vrcp.f32 %v2020_v17 }
 0xd4d   : > { %v2023_v18 = vpop.xlane.xlu0 %2022 }
 0xd4e   : > { %3297 = vrcp.f32 %v2023_v18 }
 0xd50   : > { %v3294_v13 = vpop.eup %3293 }
 0xd51   : > { %v2312_v15 = vsel %vm814_vm9, %v3294_v13, 0.0  ;;  %v3296_v20 = vpop.eup %3295  ;;  %v2180_v23 = vpop.xlane.xlu2 %2179 }
 0xd52   : > { %2313 = vadd.xlane.f32.xlu2 %v2312_v15  ;;  %v2026_v22 = vmul.f32 %v3296_v20, %v3284_v51  ;;  %3299 = vrcp.f32 %v2180_v23  ;;  %v3052_v51 = vld [vmem:[%s4260_s4 + $0xd8] sm:$0xff]  ;;  %v2510_v20 = vld [vmem:[#allocation5 + $0x3e8] sm:$0xff] }
 0xd53   : > { %2241 = vmatpush.msra.mxu3 %v3052_v51  ;;  %2547 = vmatpush.msrb.mxu0 %v2510_v20  ;;  %v2508_v23 = vld [vmem:[#allocation5 + $0x3d8] sm:$0xff]  ;;  %v2491_v51 = vld [vmem:[#allocation5 + $0x350] sm:$0xff] }
 0xd54   : > { %v3298_v26 = vpop.eup %3297  ;;  %v2459_v20 = vld [vmem:[#allocation5 + $0x250] sm:$0xff] }
 0xd55   : > { %v3201_v19 = vpop.permute.xlu1 %3200  ;;  %v2027_v28 = vmul.f32 %v3298_v26, %v3286_v59  ;;  %2242 = vmatpush.msra.mxu3 %v3051_v36  ;;  %v2492_v36 = vld [vmem:[#allocation5 + $0x358] sm:$0xff] }
 0xd56   : > { %v3202_v35 = vunpack.i.l.bf16 %v3201_v19  ;;  %v3203_v21 = vunpack.i.h.bf16 %v3201_v19  ;;  %v2509_v19 = vld [vmem:[#allocation5 + $0x3e0] sm:$0xff] }
 0xd57   : > { %2243 = vmatpush.msra.mxu3 %v3050_v52  ;;  %v2485_v52 = vld [vmem:[#allocation5 + $0x320] sm:$0xff] }
 0xd58   : > { %2056 = vmatpush.msra.mxu2 %v3202_v35  ;;  %v3300_v32 = vpop.eup %3299  ;;  %v2511_v35 = vld [vmem:[#allocation5 + $0x3f0] sm:$0xff] }
 0xd59   : > { %v2183_v40 = vpop.xlane.xlu2 %2182  ;;  %v2186_v16 = vmul.f32 %v3300_v32, %v3288_v2  ;;  %2244 = vmatpush.msra.mxu3 %v3049_v55  ;;  %v2503_v32 = vld [vmem:[#allocation5 + $0x3b0] sm:$0xff]  ;;  %v2488_v55 = vld [vmem:[#allocation5 + $0x338] sm:$0xff] }
 0xd5a   : > { %2057 = vmatpush.msra.mxu2 %v3203_v21  ;;  %3301 = vrcp.f32 %v2183_v40  ;;  %v2506_v21 = vld [vmem:[#allocation5 + $0x3c8] sm:$0xff] }
 0xd5b   : > { %3067 = vmatmul.msk.f32.vlgmr.msra.gmra.mxu2 %vm814_vm9, %v2026_v22  ;;  %v2507_v22 = vld [vmem:[#allocation5 + $0x3d0] sm:$0xff]  ;;  %2548 = vmatpush.msrb.mxu0 %v2506_v21  ;;  %v2502_v40 = vld [vmem:[#allocation5 + $0x3a8] sm:$0xff] }
 0xd5c   : > { %v2455_v21 = vld [vmem:[#allocation5 + $0x230] sm:$0xff] }
 0xd5d   : > { %v3211_v25 = vpop.permute.xlu1 %3210  ;;  %2549 = vmatpush.msrb.mxu0 %v2502_v40  ;;  %v2672_v40 = vld [vmem:[#allocation7 + $0x378] sm:$0xff] }
 0xd5e   : > { %v3212_v27 = vunpack.i.l.bf16 %v3211_v25  ;;  %v3213_v39 = vunpack.i.h.bf16 %v3211_v25 }
 0xd60   : > { %2345 = vmatpush.msrb.mxu1 %v3212_v27  ;;  %v3206_v29 = vpop.permute.xlu0 %3205  ;;  %v3302_v33 = vpop.eup %3301 }
 0xd61   : > { %v3207_v30 = vunpack.i.l.bf16 %v3206_v29  ;;  %v3208_v31 = vunpack.i.h.bf16 %v3206_v29  ;;  %v2187_v37 = vmul.f32 %v3302_v33, %v3290_v5  ;;  %v2497_v33 = vld [vmem:[#allocation5 + $0x380] sm:$0xff] }
 0xd62   : > { %2346 = vmatpush.msrb.mxu1 %v3213_v39 }
 0xd63   : > { %3068 = vmatmul.msk.f32.gmra.mxu2 %vm814_vm9, %v2027_v28 }
 0xd64   : > { %2214 = vmatpush.msrb.mxu2 %v3207_v30  ;;  %2570 = vmatpush.msra.mxu1 %v2511_v35  ;;  %v2460_v35 = vld [vmem:[#allocation5 + $0x258] sm:$0xff] }
 0xd66   : > { %2215 = vmatpush.msrb.mxu2 %v3208_v31  ;;  %2571 = vmatpush.msra.mxu1 %v2507_v22  ;;  %v2501_v31 = vld [vmem:[#allocation5 + $0x3a0] sm:$0xff]  ;;  %v2456_v22 = vld [vmem:[#allocation5 + $0x238] sm:$0xff] }
 0xd68   : > { %2372 = vmatpush.msra.mxu2 %v3056_v56  ;;  %2572 = vmatpush.msra.mxu1 %v2503_v32  ;;  %v2481_v56 = vld [vmem:[#allocation5 + $0x300] sm:$0xff]  ;;  %v2655_v32 = vld [vmem:[#allocation7 + $0x2f0] sm:$0xff] }
 0xd6a   : > { %2373 = vmatpush.msra.mxu2 %v3055_v42  ;;  %2573 = vmatpush.msra.mxu1 %v2499_v38  ;;  %v2482_v42 = vld [vmem:[#allocation5 + $0x308] sm:$0xff] }
 0xd6b   : > { %3077 = vmatmul.msk.f32.vlgmr.msrb.gmra.mxu2 %vm814_vm9, %v2186_v16  ;;  %v2504_v16 = vld [vmem:[#allocation5 + $0x3b8] sm:$0xff]  ;;  %v2670_v38 = vld [vmem:[#allocation7 + $0x368] sm:$0xff] }
 0xd6c   : > { %2374 = vmatpush.msra.mxu2 %v3054_v57  ;;  %2574 = vmatpush.msra.mxu1 %v2495_v46  ;;  %v2483_v57 = vld [vmem:[#allocation5 + $0x310] sm:$0xff] }
 0xd6d   : > { %v2639_v46 = vld [vmem:[#allocation7 + $0x270] sm:$0xff] }
 0xd6e   : > { %2375 = vmatpush.msra.mxu2 %v3053_v63  ;;  %2575 = vmatpush.msra.mxu1 %v2491_v51  ;;  %v2480_v63 = vld [vmem:[#allocation5 + $0x2f8] sm:$0xff] }
 0xd73   : > { %3078 = vmatmul.msk.f32.gmra.mxu2 %vm814_vm9, %v2187_v37  ;;  %v2498_v37 = vld [vmem:[#allocation5 + $0x388] sm:$0xff] }
 0xd74   : > { %2550 = vmatpush.msrb.mxu0 %v2498_v37  ;;  %v2654_v37 = vld [vmem:[#allocation7 + $0x2e8] sm:$0xff] }
 0xdbd   : > { %v2311_v45 = vpop.xlane.xlu2 %2310 }
 0xdbe   : > { %3303 = vrcp.f32 %v2311_v45  ;;  %v2494_v45 = vld [vmem:[#allocation5 + $0x368] sm:$0xff] }
 0xdbf   : > { %2551 = vmatpush.msrb.mxu0 %v2494_v45  ;;  %v2688_v45 = vld [vmem:[#allocation7 + $0x3f8] sm:$0xff] }
 0xdc4   : > { %v3304_v47 = vpop.eup %3303 }
 0xdc5   : > { %v2317_v48 = vmul.f32 %v3304_v47, %v3292_v11  ;;  %v2314_v50 = vpop.xlane.xlu2 %2313  ;;  %v2496_v47 = vld [vmem:[#allocation5 + $0x378] sm:$0xff] }
 0xdc6   : > { %3305 = vrcp.f32 %v2314_v50  ;;  %v2490_v50 = vld [vmem:[#allocation5 + $0x348] sm:$0xff] }
 0xdc7   : > { %3085 = vmatmul.msk.f32.vlgmr.msrb.gmra.mxu1 %vm814_vm9, %v2317_v48  ;;  %v2489_v48 = vld [vmem:[#allocation5 + $0x340] sm:$0xff]  ;;  %2552 = vmatpush.msrb.mxu0 %v2490_v50  ;;  %v2687_v50 = vld [vmem:[#allocation7 + $0x3f0] sm:$0xff] }
 0xdcc   : > { %v3306_v53 = vpop.eup %3305 }
 0xdcd   : > { %v2318_v54 = vmul.f32 %v3306_v53, %v3294_v13  ;;  %v2486_v53 = vld [vmem:[#allocation5 + $0x328] sm:$0xff] }
 0xdce   : > { %2553 = vmatpush.msrb.mxu0 %v2486_v53  ;;  %v2686_v53 = vld [vmem:[#allocation7 + $0x3e8] sm:$0xff] }
 0xdcf   : > { %3086 = vmatmul.msk.f32.gmra.mxu1 %vm814_vm9, %v2318_v54  ;;  %v2487_v54 = vld [vmem:[#allocation5 + $0x330] sm:$0xff] }
 0xdd0   : > { %2576 = vmatpush.msra.mxu1 %v2487_v54  ;;  %2554 = vmatpush.msrb.mxu0 %v2482_v42  ;;  %v2637_v42 = vld [vmem:[#allocation7 + $0x260] sm:$0xff] }
 0xdd2   : > { %2577 = vmatpush.msra.mxu1 %v2483_v57  ;;  %v2685_v57 = vld [vmem:[#allocation7 + $0x3e0] sm:$0xff] }
 0xdde   : > { %v2059_v58 = vpop.f32.mrf.mxu2 }
 0xddf   : > { %3069 = vmatmul.msk.f32.vlgmr.msrb.gmra.mxu3 %vm774_vm7, %v2059_v58  ;;  %v2484_v58 = vld [vmem:[#allocation5 + $0x318] sm:$0xff] }
 0xde0   : > { %2524 = vmatpush.msrb.mxu3 %v2509_v19  ;;  %v2458_v19 = vld [vmem:[#allocation5 + $0x248] sm:$0xff] }
 0xde6   : > { %v2062_v59 = vpop.f32.mrf.mxu2 }
 0xde7   : > { %3070 = vmatmul.msk.f32.gmra.mxu3 %vm774_vm7, %v2062_v59  ;;  %v2477_v59 = vld [vmem:[#allocation5 + $0x2e0] sm:$0xff] }
 0xdee   : > { %v2217_v61 = vpop.f32.mrf.mxu2 }
 0xdef   : > { %3079 = vmatmul.msk.f32.vlgmr.msra.gmra.mxu3 %vm774_vm7, %v2217_v61  ;;  %v2478_v61 = vld [vmem:[#allocation5 + $0x2e8] sm:$0xff] }
 0xdf0   : > { %2555 = vmatpush.msrb.mxu0 %v2478_v61  ;;  %v2667_v61 = vld [vmem:[#allocation7 + $0x350] sm:$0xff] }
 0xdf6   : > { %v2220_v62 = vpop.f32.mrf.mxu2 }
 0xdf7   : > { %3080 = vmatmul.msk.f32.gmra.mxu3 %vm774_vm7, %v2220_v62  ;;  %v2479_v62 = vld [vmem:[#allocation5 + $0x2f0] sm:$0xff] }
 0xdf8   : > { %2578 = vmatpush.msra.mxu1 %v2479_v62  ;;  %v2636_v62 = vld [vmem:[#allocation7 + $0x258] sm:$0xff] }
 0xe44   : > { %v2348_v2 = vpop.f32.mrf.mxu1 }
 0xe45   : > { %3087 = vmatmul.msk.f32.vlgmr.msra.gmra.mxu2 %vm774_vm7, %v2348_v2  ;;  %v2473_v2 = vld [vmem:[#allocation5 + $0x2c0] sm:$0xff] }
 0xe4c   : > { %v2351_v3 = vpop.f32.mrf.mxu1 }
 0xe4d   : > { %3088 = vmatmul.msk.f32.gmra.mxu2 %vm774_vm7, %v2351_v3  ;;  %v2474_v3 = vld [vmem:[#allocation5 + $0x2c8] sm:$0xff] }
 0xe4e   : > { %2556 = vmatpush.msrb.mxu0 %v2474_v3  ;;  %v2650_v3 = vld [vmem:[#allocation7 + $0x2c8] sm:$0xff] }
 0xe62   : > { %v2088_v43 = vpop.f32.mrf.mxu3 }
 0xe63   : > { %v2118_v6 = vadd.f32 %v4027_v1, %v2088_v43  ;;  %v2475_v43 = vld [vmem:[#allocation5 + $0x2d0] sm:$0xff] }
 0xe64   : > { %2579 = vmatpush.msra.mxu1 %v2475_v43  ;;  %v2666_v43 = vld [vmem:[#allocation7 + $0x348] sm:$0xff] }
 0xe6a   : > { %v2091_v49 = vpop.f32.mrf.mxu3 }
 0xe6b   : > { %v2121_v12 = vadd.f32 %v4029_v34, %v2091_v49  ;;  %v2505_v34 = vld [vmem:[#allocation5 + $0x3c0] sm:$0xff]  ;;  %v2476_v49 = vld [vmem:[#allocation5 + $0x2d8] sm:$0xff] }
 0xe6c   : > { %2525 = vmatpush.msrb.mxu3 %v2505_v34  ;;  %v2454_v34 = vld [vmem:[#allocation5 + $0x228] sm:$0xff] }
 0xe6e   : > { %2526 = vmatpush.msrb.mxu3 %v2501_v31  ;;  %v2656_v31 = vld [vmem:[#allocation7 + $0x2f8] sm:$0xff] }
 0xe70   : > { %2527 = vmatpush.msrb.mxu3 %v2497_v33 }
 0xe72   : > { %v2246_v5 = vpop.f32.mrf.mxu3  ;;  %2528 = vmatpush.msrb.mxu3 %v2493_v44 }
 0xe73   : > { %v2252_v7 = vadd.f32 %v2246_v5, %v2118_v6  ;;  %v2469_v5 = vld [vmem:[#allocation5 + $0x2a0] sm:$0xff]  ;;  %v2470_v6 = vld [vmem:[#allocation5 + $0x2a8] sm:$0xff] }
 0xe74   : > { %2529 = vmatpush.msrb.mxu3 %v2489_v48  ;;  %2557 = vmatpush.msrb.mxu0 %v2470_v6  ;;  %v2669_v48 = vld [vmem:[#allocation7 + $0x360] sm:$0xff] }
 0xe76   : > { %2530 = vmatpush.msrb.mxu3 %v2485_v52  ;;  %v2638_v52 = vld [vmem:[#allocation7 + $0x268] sm:$0xff] }
 0xe78   : > { %2531 = vmatpush.msrb.mxu3 %v2481_v56  ;;  %v2668_v56 = vld [vmem:[#allocation7 + $0x358] sm:$0xff] }
 0xe7a   : > { %v2249_v11 = vpop.f32.mrf.mxu3  ;;  %2532 = vmatpush.msrb.mxu3 %v2477_v59  ;;  %v2651_v59 = vld [vmem:[#allocation7 + $0x2d0] sm:$0xff] }
 0xe7b   : > { %v2253_v17 = vadd.f32 %v2249_v11, %v2121_v12  ;;  %v2468_v11 = vld [vmem:[#allocation5 + $0x298] sm:$0xff]  ;;  %v2461_v12 = vld [vmem:[#allocation5 + $0x260] sm:$0xff] }
 0xe7c   : > { %2533 = vmatpush.msrb.mxu3 %v2473_v2 }
 0xe7e   : > { %2534 = vmatpush.msrb.mxu3 %v2469_v5  ;;  %v2683_v5 = vld [vmem:[#allocation7 + $0x3d0] sm:$0xff] }
 0xec8   : > { %v2377_v24 = vpop.f32.mrf.mxu2 }
 0xec9   : > { %v2383_v8 = vadd.f32 %v2377_v24, %v2252_v7  ;;  %v2471_v7 = vld [vmem:[#allocation5 + $0x2b0] sm:$0xff]  ;;  %v2472_v24 = vld [vmem:[#allocation5 + $0x2b8] sm:$0xff] }
 0xeca   : > { %2580 = vmatpush.msra.mxu1 %v2471_v7  ;;  %v2649_v7 = vld [vmem:[#allocation7 + $0x2c0] sm:$0xff] }
 0xecb   : > { %v2385_v10 = vadd.f32 %v2383_v8, %v3928_v60  ;;  %v2512_v60 = vld [vmem:[#allocation5 + $0x3f8] sm:$0xff]  ;;  %v2465_v8 = vld [vmem:[#allocation5 + $0x280] sm:$0xff] }
 0xecc   : > { %2593 = vmatpush.msrb.mxu2 %v2512_v60  ;;  %2535 = vmatpush.msrb.mxu3 %v2465_v8  ;;  %v2453_v60 = vld [vmem:[#allocation5 + $0x220] sm:$0xff] }
 0xecd   : > { %v4102_v0 = vadd.f32 %v3222_v9, %v2385_v10  ;;  %v2467_v10 = vld [vmem:[#allocation5 + $0x290] sm:$0xff] }
 0xece   : > { %2594 = vmatpush.msrb.mxu2 %v2508_v23  ;;  %2581 = vmatpush.msra.mxu1 %v2467_v10  ;;  %v2449_v23 = vld [vmem:[#allocation5 + $0x200] sm:$0xff]  ;;  %v2682_v10 = vld [vmem:[#allocation7 + $0x3c8] sm:$0xff] }
 0xecf   : > { %2398 = vadd.xlane.f32.xlu0 %v4102_v0  ;;  %2536 = vmatpush.msrb.mxu3 %v2461_v12 }
 0xed0   : > { %v2380_v13 = vpop.f32.mrf.mxu2  ;;  %2595 = vmatpush.msrb.mxu2 %v2504_v16  ;;  %v2671_v16 = vld [vmem:[#allocation7 + $0x370] sm:$0xff] }
 0xed1   : > { %v2384_v15 = vadd.f32 %v2380_v13, %v2253_v17  ;;  %v2462_v17 = vld [vmem:[#allocation5 + $0x268] sm:$0xff]  ;;  %v2463_v13 = vld [vmem:[#allocation5 + $0x270] sm:$0xff] }
 0xed2   : > { %2596 = vmatpush.msrb.mxu2 %v2500_v41  ;;  %2582 = vmatpush.msra.mxu1 %v2463_v13  ;;  %v2640_v41 = vld [vmem:[#allocation7 + $0x278] sm:$0xff] }
 0xed3   : > { %v2386_v1 = vadd.f32 %v2384_v15, %v3932_v4  ;;  %v2464_v15 = vld [vmem:[#allocation5 + $0x278] sm:$0xff] }
 0xed4   : > { %2597 = vmatpush.msrb.mxu2 %v2496_v47  ;;  %2583 = vmatpush.msra.mxu1 %v2459_v20  ;;  %v2653_v47 = vld [vmem:[#allocation7 + $0x2e0] sm:$0xff]  ;;  %v2648_v13 = vld [vmem:[#allocation7 + $0x2b8] sm:$0xff] }
 0xed5   : > { %v4106_v18 = vadd.f32 %v3222_v9, %v2386_v1  ;;  %v2466_v9 = vld [vmem:[#allocation5 + $0x288] sm:$0xff]  ;;  %v2457_v1 = vld [vmem:[#allocation5 + $0x240] sm:$0xff] }
 0xed6   : > { %2598 = vmatpush.msrb.mxu2 %v2492_v36  ;;  %2558 = vmatpush.msrb.mxu0 %v2466_v9  ;;  %v2634_v9 = vld [vmem:[#allocation7 + $0x248] sm:$0xff] }
 0xed7   : > { %2400 = vadd.xlane.f32.xlu1 %v4106_v18  ;;  %2537 = vmatpush.msrb.mxu3 %v2457_v1  ;;  %v2633_v1 = vld [vmem:[#allocation7 + $0x240] sm:$0xff] }
 0xed8   : > { %2599 = vmatpush.msrb.mxu2 %v2488_v55  ;;  %2559 = vmatpush.msrb.mxu0 %v2462_v17  ;;  %v2652_v55 = vld [vmem:[#allocation7 + $0x2d8] sm:$0xff]  ;;  %v3223_v17 = vld [vmem:[%s4262_s6 + $0x1] ss:$0 sm:$0xff] }
 0xed9   : > { %2538 = vmatpush.msrb.mxu3 %v2453_v60  ;;  %2584 = vmatpush.msra.mxu1 %v2455_v21  ;;  %v2647_v60 = vld [vmem:[#allocation7 + $0x2b0] sm:$0xff] }
 0xeda   : > { %2600 = vmatpush.msrb.mxu2 %v2484_v58  ;;  %2560 = vmatpush.msrb.mxu0 %v2458_v19  ;;  %v2681_v19 = vld [vmem:[#allocation7 + $0x3c0] sm:$0xff] }
 0xedb   : > { %2539 = vmatpush.msrb.mxu3 %v2449_v23  ;;  %v2632_v23 = vld [vmem:[#allocation7 + $0x238] sm:$0xff] }
 0xedc   : > { %2601 = vmatpush.msrb.mxu2 %v2480_v63  ;;  %2561 = vmatpush.msrb.mxu0 %v2454_v34  ;;  %v2684_v63 = vld [vmem:[#allocation7 + $0x3d8] sm:$0xff]  ;;  %v2663_v34 = vld [vmem:[#allocation7 + $0x330] sm:$0xff] }
 0xedd   : > { %2694 = vmatpush.msra.mxu3 %v2640_v41  ;;  %v2660_v41 = vld [vmem:[#allocation7 + $0x318] sm:$0xff] }
 0xede   : > { %2602 = vmatpush.msrb.mxu2 %v2476_v49  ;;  %v2635_v49 = vld [vmem:[#allocation7 + $0x250] sm:$0xff] }
 0xedf   : > { %2695 = vmatpush.msra.mxu3 %v2639_v46 }
 0xee0   : > { %2603 = vmatpush.msrb.mxu2 %v2472_v24  ;;  %v2665_v24 = vld [vmem:[#allocation7 + $0x340] sm:$0xff] }
 0xee1   : > { %2696 = vmatpush.msra.mxu3 %v2638_v52  ;;  %v2658_v52 = vld [vmem:[#allocation7 + $0x308] sm:$0xff] }
 0xee2   : > { %2604 = vmatpush.msrb.mxu2 %v2468_v11 }
 0xee3   : > { %2697 = vmatpush.msra.mxu3 %v2637_v42  ;;  %v2676_v42 = vld [vmem:[#allocation7 + $0x398] sm:$0xff] }
 0xee4   : > { %2605 = vmatpush.msrb.mxu2 %v2464_v15  ;;  %v2664_v15 = vld [vmem:[#allocation7 + $0x338] sm:$0xff] }
 0xee5   : > { %2698 = vmatpush.msra.mxu3 %v2636_v62  ;;  %v2625_v62 = vld [vmem:[#allocation7 + $0x200] sm:$0xff] }
 0xee6   : > { %2606 = vmatpush.msrb.mxu2 %v2460_v35 }
 0xee7   : > { %2699 = vmatpush.msra.mxu3 %v2635_v49 }
 0xee8   : > { %2607 = vmatpush.msrb.mxu2 %v2456_v22  ;;  %v3224_v22 = vld [vmem:[%s4263_s7 + $0x1] ss:$0 sm:$0xff] }
 0xee9   : > { %2700 = vmatpush.msra.mxu3 %v2634_v9 }
 0xeeb   : > { %2701 = vmatpush.msra.mxu3 %v2633_v1 }
 0xeed   : > { %2702 = vmatpush.msra.mxu3 %v2632_v23 }
 0xf42   : > { %v2399_v4 = vpop.xlane.xlu0 %2398 }
 0xf43   : > { %v2402_v25 = vmul.f32 %v2399_v4, %v3673_v14  ;;  %v2450_v4 = vld [vmem:[#allocation5 + $0x208] sm:$0xff] }
 0xf44   : > { %2562 = vmatpush.msrb.mxu0 %v2450_v4  ;;  %v2680_v4 = vld [vmem:[#allocation7 + $0x3b8] sm:$0xff] }
 0xf45   : > { %v4111_v26 = vsub.f32 %v4102_v0, %v2402_v25  ;;  %v2451_v25 = vld [vmem:[#allocation5 + $0x210] sm:$0xff] }
 0xf46   : > { %2585 = vmatpush.msra.mxu1 %v2451_v25  ;;  %2717 = vmatpush.msra.mxu0 %v2656_v31  ;;  %v2679_v31 = vld [vmem:[#allocation7 + $0x3b0] sm:$0xff] }
 0xf47   : > { %v2406_v27 = vmul.f32 %v4111_v26, %v4111_v26 }
 0xf48   : > { %2740 = vmatpush.msrb.mxu1 %v2672_v40  ;;  %2718 = vmatpush.msra.mxu0 %v2655_v32 }
 0xf49   : > { %2408 = vadd.xlane.f32.xlu2 %v2406_v27  ;;  %v2452_v27 = vld [vmem:[#allocation5 + $0x218] sm:$0xff] }
 0xf4a   : > { %v2401_v39 = vpop.xlane.xlu1 %2400  ;;  %2608 = vmatpush.msrb.mxu2 %v2452_v27  ;;  %2741 = vmatpush.msrb.mxu1 %v2671_v16  ;;  %v2646_v27 = vld [vmem:[#allocation7 + $0x2a8] sm:$0xff]  ;;  %v2645_v16 = vld [vmem:[#allocation7 + $0x2a0] sm:$0xff] }
 0xf4b   : > { %v2403_v29 = vmul.f32 %v2401_v39, %v3673_v14  ;;  %2719 = vmatpush.msra.mxu0 %v2654_v37 }
 0xf4c   : > { %2763 = vmatpush.msra.mxu2 %v2688_v45  ;;  %2742 = vmatpush.msrb.mxu1 %v2670_v38  ;;  %v2644_v38 = vld [vmem:[#allocation7 + $0x298] sm:$0xff] }
 0xf4d   : > { %v4117_v30 = vsub.f32 %v4106_v18, %v2403_v29  ;;  %2720 = vmatpush.msra.mxu0 %v2653_v47  ;;  %v2630_v47 = vld [vmem:[#allocation7 + $0x228] sm:$0xff] }
 0xf4e   : > { %2764 = vmatpush.msra.mxu2 %v2687_v50  ;;  %2743 = vmatpush.msrb.mxu1 %v2669_v48  ;;  %v2643_v48 = vld [vmem:[#allocation7 + $0x290] sm:$0xff] }
 0xf4f   : > { %v2407_v28 = vmul.f32 %v4117_v30, %v4117_v30  ;;  %2721 = vmatpush.msra.mxu0 %v2652_v55  ;;  %v2659_v50 = vld [vmem:[#allocation7 + $0x310] sm:$0xff]  ;;  %v2641_v55 = vld [vmem:[#allocation7 + $0x280] sm:$0xff] }
 0xf50   : > { %2765 = vmatpush.msra.mxu2 %v2686_v53  ;;  %2744 = vmatpush.msrb.mxu1 %v2668_v56  ;;  %v2677_v53 = vld [vmem:[#allocation7 + $0x3a0] sm:$0xff] }
 0xf51   : > { %2410 = vadd.xlane.f32.xlu2 %v2407_v28  ;;  %2722 = vmatpush.msra.mxu0 %v2651_v59  ;;  %v2657_v56 = vld [vmem:[#allocation7 + $0x300] sm:$0xff]  ;;  %v2626_v59 = vld [vmem:[#allocation7 + $0x208] sm:$0xff] }
 0xf52   : > { %2766 = vmatpush.msra.mxu2 %v2685_v57  ;;  %2745 = vmatpush.msrb.mxu1 %v2667_v61  ;;  %v2627_v57 = vld [vmem:[#allocation7 + $0x210] sm:$0xff]  ;;  %v2674_v61 = vld [vmem:[#allocation7 + $0x388] sm:$0xff] }
 0xf53   : > { %2723 = vmatpush.msra.mxu0 %v2650_v3 }
 0xf54   : > { %2767 = vmatpush.msra.mxu2 %v2684_v63  ;;  %2746 = vmatpush.msrb.mxu1 %v2666_v43  ;;  %v2673_v63 = vld [vmem:[#allocation7 + $0x380] sm:$0xff] }
 0xf55   : > { %2724 = vmatpush.msra.mxu0 %v2649_v7 }
 0xf56   : > { %2768 = vmatpush.msra.mxu2 %v2683_v5  ;;  %2747 = vmatpush.msrb.mxu1 %v2665_v24 }
 0xf57   : > { %2725 = vmatpush.msra.mxu0 %v2648_v13 }
 0xf58   : > { %2769 = vmatpush.msra.mxu2 %v2682_v10  ;;  %2748 = vmatpush.msrb.mxu1 %v2664_v15 }
 0xf59   : > { %2726 = vmatpush.msra.mxu0 %v2647_v60 }
 0xf5a   : > { %2770 = vmatpush.msra.mxu2 %v2681_v19  ;;  %2749 = vmatpush.msrb.mxu1 %v2663_v34 }
 0xf5b   : > { %2727 = vmatpush.msra.mxu0 %v2646_v27 }
 0xf5c   : > { %2771 = vmatpush.msra.mxu2 %v2680_v4 }
 0xf5d   : > { %2728 = vmatpush.msra.mxu0 %v2645_v16 }
 0xf5e   : > { %2772 = vmatpush.msra.mxu2 %v2679_v31 }
 0xf5f   : > { %2729 = vmatpush.msra.mxu0 %v2644_v38 }
 0xf61   : > { %2730 = vmatpush.msra.mxu0 %v2643_v48 }
 0xfbc   : > { %v2409_v39 = vpop.xlane.xlu2 %2408 }
 0xfbd   : > { %v2412_v29 = vmul.f32 %v2409_v39, %v3673_v14  ;;  %v2662_v39 = vld [vmem:[#allocation7 + $0x328] sm:$0xff] }
 0xfbe   : > { %2750 = vmatpush.msrb.mxu1 %v2662_v39 }
 0xfbf   : > { %v4122_v28 = vadd.f32 1e-05, %v2412_v29 }
 0xfc1   : > { %3307 = vrsqrt.f32 %v4122_v28  ;;  %vm2422_vm8 = vweird.f32 %v4122_v28 }
 0xfc4   : > { %v2411_v33 = vpop.xlane.xlu2 %2410 }
 0xfc5   : > { %v2413_v44 = vmul.f32 %v2411_v33, %v3673_v14  ;;  %v2661_v33 = vld [vmem:[#allocation7 + $0x320] sm:$0xff] }
 0xfc6   : > { %2751 = vmatpush.msrb.mxu1 %v2661_v33 }
 0xfc7   : > { %v4126_v51 = vpop.eup %3307  ;;  %v4128_v36 = vadd.f32 1e-05, %v2413_v44 }
 0xfc8   : > { %v2417_v54 = vmul.f32 %v4126_v51, %v4122_v28  ;;  %vm2423_vm7 = vweird.f32 %v4126_v51  ;;  %v2631_v28 = vld [vmem:[#allocation7 + $0x230] sm:$0xff]  ;;  %2752 = vmatpush.msrb.mxu1 %v2660_v41 }
 0xfc9   : > { %3309 = vrsqrt.f32 %v4128_v36  ;;  %vm2424_vm9 = vmor %vm2422_vm8, %vm2423_vm7  ;;  %vm2432_vm11 = vweird.f32 %v4128_v36  ;;  %2703 = vmatpush.msra.mxu3 %v2631_v28 }
 0xfca   : > { %v2418_v58 = vmul.f32 %v4126_v51, %v2417_v54  ;;  %2753 = vmatpush.msrb.mxu1 %v2659_v50  ;;  %v2628_v54 = vld [vmem:[#allocation7 + $0x218] sm:$0xff] }
 0xfcb   : > { %2704 = vmatpush.msra.mxu3 %v2630_v47 }
 0xfcc   : > { %v2419_v2 = vmul.f32 0.5, %v2418_v58  ;;  %2754 = vmatpush.msrb.mxu1 %v2658_v52  ;;  %v2675_v58 = vld [vmem:[#allocation7 + $0x390] sm:$0xff] }
 0xfcd   : > { %v2854_v52 = vld [vmem:[%s4270_s14 + $0x70] sm:$0xff] }
 0xfce   : > { %v2420_v6 = vsub.f32 1.5, %v2419_v2  ;;  %2755 = vmatpush.msrb.mxu1 %v2657_v56  ;;  %v3092_v2 = vld [vmem:[%s4265_s9 + $0x4] sm:$0xf] }
 0xfcf   : > { %v3310_v8 = vpop.eup %3309  ;;  %v2517_v3 = vperm.slane %v3092_v2, 1  ;;  %v2518_v43 = vperm.slane %v3092_v2, 2  ;;  %v2519_v10 = vperm.slane %v3092_v2, 3 }
 0xfd0   : > { %v2421_v11 = vmul.f32 %v4126_v51, %v2420_v6  ;;  %v2427_v12 = vmul.f32 %v3310_v8, %v4128_v36  ;;  %vm2433_vm10 = vweird.f32 %v3310_v8  ;;  %v2629_v36 = vld [vmem:[#allocation7 + $0x220] sm:$0xff] }
 0xfd1   : > { %vm2434_vm12 = vmor %vm2432_vm11, %vm2433_vm10  ;;  %2705 = vmatpush.msra.mxu3 %v2629_v36 }
 0xfd2   : > { %v2425_v20 = vsel %vm2424_vm9, %v4126_v51, %v2421_v11  ;;  %v2428_v35 = vmul.f32 %v3310_v8, %v2427_v12  ;;  %v2678_v51 = vld [vmem:[#allocation7 + $0x3a8] sm:$0xff] }
 0xfd3   : > { %v2436_v21 = vmul.f32 %v2425_v20, %v4111_v26  ;;  %2773 = vmatpush.msra.mxu2 %v2678_v51  ;;  %2706 = vmatpush.msra.mxu3 %v2628_v54 }
 0xfd4   : > { %v2429_v25 = vmul.f32 0.5, %v2428_v35 }
 0xfd5   : > { %v2441_v29 = vmul.f32 %v3223_v17, %v2436_v21  ;;  %2774 = vmatpush.msra.mxu2 %v2677_v53  ;;  %2707 = vmatpush.msra.mxu3 %v2627_v57 }
 0xfd6   : > { %v2430_v40 = vsub.f32 1.5, %v2429_v25 }
 0xfd7   : > { %v2446_v26 = vadd.f32 %v3224_v22, %v2441_v29  ;;  %2775 = vmatpush.msra.mxu2 %v2676_v42  ;;  %2708 = vmatpush.msra.mxu3 %v2626_v59  ;;  %v3225_v29 = vld [vmem:[%s4267_s11 + $0x1] ss:$0 sm:$0xff] }
 0xfd8   : > { %v2431_v32 = vmul.f32 %v3310_v8, %v2430_v40  ;;  %v2852_v59 = vld [vmem:[%s4270_s14 + $0x60] sm:$0xff] }
 0xfd9   : > { %2540 = vmatmul.f32.vlgmr.msrb.gmra.mxu3 %v2446_v26  ;;  %2563 = vmatmul.f32.vlgmr.msrb.gmra.mxu0 %v2446_v26 }
 0xfda   : > { %v2435_v37 = vsel %vm2434_vm12, %v3310_v8, %v2431_v32  ;;  %2586 = vmatmul.f32.vlgmr.msra.gmra.mxu1 %v2446_v26  ;;  %2609 = vmatmul.f32.vlgmr.msrb.gmra.mxu2 %v2446_v26  ;;  %v2516_v8 = vperm.slane %v3092_v2, 0  ;;  %v2848_v2 = vld [vmem:[%s4270_s14 + $0x40] sm:$0xff] }
 0xfdb   : > { %v2437_v44 = vmul.f32 %v2435_v37, %v4117_v30  ;;  %v2642_v30 = vld [vmem:[#allocation7 + $0x288] sm:$0xff]  ;;  %2776 = vmatpush.msra.mxu2 %v2675_v58  ;;  %2709 = vmatpush.msra.mxu3 %v2625_v62  ;;  %v2850_v62 = vld [vmem:[%s4270_s14 + $0x50] sm:$0xff] }
 0xfdc   : > { %2731 = vmatpush.msra.mxu0 %v2642_v30  ;;  %v2855_v30 = vld [vmem:[%s4270_s14 + $0x78] sm:$0xff]  ;;  %v2853_v58 = vld [vmem:[%s4270_s14 + $0x68] sm:$0xff] }
 0xfdd   : > { %v2442_v45 = vmul.f32 %v3223_v17, %v2437_v44  ;;  %2777 = vmatpush.msra.mxu2 %v2674_v61  ;;  %2860 = vmatpush.msrb.mxu3 %v2855_v30  ;;  %v2851_v61 = vld [vmem:[%s4270_s14 + $0x58] sm:$0xff] }
 0xfde   : > { %2732 = vmatpush.msra.mxu0 %v2641_v55 }
 0xfdf   : > { %v2447_v46 = vadd.f32 %v3224_v22, %v2442_v45  ;;  %2778 = vmatpush.msra.mxu2 %v2673_v63  ;;  %2861 = vmatpush.msrb.mxu3 %v2854_v52  ;;  %v2849_v63 = vld [vmem:[%s4270_s14 + $0x48] sm:$0xff] }
 0xfe1   : > { %2543 = vmatmul.f32.gmra.mxu3 %v2447_v46  ;;  %2566 = vmatmul.f32.gmra.mxu0 %v2447_v46 }
 0xfe2   : > { %2589 = vmatmul.f32.gmra.mxu1 %v2447_v46  ;;  %2612 = vmatmul.f32.gmra.mxu2 %v2447_v46 }
 0xfe3   : > { %2862 = vmatpush.msrb.mxu3 %v2853_v58 }
 0xfe5   : > { %2863 = vmatpush.msrb.mxu3 %v2852_v59 }
 0xfe7   : > { %2864 = vmatpush.msrb.mxu3 %v2851_v61 }
 0xfe9   : > { %2865 = vmatpush.msrb.mxu3 %v2850_v62 }
 0xfeb   : > { %2866 = vmatpush.msrb.mxu3 %v2849_v63 }
 0xfed   : > { %2867 = vmatpush.msrb.mxu3 %v2848_v2 }
0x1056   : > { %v2564_v49 = vpop.f32.mrf.mxu0 }
0x1057   : > { %v2565_v5 = vadd.f32 %v2564_v49, %v2517_v3  ;;  %v2587_v6 = vpop.f32.mrf.mxu1  ;;  %v2845_v49 = vld [vmem:[%s4270_s14 + $0x28] sm:$0xff] }
0x1058   : > { %v2588_v7 = vadd.f32 %v2587_v6, %v2518_v43  ;;  %v2843_v6 = vld [vmem:[%s4270_s14 + $0x18] sm:$0xff] }
0x1059   : > { %v2617_v24 = vmax.f32 %v2565_v5, 0.0  ;;  %v2844_v5 = vld [vmem:[%s4270_s14 + $0x20] sm:$0xff] }
0x105a   : > { %v2618_v9 = vmax.f32 %v2588_v7, 0.0  ;;  %v2842_v7 = vld [vmem:[%s4270_s14 + $0x10] sm:$0xff] }
0x105b   : > { %2733 = vmatmul.f32.vlgmr.msra.gmra.mxu0 %v2617_v24  ;;  %v2841_v24 = vld [vmem:[%s4270_s14 + $0x8] sm:$0xff] }
0x105c   : > { %2756 = vmatmul.f32.vlgmr.msrb.gmra.mxu1 %v2618_v9  ;;  %v2541_v11 = vpop.f32.mrf.mxu3 }
0x105d   : > { %v2542_v12 = vadd.f32 %v2541_v11, %v2516_v8  ;;  %v2610_v17 = vpop.f32.mrf.mxu2 }
0x105e   : > { %v2611_v13 = vadd.f32 %v2610_v17, %v2519_v10  ;;  %v2567_v15 = vpop.f32.mrf.mxu0 }
0x105f   : > { %v2616_v1 = vmax.f32 %v2542_v12, 0.0  ;;  %v2568_v19 = vadd.f32 %v2567_v15, %v2517_v3  ;;  %v2590_v20 = vpop.f32.mrf.mxu1  ;;  %v2847_v3 = vld [vmem:[%s4270_s14 + $0x38] sm:$0xff] }
0x1060   : > { %v2619_v35 = vmax.f32 %v2611_v13, 0.0  ;;  %v2591_v60 = vadd.f32 %v2590_v20, %v2518_v43  ;;  %2868 = vmatpush.msrb.mxu3 %v2847_v3  ;;  %v2846_v43 = vld [vmem:[%s4270_s14 + $0x30] sm:$0xff] }
0x1061   : > { %v2621_v34 = vmax.f32 %v2568_v19, 0.0  ;;  %2710 = vmatmul.f32.vlgmr.msra.gmra.mxu3 %v2616_v1 }
0x1062   : > { %v2622_v21 = vmax.f32 %v2591_v60, 0.0  ;;  %2779 = vmatmul.f32.vlgmr.msra.gmra.mxu2 %v2619_v35  ;;  %2869 = vmatpush.msrb.mxu3 %v2846_v43 }
0x1063   : > { %2736 = vmatmul.f32.gmra.mxu0 %v2621_v34 }
0x1064   : > { %2759 = vmatmul.f32.gmra.mxu1 %v2622_v21  ;;  %v2544_v22 = vpop.f32.mrf.mxu3  ;;  %2870 = vmatpush.msrb.mxu3 %v2845_v49 }
0x1065   : > { %v2545_v23 = vadd.f32 %v2544_v22, %v2516_v8  ;;  %v2613_v4 = vpop.f32.mrf.mxu2  ;;  %v2840_v8 = vld [vmem:[%s4270_s14] sm:$0xff] }
0x1066   : > { %v2614_v25 = vadd.f32 %v2613_v4, %v2519_v10  ;;  %2871 = vmatpush.msrb.mxu3 %v2844_v5  ;;  %v3226_v22 = vld [vmem:[%s4268_s12] ss:$0 sm:$0xff] }
0x1067   : > { %v2620_v27 = vmax.f32 %v2545_v23, 0.0 }
0x1068   : > { %v2623_v39 = vmax.f32 %v2614_v25, 0.0  ;;  %2872 = vmatpush.msrb.mxu3 %v2843_v6  ;;  %v3227_v25 = vld [vmem:[%s4269_s13] ss:$0 sm:$0xff] }
0x1069   : > { %2713 = vmatmul.f32.gmra.mxu3 %v2620_v27 }
0x106a   : > { %2782 = vmatmul.f32.gmra.mxu2 %v2623_v39  ;;  %2873 = vmatpush.msrb.mxu3 %v2842_v7 }
0x106c   : > { %2874 = vmatpush.msrb.mxu3 %v2841_v24 }
0x106e   : > { %2875 = vmatpush.msrb.mxu3 %v2840_v8 }
0x10d8   : > { %v2734_v28 = vpop.f32.mrf.mxu0 }
0x10d9   : > { %v2757_v26 = vpop.f32.mrf.mxu1 }
0x10e0   : > { %v2737_v45 = vpop.f32.mrf.mxu0 }
0x10e1   : > { %v2760_v47 = vpop.f32.mrf.mxu1 }
0x10e4   : > { %v2711_v31 = vpop.f32.mrf.mxu3 }
0x10e5   : > { %v2712_v40 = vadd.f32 %v3225_v29, %v2711_v31  ;;  %v2780_v16 = vpop.f32.mrf.mxu2 }
0x10e7   : > { %v2735_v32 = vadd.f32 %v2734_v28, %v2712_v40 }
0x10e9   : > { %v2758_v33 = vadd.f32 %v2757_v26, %v2735_v32 }
0x10eb   : > { %v2781_v37 = vadd.f32 %v2780_v16, %v2758_v33  ;;  %v3228_v33 = vld [vmem:[%s4308_s21] ss:$0 sm:$0xff] }
0x10ec   : > { %v2714_v38 = vpop.f32.mrf.mxu3 }
0x10ed   : > { %v2715_v41 = vadd.f32 %v3225_v29, %v2714_v38  ;;  %v2786_v44 = vadd.f32 %v2781_v37, %v4102_v0  ;;  %v2783_v50 = vpop.f32.mrf.mxu2 }
0x10ef   : > { %v2738_v46 = vadd.f32 %v2737_v45, %v2715_v41  ;;  %2790 = vadd.xlane.f32.xlu2 %v2786_v44 }
0x10f1   : > { %v2761_v48 = vadd.f32 %v2760_v47, %v2738_v46 }
0x10f3   : > { %v2784_v51 = vadd.f32 %v2783_v50, %v2761_v48 }
0x10f5   : > { %v2787_v36 = vadd.f32 %v2784_v51, %v4106_v18 }
0x10f7   : > { %2792 = vadd.xlane.f32.xlu2 %v2787_v36 }
0x1162   : > { %v2791_v0 = vpop.xlane.xlu2 %2790 }
0x1163   : > { %v2794_v53 = vmul.f32 %v2791_v0, %v3673_v14 }
0x1165   : > { %v2796_v54 = vsub.f32 %v2786_v44, %v2794_v53 }
0x1167   : > { %v2798_v55 = vmul.f32 %v2796_v54, %v2796_v54 }
0x1169   : > { %2800 = vadd.xlane.f32.xlu2 %v2798_v55 }
0x116a   : > { %v2793_v56 = vpop.xlane.xlu2 %2792 }
0x116b   : > { %v2795_v18 = vmul.f32 %v2793_v56, %v3673_v14 }
0x116d   : > { %v4166_v42 = vsub.f32 %v2787_v36, %v2795_v18 }
0x116f   : > { %v2799_v57 = vmul.f32 %v4166_v42, %v4166_v42 }
0x1171   : > { %2802 = vadd.xlane.f32.xlu0 %v2799_v57 }
0x11dc   : > { %v2801_v9 = vpop.xlane.xlu2 %2800 }
0x11dd   : > { %v2804_v10 = vmul.f32 %v2801_v9, %v3673_v14 }
0x11df   : > { %v2806_v11 = vadd.f32 1e-05, %v2804_v10 }
0x11e1   : > { %3311 = vrsqrt.f32 %v2806_v11  ;;  %vm2814_vm14 = vweird.f32 %v2806_v11 }
0x11e4   : > { %v2803_v12 = vpop.xlane.xlu0 %2802 }
0x11e5   : > { %v2805_v17 = vmul.f32 %v2803_v12, %v3673_v14 }
0x11e7   : > { %v3312_v13 = vpop.eup %3311  ;;  %v2807_v15 = vadd.f32 1e-05, %v2805_v17 }
0x11e8   : > { %v2809_v1 = vmul.f32 %v3312_v13, %v2806_v11  ;;  %vm2815_vm13 = vweird.f32 %v3312_v13 }
0x11e9   : > { %3313 = vrsqrt.f32 %v2807_v15  ;;  %vm2816_vm15 = vmor %vm2814_vm14, %vm2815_vm13  ;;  %vm2824_vm1 = vweird.f32 %v2807_v15 }
0x11ea   : > { %v2810_v19 = vmul.f32 %v3312_v13, %v2809_v1 }
0x11ec   : > { %v2811_v20 = vmul.f32 0.5, %v2810_v19 }
0x11ee   : > { %v2812_v35 = vsub.f32 1.5, %v2811_v20 }
0x11ef   : > { %v3314_v60 = vpop.eup %3313 }
0x11f0   : > { %v2813_v34 = vmul.f32 %v3312_v13, %v2812_v35  ;;  %v2819_v21 = vmul.f32 %v3314_v60, %v2807_v15  ;;  %vm2825_vm0 = vweird.f32 %v3314_v60 }
0x11f1   : > { %vm2826_vm2 = vmor %vm2824_vm1, %vm2825_vm0 }
0x11f2   : > { %v2817_v23 = vsel %vm2816_vm15, %v3312_v13, %v2813_v34  ;;  %v2820_v4 = vmul.f32 %v3314_v60, %v2819_v21 }
0x11f3   : > { %v2828_v14 = vmul.f32 %v2817_v23, %v2796_v54 }
0x11f4   : > { %v2821_v27 = vmul.f32 0.5, %v2820_v4 }
0x11f5   : > { %v2833_v39 = vmul.f32 %v3226_v22, %v2828_v14 }
0x11f6   : > { %v2822_v29 = vsub.f32 1.5, %v2821_v27 }
0x11f7   : > { %v2838_v28 = vadd.f32 %v3227_v25, %v2833_v39 }
0x11f8   : > { %v2823_v31 = vmul.f32 %v3314_v60, %v2822_v29 }
0x11f9   : > { %2876 = vmatmul.f32.vlgmr.msrb.gmra.mxu3 %v2838_v28 }
0x11fa   : > { %v2827_v40 = vsel %vm2826_vm2, %v3314_v60, %v2823_v31 }
0x11fb   : > { %v2829_v26 = vmul.f32 %v2827_v40, %v4166_v42 }
0x11fd   : > { %v2834_v32 = vmul.f32 %v3226_v22, %v2829_v26 }
0x11ff   : > { %v2839_v16 = vadd.f32 %v3227_v25, %v2834_v32 }
0x1201   : > { %2879 = vmatmul.f32.gmra.mxu3 %v2839_v16 }
0x127c   : > { %v2877_v37 = vpop.f32.mrf.mxu3 }
0x127d   : > { %v2878_v38 = vadd.f32 %v3228_v33, %v2877_v37 }
0x127f   : > { %2883 = vst [vmem:[%s565_s30] sm:$0xff] %v2878_v38 }
0x1284   : > { %v2880_v41 = vpop.f32.mrf.mxu3 }
0x1285   : > { %v2881_v44 = vadd.f32 %v3228_v33, %v2880_v41 }
0x1287   : > { %2884 = vst [vmem:[%s565_s30 + $0x8] sm:$0xff] %v2881_v44 }
0x1288   : > { %3432 = shalt.err (!%p3429_p8)
}
0x1289   : > { %s3490_s16 = smov 128   ;;  %s3491_s21 = smov 8  }
0x128a   : > { %3114 = dma.vmem_to_hbm [thread:$0]  (%p3615_p5), %s2899_s28, 256, %s2901_s23, %s2886_s27, %s3490_s16, %s3490_s16, %s3491_s21  }
0x128b PF: > { %s4311_s22 = sld [smem:[#allocation15_spill]] }
0x128c   : > { %s4312_s30 = sld [smem:[#allocation12_spill]] }
0x1291   : > { %p3136_p9 = scmp.ge.s32.totalorder %s4311_s22, 2 }
0x1292   : > { %s2915_s17 = sand.u32 1, %s4312_s30  }
0x1293   : > { %p3127_p10 = pnand %p3136_p9, %p3619_p6  ;;  %s2916_s20 = scalar_lea.sflag [#allocation4], %s2915_s17 }
0x1295   : > { %p3128_p11 = pneg %p3127_p10 }
0x1297   : > { %3458 = dma.done.wait (%p3128_p11), %s2916_s20, 256  }
0x1298   : > { %3460 = vsyncadd (%p3128_p11), %s2916_s20, 4294967040  ;;  %s4314_s24 = sld [smem:[#allocation16_spill]] }
0x1299   : > { %s4315_s21 = sld [smem:[#allocation13_spill]] }
0x129a   : > { %s4316_s22 = sld [smem:[#allocation14_spill]] }
0x129b   : > { %s4317_s23 = sld [smem:[#allocation17_spill]] }
0x129e   : > { %p28_p12 = scmp.ge.s32.totalorder %s4314_s24, 4  }
0x12a0   :  { %30 = sbr.rel (!%p28_p12) target bundleno = 11 (0xb), region = 143 }
0x12a5   :  { %2922 = vsyncpa [#allocation3], 1 }
0x12a6   :  { %2924 = vsyncpa [#allocation3 + $0x1], 1 }
0x12a7   :  { %2925 = vsyncpa [#allocation6], 1 }
0x12a8   :  { %2926 = vsyncpa [#allocation4], 1 }
0x12a9   :  { %2928 = vsyncpa [#allocation4 + $0x1], 1 }

</bundles_post_ra>
